<compile_context>
chip_gen: v7x
topology: tpu7x:2x2x1
jax: 0.10.0
libtpu: 0.0.40
codegen_flags: <defaults>
</compile_context>

<pallas_src>
import jax
import jax.numpy as jnp
from jax import lax
from jax.experimental import pallas as pl
from jax.experimental.pallas import tpu as pltpu

EPS = 1e-5                     # nn.InstanceNorm2d default eps
MATMUL_DTYPE = jnp.bfloat16    # MXU operand dtype (accumulation is always f32)
LANES = 128


# ---------------------------------------------------------------------------
# In-kernel helpers
# ---------------------------------------------------------------------------
def _reflect_pad_store(dst_ref, a, H, W):
    """Reflection-pad `a` (H, W, Cp) by 1 pixel into dst_ref ((H+2, W+2, Cp))."""
    dst_ref[1:H + 1, 1:W + 1, :] = a
    # top / bottom rows (reflect across the first / last interior row)
    dst_ref[0:1, 1:W + 1, :] = a[1:2, :, :]
    dst_ref[H + 1:H + 2, 1:W + 1, :] = a[H - 2:H - 1, :, :]
    # left / right columns; reading back already-padded rows handles the corners too
    dst_ref[:, 0:1, :] = dst_ref[:, 2:3, :]
    dst_ref[:, W + 1:W + 2, :] = dst_ref[:, W - 1:W, :]


def _im2col(pad_ref, col_ref, H, W, Cp):
    """Write the 9 shifted taps of pad_ref into col_ref (H, W, 9*Cp).

    Tap-major / cin-minor layout in the last dim, matching w.reshape(9*Cp, Cp)
    of an HWIO (3, 3, Cp, Cp) weight.  Lane offsets are multiples of 128.
    """
    for dh in range(3):
        for dw in range(3):
            t = dh * 3 + dw
            col_ref[:, :, t * Cp:(t + 1) * Cp] = (
                pad_ref[dh:dh + H, dw:dw + W, :].astype(col_ref.dtype))


def _conv_in(col_ref, w_ref, H, W, Cp):
    """One fat MXU matmul (K = 9*Cp) + single-sweep InstanceNorm.

    Returns the normalized (H*W, Cp) f32 activation.  The conv bias is omitted:
    InstanceNorm (affine=False) subtracts the per-channel spatial mean, which
    cancels a per-channel bias exactly.
    """
    HW = H * W
    acc = jnp.dot(col_ref[...].reshape(HW, 9 * Cp), w_ref[...],
                  preferred_element_type=jnp.float32)            # (HW, Cp) f32
    inv_hw = 1.0 / HW
    mean = jnp.sum(acc, axis=0, keepdims=True) * inv_hw
    var = jnp.sum(acc * acc, axis=0, keepdims=True) * inv_hw - mean * mean
    var = jnp.maximum(var, 0.0)                                  # guard E[x^2]-E[x]^2
    return (acc - mean) * lax.rsqrt(var + EPS)


# ---------------------------------------------------------------------------
# Fused ResnetBlock kernel (one batch element per grid step)
# ---------------------------------------------------------------------------
def _resnet_block_kernel(x_ref, w1_ref, w2_ref, o_ref, pad_s, col_s):
    # x_ref : (1, H, W, Cp) f32      w1_ref/w2_ref : (9*Cp, Cp) bf16
    # o_ref : (1, H, W, Cp) f32
    # pad_s : (H+2, W+2, Cp) f32 VMEM scratch (reused for padded x then padded y)
    # col_s : (H, W, 9*Cp) bf16 VMEM scratch (im2col buffer, reused)
    _, H, W, Cp = x_ref.shape
    HW = H * W

    # ---- stage 1: reflect-pad x (in-kernel), conv3x3 (single matmul), IN, ReLU
    _reflect_pad_store(pad_s, x_ref[0], H, W)
    _im2col(pad_s, col_s, H, W, Cp)
    y = jnp.maximum(_conv_in(col_s, w1_ref, H, W, Cp), 0.0)      # (HW, Cp) f32

    # ---- stage 2: reflect-pad y (reuse pad_s; padded x no longer needed), conv3x3, IN
    _reflect_pad_store(pad_s, y.reshape(H, W, Cp), H, W)
    _im2col(pad_s, col_s, H, W, Cp)
    z = _conv_in(col_s, w2_ref, H, W, Cp)                        # (HW, Cp) f32

    # ---- residual add (f32)
    out = x_ref[0].reshape(HW, Cp) + z
    o_ref[...] = out.reshape(1, H, W, Cp).astype(o_ref.dtype)


# ---------------------------------------------------------------------------
# Wrapper (layout glue only: NCHW<->NHWC transpose + channel padding)
# ---------------------------------------------------------------------------
def resnet_block(x_nchw, w1, b1, w2, b2, *, matmul_dtype=MATMUL_DTYPE):
    """ResnetBlock forward.

    x_nchw : (N, C, H, W) f32
    w1, w2 : (3, 3, C, C) HWIO conv weights
    b1, b2 : (1, C) conv biases.  Accepted for API parity with the PyTorch module,
             but NOT sent to the kernel: InstanceNorm2d(affine=False) right after each
             conv subtracts the per-channel mean, which removes a per-channel bias
             exactly, so the block output is independent of b1/b2.
    """
    N, C, H, W = x_nchw.shape
    Cp = max(LANES, ((C + LANES - 1) // LANES) * LANES)   # lane-dense channel count

    # NCHW -> NHWC (channels on lanes), zero-pad channels to Cp.
    x = jnp.transpose(x_nchw, (0, 2, 3, 1)).astype(jnp.float32)
    if Cp != C:
        x = jnp.pad(x, ((0, 0), (0, 0), (0, 0), (0, Cp - C)))

    def prep_w(w):
        # HWIO (3,3,C,C) -> (3,3,Cp,Cp) zero-padded -> (9*Cp, Cp), rows ordered
        # (dh, dw, cin) to match the im2col tap layout.
        wp = jnp.pad(w, ((0, 0), (0, 0), (0, Cp - C), (0, Cp - C)))
        return wp.reshape(9 * Cp, Cp).astype(matmul_dtype)

    w1m = prep_w(w1)
    w2m = prep_w(w2)

    # One whole image per grid step.  For CycleGAN-scale inputs (C=256, H=W=64) this
    # still fits v7x's 64 MiB VMEM with the bf16 im2col buffer; tiling H into row-bands
    # (halo + two-pass IN stats) would be the next step if it did not.
    out = pl.pallas_call(
        _resnet_block_kernel,
        out_shape=jax.ShapeDtypeStruct((N, H, W, Cp), jnp.float32),
        grid=(N,),
        in_specs=[
            pl.BlockSpec((1, H, W, Cp), lambda n: (n, 0, 0, 0)),
            pl.BlockSpec((9 * Cp, Cp), lambda n: (0, 0)),
            pl.BlockSpec((9 * Cp, Cp), lambda n: (0, 0)),
        ],
        out_specs=pl.BlockSpec((1, H, W, Cp), lambda n: (n, 0, 0, 0)),
        scratch_shapes=[
            pltpu.VMEM((H + 2, W + 2, Cp), jnp.float32),   # halo buffer (padded x / y)
            pltpu.VMEM((H, W, 9 * Cp), matmul_dtype),      # im2col buffer (bf16)
        ],
        compiler_params=pltpu.CompilerParams(
            dimension_semantics=("parallel",),             # batch axis independent (v7x)
            vmem_limit_bytes=48 * 1024 * 1024,             # headroom, < v7x 64 MiB
        ),
    )(x, w1m, w2m)

    out = out[..., :C]                                     # drop channel padding
    return jnp.transpose(out, (0, 3, 1, 2))                # back to NCHW


# ---------------------------------------------------------------------------
# Pure-JAX reference (correctness check)
# ---------------------------------------------------------------------------
def _reference(x_nchw, w1, b1, w2, b2, matmul_dtype=MATMUL_DTYPE):
    """Reference mirroring the kernel's numerics policy: conv operands cast to
    `matmul_dtype` with f32 accumulation; padding / IN / ReLU / residual in f32.
    Set matmul_dtype=jnp.float32 for exact f32 (PyTorch) semantics."""
    x = jnp.transpose(x_nchw, (0, 2, 3, 1)).astype(jnp.float32)

    def conv3x3(a, w, b):
        ap = jnp.pad(a, ((0, 0), (1, 1), (1, 1), (0, 0)), mode="reflect")
        out = lax.conv_general_dilated(
            ap.astype(matmul_dtype), w.astype(matmul_dtype),
            window_strides=(1, 1), padding="VALID",
            dimension_numbers=("NHWC", "HWIO", "NHWC"),
            preferred_element_type=jnp.float32)
        return out + b[0][None, None, None, :].astype(jnp.float32)

    def inorm(a):
        m = jnp.mean(a, axis=(1, 2), keepdims=True)
        v = jnp.mean((a - m) ** 2, axis=(1, 2), keepdims=True)
        return (a - m) * lax.rsqrt(v + EPS)

    y = jnp.maximum(inorm(conv3x3(x, w1, b1)), 0.0)
    z = inorm(conv3x3(y, w2, b2))
    return jnp.transpose(x + z, (0, 3, 1, 2))


if __name__ == "__main__":
    N, C, H, W = 2, 8, 16, 16   # small test shapes; dim = C

    key = jax.random.PRNGKey(0)
    kx, k1, k2, k3, k4 = jax.random.split(key, 5)

    fan_in = C * 3 * 3
    bound = 1.0 / jnp.sqrt(fan_in)
    x = jax.random.normal(kx, (N, C, H, W), dtype=jnp.float32)
    w1 = jax.random.uniform(k1, (3, 3, C, C), jnp.float32, -bound, bound)
    b1 = jax.random.uniform(k2, (1, C), jnp.float32, -bound, bound)
    w2 = jax.random.uniform(k3, (3, 3, C, C), jnp.float32, -bound, bound)
    b2 = jax.random.uniform(k4, (1, C), jnp.float32, -bound, bound)

    out = jax.block_until_ready(resnet_block(x, w1, b1, w2, b2))
    ref = jax.block_until_ready(_reference(x, w1, b1, w2, b2))

    assert out.shape == (N, C, H, W)
    err = float(jnp.max(jnp.abs(out - ref)))
    # Both kernel and reference use bf16 MXU operands with f32 accumulation, so the
    # remaining difference is accumulation-order / rounding-boundary noise only.
    assert err < 1e-2, f"max err {err}"

    print("KERNEL_OK")
</pallas_src>

<mosaic_0001>
module attributes {stable_mosaic.version = 11 : i64} {
  func.func @_resnet_block_kernel(%arg0: i32, %arg1: memref<1x16x16x128xf32, #tpu.memory_space<vmem>>, %arg2: memref<1152x128xbf16, #tpu.memory_space<vmem>>, %arg3: memref<1152x128xbf16, #tpu.memory_space<vmem>>, %arg4: memref<1x16x16x128xf32, #tpu.memory_space<vmem>>, %arg5: memref<18x18x128xf32, #tpu.memory_space<vmem>>, %arg6: memref<16x16x1152xbf16, #tpu.memory_space<vmem>>) attributes {dimension_semantics = [#tpu.dimension_semantics<parallel>], iteration_bounds = array<i64: 2>, scalar_prefetch = 0 : i64, scratch_operands = 2 : i64, tpu.core_type = #tpu.core_type<tc>, window_params = [{transform_indices = @transform_0, window_bounds = array<i64: 1, 16, 16, 128>}, {pipeline_mode = #tpu.pipeline_mode<synchronous>, transform_indices = @transform_1, window_bounds = array<i64: 1152, 128>}, {pipeline_mode = #tpu.pipeline_mode<synchronous>, transform_indices = @transform_2, window_bounds = array<i64: 1152, 128>}, {transform_indices = @transform_3, window_bounds = array<i64: 1, 16, 16, 128>}]} {
    %c0 = arith.constant 0 : index
    %c0_0 = arith.constant 0 : index
    %c0_1 = arith.constant 0 : index
    %c0_2 = arith.constant 0 : index
    %0 = vector.load %arg1[%c0, %c0_0, %c0_1, %c0_2] : memref<1x16x16x128xf32, #tpu.memory_space<vmem>>, vector<1x16x16x128xf32>
    %1 = vector.shape_cast %0 : vector<1x16x16x128xf32> to vector<16x16x128xf32>
    %c1 = arith.constant 1 : index
    %c1_3 = arith.constant 1 : index
    %c0_4 = arith.constant 0 : index
    %2 = vector.load %arg5[%c1, %c1_3, %c0_4] : memref<18x18x128xf32, #tpu.memory_space<vmem>>, vector<16x16x128xf32>
    tpu.vector_store %arg5[%c1, %c1_3, %c0_4], %1 {strides = array<i32>} : memref<18x18x128xf32, #tpu.memory_space<vmem>>, vector<16x16x128xf32>,
    %3 = vector.extract_strided_slice %1 {offsets = [1, 0, 0], sizes = [1, 16, 128], strides = [1, 1, 1]} : vector<16x16x128xf32> to vector<1x16x128xf32>
    %c0_5 = arith.constant 0 : index
    %c1_6 = arith.constant 1 : index
    %c0_7 = arith.constant 0 : index
    %4 = vector.load %arg5[%c0_5, %c1_6, %c0_7] : memref<18x18x128xf32, #tpu.memory_space<vmem>>, vector<1x16x128xf32>
    tpu.vector_store %arg5[%c0_5, %c1_6, %c0_7], %3 {strides = array<i32>} : memref<18x18x128xf32, #tpu.memory_space<vmem>>, vector<1x16x128xf32>,
    %5 = vector.extract_strided_slice %1 {offsets = [14, 0, 0], sizes = [1, 16, 128], strides = [1, 1, 1]} : vector<16x16x128xf32> to vector<1x16x128xf32>
    %c17 = arith.constant 17 : index
    %c1_8 = arith.constant 1 : index
    %c0_9 = arith.constant 0 : index
    %6 = vector.load %arg5[%c17, %c1_8, %c0_9] : memref<18x18x128xf32, #tpu.memory_space<vmem>>, vector<1x16x128xf32>
    tpu.vector_store %arg5[%c17, %c1_8, %c0_9], %5 {strides = array<i32>} : memref<18x18x128xf32, #tpu.memory_space<vmem>>, vector<1x16x128xf32>,
    %c0_10 = arith.constant 0 : index
    %c2 = arith.constant 2 : index
    %c0_11 = arith.constant 0 : index
    %7 = vector.load %arg5[%c0_10, %c2, %c0_11] : memref<18x18x128xf32, #tpu.memory_space<vmem>>, vector<18x1x128xf32>
    %c0_12 = arith.constant 0 : index
    %c0_13 = arith.constant 0 : index
    %c0_14 = arith.constant 0 : index
    %8 = vector.load %arg5[%c0_12, %c0_13, %c0_14] : memref<18x18x128xf32, #tpu.memory_space<vmem>>, vector<18x1x128xf32>
    tpu.vector_store %arg5[%c0_12, %c0_13, %c0_14], %7 {strides = array<i32>} : memref<18x18x128xf32, #tpu.memory_space<vmem>>, vector<18x1x128xf32>,
    %c0_15 = arith.constant 0 : index
    %c15 = arith.constant 15 : index
    %c0_16 = arith.constant 0 : index
    %9 = vector.load %arg5[%c0_15, %c15, %c0_16] : memref<18x18x128xf32, #tpu.memory_space<vmem>>, vector<18x1x128xf32>
    %c0_17 = arith.constant 0 : index
    %c17_18 = arith.constant 17 : index
    %c0_19 = arith.constant 0 : index
    %10 = vector.load %arg5[%c0_17, %c17_18, %c0_19] : memref<18x18x128xf32, #tpu.memory_space<vmem>>, vector<18x1x128xf32>
    tpu.vector_store %arg5[%c0_17, %c17_18, %c0_19], %9 {strides = array<i32>} : memref<18x18x128xf32, #tpu.memory_space<vmem>>, vector<18x1x128xf32>,
    %c0_20 = arith.constant 0 : index
    %c0_21 = arith.constant 0 : index
    %c0_22 = arith.constant 0 : index
    %11 = vector.load %arg5[%c0_20, %c0_21, %c0_22] : memref<18x18x128xf32, #tpu.memory_space<vmem>>, vector<16x16x128xf32>
    %12 = arith.truncf %11 : vector<16x16x128xf32> to vector<16x16x128xbf16>
    %c0_23 = arith.constant 0 : index
    %c0_24 = arith.constant 0 : index
    %c0_25 = arith.constant 0 : index
    %13 = vector.load %arg6[%c0_23, %c0_24, %c0_25] : memref<16x16x1152xbf16, #tpu.memory_space<vmem>>, vector<16x16x128xbf16>
    tpu.vector_store %arg6[%c0_23, %c0_24, %c0_25], %12 {strides = array<i32>} : memref<16x16x1152xbf16, #tpu.memory_space<vmem>>, vector<16x16x128xbf16>,
    %c0_26 = arith.constant 0 : index
    %c1_27 = arith.constant 1 : index
    %c0_28 = arith.constant 0 : index
    %14 = vector.load %arg5[%c0_26, %c1_27, %c0_28] : memref<18x18x128xf32, #tpu.memory_space<vmem>>, vector<16x16x128xf32>
    %15 = arith.truncf %14 : vector<16x16x128xf32> to vector<16x16x128xbf16>
    %c0_29 = arith.constant 0 : index
    %c0_30 = arith.constant 0 : index
    %c128 = arith.constant 128 : index
    %16 = vector.load %arg6[%c0_29, %c0_30, %c128] : memref<16x16x1152xbf16, #tpu.memory_space<vmem>>, vector<16x16x128xbf16>
    tpu.vector_store %arg6[%c0_29, %c0_30, %c128], %15 {strides = array<i32>} : memref<16x16x1152xbf16, #tpu.memory_space<vmem>>, vector<16x16x128xbf16>,
    %c0_31 = arith.constant 0 : index
    %c2_32 = arith.constant 2 : index
    %c0_33 = arith.constant 0 : index
    %17 = vector.load %arg5[%c0_31, %c2_32, %c0_33] : memref<18x18x128xf32, #tpu.memory_space<vmem>>, vector<16x16x128xf32>
    %18 = arith.truncf %17 : vector<16x16x128xf32> to vector<16x16x128xbf16>
    %c0_34 = arith.constant 0 : index
    %c0_35 = arith.constant 0 : index
    %c256 = arith.constant 256 : index
    %19 = vector.load %arg6[%c0_34, %c0_35, %c256] : memref<16x16x1152xbf16, #tpu.memory_space<vmem>>, vector<16x16x128xbf16>
    tpu.vector_store %arg6[%c0_34, %c0_35, %c256], %18 {strides = array<i32>} : memref<16x16x1152xbf16, #tpu.memory_space<vmem>>, vector<16x16x128xbf16>,
    %c1_36 = arith.constant 1 : index
    %c0_37 = arith.constant 0 : index
    %c0_38 = arith.constant 0 : index
    %20 = vector.load %arg5[%c1_36, %c0_37, %c0_38] : memref<18x18x128xf32, #tpu.memory_space<vmem>>, vector<16x16x128xf32>
    %21 = arith.truncf %20 : vector<16x16x128xf32> to vector<16x16x128xbf16>
    %c0_39 = arith.constant 0 : index
    %c0_40 = arith.constant 0 : index
    %c384 = arith.constant 384 : index
    %22 = vector.load %arg6[%c0_39, %c0_40, %c384] : memref<16x16x1152xbf16, #tpu.memory_space<vmem>>, vector<16x16x128xbf16>
    tpu.vector_store %arg6[%c0_39, %c0_40, %c384], %21 {strides = array<i32>} : memref<16x16x1152xbf16, #tpu.memory_space<vmem>>, vector<16x16x128xbf16>,
    %c1_41 = arith.constant 1 : index
    %c1_42 = arith.constant 1 : index
    %c0_43 = arith.constant 0 : index
    %23 = vector.load %arg5[%c1_41, %c1_42, %c0_43] : memref<18x18x128xf32, #tpu.memory_space<vmem>>, vector<16x16x128xf32>
    %24 = arith.truncf %23 : vector<16x16x128xf32> to vector<16x16x128xbf16>
    %c0_44 = arith.constant 0 : index
    %c0_45 = arith.constant 0 : index
    %c512 = arith.constant 512 : index
    %25 = vector.load %arg6[%c0_44, %c0_45, %c512] : memref<16x16x1152xbf16, #tpu.memory_space<vmem>>, vector<16x16x128xbf16>
    tpu.vector_store %arg6[%c0_44, %c0_45, %c512], %24 {strides = array<i32>} : memref<16x16x1152xbf16, #tpu.memory_space<vmem>>, vector<16x16x128xbf16>,
    %c1_46 = arith.constant 1 : index
    %c2_47 = arith.constant 2 : index
    %c0_48 = arith.constant 0 : index
    %26 = vector.load %arg5[%c1_46, %c2_47, %c0_48] : memref<18x18x128xf32, #tpu.memory_space<vmem>>, vector<16x16x128xf32>
    %27 = arith.truncf %26 : vector<16x16x128xf32> to vector<16x16x128xbf16>
    %c0_49 = arith.constant 0 : index
    %c0_50 = arith.constant 0 : index
    %c640 = arith.constant 640 : index
    %28 = vector.load %arg6[%c0_49, %c0_50, %c640] : memref<16x16x1152xbf16, #tpu.memory_space<vmem>>, vector<16x16x128xbf16>
    tpu.vector_store %arg6[%c0_49, %c0_50, %c640], %27 {strides = array<i32>} : memref<16x16x1152xbf16, #tpu.memory_space<vmem>>, vector<16x16x128xbf16>,
    %c2_51 = arith.constant 2 : index
    %c0_52 = arith.constant 0 : index
    %c0_53 = arith.constant 0 : index
    %29 = vector.load %arg5[%c2_51, %c0_52, %c0_53] : memref<18x18x128xf32, #tpu.memory_space<vmem>>, vector<16x16x128xf32>
    %30 = arith.truncf %29 : vector<16x16x128xf32> to vector<16x16x128xbf16>
    %c0_54 = arith.constant 0 : index
    %c0_55 = arith.constant 0 : index
    %c768 = arith.constant 768 : index
    %31 = vector.load %arg6[%c0_54, %c0_55, %c768] : memref<16x16x1152xbf16, #tpu.memory_space<vmem>>, vector<16x16x128xbf16>
    tpu.vector_store %arg6[%c0_54, %c0_55, %c768], %30 {strides = array<i32>} : memref<16x16x1152xbf16, #tpu.memory_space<vmem>>, vector<16x16x128xbf16>,
    %c2_56 = arith.constant 2 : index
    %c1_57 = arith.constant 1 : index
    %c0_58 = arith.constant 0 : index
    %32 = vector.load %arg5[%c2_56, %c1_57, %c0_58] : memref<18x18x128xf32, #tpu.memory_space<vmem>>, vector<16x16x128xf32>
    %33 = arith.truncf %32 : vector<16x16x128xf32> to vector<16x16x128xbf16>
    %c0_59 = arith.constant 0 : index
    %c0_60 = arith.constant 0 : index
    %c896 = arith.constant 896 : index
    %34 = vector.load %arg6[%c0_59, %c0_60, %c896] : memref<16x16x1152xbf16, #tpu.memory_space<vmem>>, vector<16x16x128xbf16>
    tpu.vector_store %arg6[%c0_59, %c0_60, %c896], %33 {strides = array<i32>} : memref<16x16x1152xbf16, #tpu.memory_space<vmem>>, vector<16x16x128xbf16>,
    %c2_61 = arith.constant 2 : index
    %c2_62 = arith.constant 2 : index
    %c0_63 = arith.constant 0 : index
    %35 = vector.load %arg5[%c2_61, %c2_62, %c0_63] : memref<18x18x128xf32, #tpu.memory_space<vmem>>, vector<16x16x128xf32>
    %36 = arith.truncf %35 : vector<16x16x128xf32> to vector<16x16x128xbf16>
    %c0_64 = arith.constant 0 : index
    %c0_65 = arith.constant 0 : index
    %c1024 = arith.constant 1024 : index
    %37 = vector.load %arg6[%c0_64, %c0_65, %c1024] : memref<16x16x1152xbf16, #tpu.memory_space<vmem>>, vector<16x16x128xbf16>
    tpu.vector_store %arg6[%c0_64, %c0_65, %c1024], %36 {strides = array<i32>} : memref<16x16x1152xbf16, #tpu.memory_space<vmem>>, vector<16x16x128xbf16>,
    %c0_66 = arith.constant 0 : index
    %c0_67 = arith.constant 0 : index
    %c0_68 = arith.constant 0 : index
    %38 = vector.load %arg6[%c0_66, %c0_67, %c0_68] : memref<16x16x1152xbf16, #tpu.memory_space<vmem>>, vector<16x16x1152xbf16>
    %39 = vector.shape_cast %38 : vector<16x16x1152xbf16> to vector<256x1152xbf16>
    %c0_69 = arith.constant 0 : index
    %c0_70 = arith.constant 0 : index
    %40 = vector.load %arg2[%c0_69, %c0_70] : memref<1152x128xbf16, #tpu.memory_space<vmem>>, vector<1152x128xbf16>
    %cst = arith.constant dense<0.000000e+00> : vector<256x128xf32>
    %41 = tpu.matmul %39, %40, %cst {dimension_numbers = #tpu.dot_dimension_numbers<[1], [0], [0], [1], [0, 0, 1, 1], [], []>} : vector<256x1152xbf16>, vector<1152x128xbf16>, vector<256x128xf32> -> vector<256x128xf32>
    %cst_71 = arith.constant dense<0.000000e+00> : vector<128xf32>
    %42 = vector.multi_reduction <add>, %41, %cst_71 [0] : vector<256x128xf32> to vector<128xf32>
    %43 = vector.shape_cast %42 : vector<128xf32> to vector<1x128xf32>
    %cst_72 = arith.constant 3.906250e-03 : f32
    %44 = vector.broadcast %cst_72 : f32 to vector<1x128xf32>
    %45 = arith.mulf %43, %44 : vector<1x128xf32>
    %46 = arith.mulf %41, %41 : vector<256x128xf32>
    %cst_73 = arith.constant dense<0.000000e+00> : vector<128xf32>
    %47 = vector.multi_reduction <add>, %46, %cst_73 [0] : vector<256x128xf32> to vector<128xf32>
    %48 = vector.shape_cast %47 : vector<128xf32> to vector<1x128xf32>
    %cst_74 = arith.constant 3.906250e-03 : f32
    %49 = vector.broadcast %cst_74 : f32 to vector<1x128xf32>
    %50 = arith.mulf %48, %49 : vector<1x128xf32>
    %51 = arith.mulf %45, %45 : vector<1x128xf32>
    %52 = arith.subf %50, %51 : vector<1x128xf32>
    %cst_75 = arith.constant 0.000000e+00 : f32
    %53 = vector.broadcast %cst_75 : f32 to vector<1x128xf32>
    %54 = arith.maximumf %52, %53 : vector<1x128xf32>
    %55 = vector.broadcast %45 : vector<1x128xf32> to vector<256x128xf32>
    %56 = arith.subf %41, %55 : vector<256x128xf32>
    %cst_76 = arith.constant 9.99999974E-6 : f32
    %57 = vector.broadcast %cst_76 : f32 to vector<1x128xf32>
    %58 = arith.addf %54, %57 : vector<1x128xf32>
    %59 = math.rsqrt %58 : vector<1x128xf32>
    %60 = vector.broadcast %59 : vector<1x128xf32> to vector<256x128xf32>
    %61 = arith.mulf %56, %60 : vector<256x128xf32>
    %cst_77 = arith.constant 0.000000e+00 : f32
    %62 = vector.broadcast %cst_77 : f32 to vector<256x128xf32>
    %63 = arith.maximumf %61, %62 : vector<256x128xf32>
    %64 = vector.shape_cast %63 : vector<256x128xf32> to vector<16x16x128xf32>
    %c1_78 = arith.constant 1 : index
    %c1_79 = arith.constant 1 : index
    %c0_80 = arith.constant 0 : index
    %65 = vector.load %arg5[%c1_78, %c1_79, %c0_80] : memref<18x18x128xf32, #tpu.memory_space<vmem>>, vector<16x16x128xf32>
    tpu.vector_store %arg5[%c1_78, %c1_79, %c0_80], %64 {strides = array<i32>} : memref<18x18x128xf32, #tpu.memory_space<vmem>>, vector<16x16x128xf32>,
    %66 = vector.extract_strided_slice %64 {offsets = [1, 0, 0], sizes = [1, 16, 128], strides = [1, 1, 1]} : vector<16x16x128xf32> to vector<1x16x128xf32>
    %c0_81 = arith.constant 0 : index
    %c1_82 = arith.constant 1 : index
    %c0_83 = arith.constant 0 : index
    %67 = vector.load %arg5[%c0_81, %c1_82, %c0_83] : memref<18x18x128xf32, #tpu.memory_space<vmem>>, vector<1x16x128xf32>
    tpu.vector_store %arg5[%c0_81, %c1_82, %c0_83], %66 {strides = array<i32>} : memref<18x18x128xf32, #tpu.memory_space<vmem>>, vector<1x16x128xf32>,
    %68 = vector.extract_strided_slice %64 {offsets = [14, 0, 0], sizes = [1, 16, 128], strides = [1, 1, 1]} : vector<16x16x128xf32> to vector<1x16x128xf32>
    %c17_84 = arith.constant 17 : index
    %c1_85 = arith.constant 1 : index
    %c0_86 = arith.constant 0 : index
    %69 = vector.load %arg5[%c17_84, %c1_85, %c0_86] : memref<18x18x128xf32, #tpu.memory_space<vmem>>, vector<1x16x128xf32>
    tpu.vector_store %arg5[%c17_84, %c1_85, %c0_86], %68 {strides = array<i32>} : memref<18x18x128xf32, #tpu.memory_space<vmem>>, vector<1x16x128xf32>,
    %c0_87 = arith.constant 0 : index
    %c2_88 = arith.constant 2 : index
    %c0_89 = arith.constant 0 : index
    %70 = vector.load %arg5[%c0_87, %c2_88, %c0_89] : memref<18x18x128xf32, #tpu.memory_space<vmem>>, vector<18x1x128xf32>
    %c0_90 = arith.constant 0 : index
    %c0_91 = arith.constant 0 : index
    %c0_92 = arith.constant 0 : index
    %71 = vector.load %arg5[%c0_90, %c0_91, %c0_92] : memref<18x18x128xf32, #tpu.memory_space<vmem>>, vector<18x1x128xf32>
    tpu.vector_store %arg5[%c0_90, %c0_91, %c0_92], %70 {strides = array<i32>} : memref<18x18x128xf32, #tpu.memory_space<vmem>>, vector<18x1x128xf32>,
    %c0_93 = arith.constant 0 : index
    %c15_94 = arith.constant 15 : index
    %c0_95 = arith.constant 0 : index
    %72 = vector.load %arg5[%c0_93, %c15_94, %c0_95] : memref<18x18x128xf32, #tpu.memory_space<vmem>>, vector<18x1x128xf32>
    %c0_96 = arith.constant 0 : index
    %c17_97 = arith.constant 17 : index
    %c0_98 = arith.constant 0 : index
    %73 = vector.load %arg5[%c0_96, %c17_97, %c0_98] : memref<18x18x128xf32, #tpu.memory_space<vmem>>, vector<18x1x128xf32>
    tpu.vector_store %arg5[%c0_96, %c17_97, %c0_98], %72 {strides = array<i32>} : memref<18x18x128xf32, #tpu.memory_space<vmem>>, vector<18x1x128xf32>,
    %c0_99 = arith.constant 0 : index
    %c0_100 = arith.constant 0 : index
    %c0_101 = arith.constant 0 : index
    %74 = vector.load %arg5[%c0_99, %c0_100, %c0_101] : memref<18x18x128xf32, #tpu.memory_space<vmem>>, vector<16x16x128xf32>
    %75 = arith.truncf %74 : vector<16x16x128xf32> to vector<16x16x128xbf16>
    %c0_102 = arith.constant 0 : index
    %c0_103 = arith.constant 0 : index
    %c0_104 = arith.constant 0 : index
    %76 = vector.load %arg6[%c0_102, %c0_103, %c0_104] : memref<16x16x1152xbf16, #tpu.memory_space<vmem>>, vector<16x16x128xbf16>
    tpu.vector_store %arg6[%c0_102, %c0_103, %c0_104], %75 {strides = array<i32>} : memref<16x16x1152xbf16, #tpu.memory_space<vmem>>, vector<16x16x128xbf16>,
    %c0_105 = arith.constant 0 : index
    %c1_106 = arith.constant 1 : index
    %c0_107 = arith.constant 0 : index
    %77 = vector.load %arg5[%c0_105, %c1_106, %c0_107] : memref<18x18x128xf32, #tpu.memory_space<vmem>>, vector<16x16x128xf32>
    %78 = arith.truncf %77 : vector<16x16x128xf32> to vector<16x16x128xbf16>
    %c0_108 = arith.constant 0 : index
    %c0_109 = arith.constant 0 : index
    %c128_110 = arith.constant 128 : index
    %79 = vector.load %arg6[%c0_108, %c0_109, %c128_110] : memref<16x16x1152xbf16, #tpu.memory_space<vmem>>, vector<16x16x128xbf16>
    tpu.vector_store %arg6[%c0_108, %c0_109, %c128_110], %78 {strides = array<i32>} : memref<16x16x1152xbf16, #tpu.memory_space<vmem>>, vector<16x16x128xbf16>,
    %c0_111 = arith.constant 0 : index
    %c2_112 = arith.constant 2 : index
    %c0_113 = arith.constant 0 : index
    %80 = vector.load %arg5[%c0_111, %c2_112, %c0_113] : memref<18x18x128xf32, #tpu.memory_space<vmem>>, vector<16x16x128xf32>
    %81 = arith.truncf %80 : vector<16x16x128xf32> to vector<16x16x128xbf16>
    %c0_114 = arith.constant 0 : index
    %c0_115 = arith.constant 0 : index
    %c256_116 = arith.constant 256 : index
    %82 = vector.load %arg6[%c0_114, %c0_115, %c256_116] : memref<16x16x1152xbf16, #tpu.memory_space<vmem>>, vector<16x16x128xbf16>
    tpu.vector_store %arg6[%c0_114, %c0_115, %c256_116], %81 {strides = array<i32>} : memref<16x16x1152xbf16, #tpu.memory_space<vmem>>, vector<16x16x128xbf16>,
    %c1_117 = arith.constant 1 : index
    %c0_118 = arith.constant 0 : index
    %c0_119 = arith.constant 0 : index
    %83 = vector.load %arg5[%c1_117, %c0_118, %c0_119] : memref<18x18x128xf32, #tpu.memory_space<vmem>>, vector<16x16x128xf32>
    %84 = arith.truncf %83 : vector<16x16x128xf32> to vector<16x16x128xbf16>
    %c0_120 = arith.constant 0 : index
    %c0_121 = arith.constant 0 : index
    %c384_122 = arith.constant 384 : index
    %85 = vector.load %arg6[%c0_120, %c0_121, %c384_122] : memref<16x16x1152xbf16, #tpu.memory_space<vmem>>, vector<16x16x128xbf16>
    tpu.vector_store %arg6[%c0_120, %c0_121, %c384_122], %84 {strides = array<i32>} : memref<16x16x1152xbf16, #tpu.memory_space<vmem>>, vector<16x16x128xbf16>,
    %c1_123 = arith.constant 1 : index
    %c1_124 = arith.constant 1 : index
    %c0_125 = arith.constant 0 : index
    %86 = vector.load %arg5[%c1_123, %c1_124, %c0_125] : memref<18x18x128xf32, #tpu.memory_space<vmem>>, vector<16x16x128xf32>
    %87 = arith.truncf %86 : vector<16x16x128xf32> to vector<16x16x128xbf16>
    %c0_126 = arith.constant 0 : index
    %c0_127 = arith.constant 0 : index
    %c512_128 = arith.constant 512 : index
    %88 = vector.load %arg6[%c0_126, %c0_127, %c512_128] : memref<16x16x1152xbf16, #tpu.memory_space<vmem>>, vector<16x16x128xbf16>
    tpu.vector_store %arg6[%c0_126, %c0_127, %c512_128], %87 {strides = array<i32>} : memref<16x16x1152xbf16, #tpu.memory_space<vmem>>, vector<16x16x128xbf16>,
    %c1_129 = arith.constant 1 : index
    %c2_130 = arith.constant 2 : index
    %c0_131 = arith.constant 0 : index
    %89 = vector.load %arg5[%c1_129, %c2_130, %c0_131] : memref<18x18x128xf32, #tpu.memory_space<vmem>>, vector<16x16x128xf32>
    %90 = arith.truncf %89 : vector<16x16x128xf32> to vector<16x16x128xbf16>
    %c0_132 = arith.constant 0 : index
    %c0_133 = arith.constant 0 : index
    %c640_134 = arith.constant 640 : index
    %91 = vector.load %arg6[%c0_132, %c0_133, %c640_134] : memref<16x16x1152xbf16, #tpu.memory_space<vmem>>, vector<16x16x128xbf16>
    tpu.vector_store %arg6[%c0_132, %c0_133, %c640_134], %90 {strides = array<i32>} : memref<16x16x1152xbf16, #tpu.memory_space<vmem>>, vector<16x16x128xbf16>,
    %c2_135 = arith.constant 2 : index
    %c0_136 = arith.constant 0 : index
    %c0_137 = arith.constant 0 : index
    %92 = vector.load %arg5[%c2_135, %c0_136, %c0_137] : memref<18x18x128xf32, #tpu.memory_space<vmem>>, vector<16x16x128xf32>
    %93 = arith.truncf %92 : vector<16x16x128xf32> to vector<16x16x128xbf16>
    %c0_138 = arith.constant 0 : index
    %c0_139 = arith.constant 0 : index
    %c768_140 = arith.constant 768 : index
    %94 = vector.load %arg6[%c0_138, %c0_139, %c768_140] : memref<16x16x1152xbf16, #tpu.memory_space<vmem>>, vector<16x16x128xbf16>
    tpu.vector_store %arg6[%c0_138, %c0_139, %c768_140], %93 {strides = array<i32>} : memref<16x16x1152xbf16, #tpu.memory_space<vmem>>, vector<16x16x128xbf16>,
    %c2_141 = arith.constant 2 : index
    %c1_142 = arith.constant 1 : index
    %c0_143 = arith.constant 0 : index
    %95 = vector.load %arg5[%c2_141, %c1_142, %c0_143] : memref<18x18x128xf32, #tpu.memory_space<vmem>>, vector<16x16x128xf32>
    %96 = arith.truncf %95 : vector<16x16x128xf32> to vector<16x16x128xbf16>
    %c0_144 = arith.constant 0 : index
    %c0_145 = arith.constant 0 : index
    %c896_146 = arith.constant 896 : index
    %97 = vector.load %arg6[%c0_144, %c0_145, %c896_146] : memref<16x16x1152xbf16, #tpu.memory_space<vmem>>, vector<16x16x128xbf16>
    tpu.vector_store %arg6[%c0_144, %c0_145, %c896_146], %96 {strides = array<i32>} : memref<16x16x1152xbf16, #tpu.memory_space<vmem>>, vector<16x16x128xbf16>,
    %c2_147 = arith.constant 2 : index
    %c2_148 = arith.constant 2 : index
    %c0_149 = arith.constant 0 : index
    %98 = vector.load %arg5[%c2_147, %c2_148, %c0_149] : memref<18x18x128xf32, #tpu.memory_space<vmem>>, vector<16x16x128xf32>
    %99 = arith.truncf %98 : vector<16x16x128xf32> to vector<16x16x128xbf16>
    %c0_150 = arith.constant 0 : index
    %c0_151 = arith.constant 0 : index
    %c1024_152 = arith.constant 1024 : index
    %100 = vector.load %arg6[%c0_150, %c0_151, %c1024_152] : memref<16x16x1152xbf16, #tpu.memory_space<vmem>>, vector<16x16x128xbf16>
    tpu.vector_store %arg6[%c0_150, %c0_151, %c1024_152], %99 {strides = array<i32>} : memref<16x16x1152xbf16, #tpu.memory_space<vmem>>, vector<16x16x128xbf16>,
    %c0_153 = arith.constant 0 : index
    %c0_154 = arith.constant 0 : index
    %c0_155 = arith.constant 0 : index
    %101 = vector.load %arg6[%c0_153, %c0_154, %c0_155] : memref<16x16x1152xbf16, #tpu.memory_space<vmem>>, vector<16x16x1152xbf16>
    %102 = vector.shape_cast %101 : vector<16x16x1152xbf16> to vector<256x1152xbf16>
    %c0_156 = arith.constant 0 : index
    %c0_157 = arith.constant 0 : index
    %103 = vector.load %arg3[%c0_156, %c0_157] : memref<1152x128xbf16, #tpu.memory_space<vmem>>, vector<1152x128xbf16>
    %cst_158 = arith.constant dense<0.000000e+00> : vector<256x128xf32>
    %104 = tpu.matmul %102, %103, %cst_158 {dimension_numbers = #tpu.dot_dimension_numbers<[1], [0], [0], [1], [0, 0, 1, 1], [], []>} : vector<256x1152xbf16>, vector<1152x128xbf16>, vector<256x128xf32> -> vector<256x128xf32>
    %cst_159 = arith.constant dense<0.000000e+00> : vector<128xf32>
    %105 = vector.multi_reduction <add>, %104, %cst_159 [0] : vector<256x128xf32> to vector<128xf32>
    %106 = vector.shape_cast %105 : vector<128xf32> to vector<1x128xf32>
    %cst_160 = arith.constant 3.906250e-03 : f32
    %107 = vector.broadcast %cst_160 : f32 to vector<1x128xf32>
    %108 = arith.mulf %106, %107 : vector<1x128xf32>
    %109 = arith.mulf %104, %104 : vector<256x128xf32>
    %cst_161 = arith.constant dense<0.000000e+00> : vector<128xf32>
    %110 = vector.multi_reduction <add>, %109, %cst_161 [0] : vector<256x128xf32> to vector<128xf32>
    %111 = vector.shape_cast %110 : vector<128xf32> to vector<1x128xf32>
    %cst_162 = arith.constant 3.906250e-03 : f32
    %112 = vector.broadcast %cst_162 : f32 to vector<1x128xf32>
    %113 = arith.mulf %111, %112 : vector<1x128xf32>
    %114 = arith.mulf %108, %108 : vector<1x128xf32>
    %115 = arith.subf %113, %114 : vector<1x128xf32>
    %cst_163 = arith.constant 0.000000e+00 : f32
    %116 = vector.broadcast %cst_163 : f32 to vector<1x128xf32>
    %117 = arith.maximumf %115, %116 : vector<1x128xf32>
    %118 = vector.broadcast %108 : vector<1x128xf32> to vector<256x128xf32>
    %119 = arith.subf %104, %118 : vector<256x128xf32>
    %cst_164 = arith.constant 9.99999974E-6 : f32
    %120 = vector.broadcast %cst_164 : f32 to vector<1x128xf32>
    %121 = arith.addf %117, %120 : vector<1x128xf32>
    %122 = math.rsqrt %121 : vector<1x128xf32>
    %123 = vector.broadcast %122 : vector<1x128xf32> to vector<256x128xf32>
    %124 = arith.mulf %119, %123 : vector<256x128xf32>
    %c0_165 = arith.constant 0 : index
    %c0_166 = arith.constant 0 : index
    %c0_167 = arith.constant 0 : index
    %c0_168 = arith.constant 0 : index
    %125 = vector.load %arg1[%c0_165, %c0_166, %c0_167, %c0_168] : memref<1x16x16x128xf32, #tpu.memory_space<vmem>>, vector<1x16x16x128xf32>
    %126 = vector.shape_cast %125 : vector<1x16x16x128xf32> to vector<16x16x128xf32>
    %127 = vector.shape_cast %126 : vector<16x16x128xf32> to vector<256x128xf32>
    %128 = arith.addf %127, %124 : vector<256x128xf32>
    %129 = vector.shape_cast %128 : vector<256x128xf32> to vector<1x16x16x128xf32>
    %c0_169 = arith.constant 0 : index
    %c0_170 = arith.constant 0 : index
    %c0_171 = arith.constant 0 : index
    %c0_172 = arith.constant 0 : index
    %130 = vector.load %arg4[%c0_169, %c0_170, %c0_171, %c0_172] : memref<1x16x16x128xf32, #tpu.memory_space<vmem>>, vector<1x16x16x128xf32>
    tpu.vector_store %arg4[%c0_169, %c0_170, %c0_171, %c0_172], %129 {strides = array<i32>} : memref<1x16x16x128xf32, #tpu.memory_space<vmem>>, vector<1x16x16x128xf32>,
    return
  }
  func.func @transform_0(%arg0: i32) -> (i32, i32, i32, i32) {
    %c0_i32 = arith.constant 0 : i32
    %c0_i32_0 = arith.constant 0 : i32
    %c0_i32_1 = arith.constant 0 : i32
    %c0_i32_2 = arith.constant 0 : i32
    return %arg0, %c0_i32, %c0_i32_0, %c0_i32_1 : i32, i32, i32, i32
  }
  func.func @transform_1(%arg0: i32) -> (i32, i32) {
    %c0_i32 = arith.constant 0 : i32
    %c0_i32_0 = arith.constant 0 : i32
    %c0_i32_1 = arith.constant 0 : i32
    return %c0_i32, %c0_i32_0 : i32, i32
  }
  func.func @transform_2(%arg0: i32) -> (i32, i32) {
    %c0_i32 = arith.constant 0 : i32
    %c0_i32_0 = arith.constant 0 : i32
    %c0_i32_1 = arith.constant 0 : i32
    return %c0_i32, %c0_i32_0 : i32, i32
  }
  func.func @transform_3(%arg0: i32) -> (i32, i32, i32, i32) {
    %c0_i32 = arith.constant 0 : i32
    %c0_i32_0 = arith.constant 0 : i32
    %c0_i32_1 = arith.constant 0 : i32
    %c0_i32_2 = arith.constant 0 : i32
    return %arg0, %c0_i32, %c0_i32_0, %c0_i32_1 : i32, i32, i32, i32
  }
}

</mosaic_0001>

<bundles_post_ra>
// kernel: tpu_custom_call.1
= control target key start
LH: loop header
LB: loop body
LE: loop exit
PB: predicated region body
PF: predicated region fallthrough
CT: control target
= control target key end

     0   :  { %8 = vsyncpa [#allocation5], 0  ;;  %s8711_s0 = inlined_call_operand.hbm [shape: f32[2,16,16,128], index: 0, kind: input, shape index: {}]   ;;  %s8712_s1 = inlined_call_operand.hbm [shape: bf16[1152,128], index: 1, kind: input, shape index: {}]   ;;  %s8713_s2 = inlined_call_operand.hbm [shape: bf16[1152,128], index: 2, kind: input, shape index: {}]   ;;  %s8714_s3 = inlined_call_operand.hbm [shape: f32[2,16,16,128], index: 3, kind: output, shape index: {}]  }
   0x1   :  { %10 = vsyncpa [#allocation5 + $0x1], 0 }
   0x2   :  { %11 = vsyncpa [#allocation8], 0 }
   0x3   :  { %12 = vsyncpa [#allocation6], 0 }
   0x4   :  { %14 = vsyncpa [#allocation6 + $0x1], 0  ;;  %s6873_s12 = smov 0   ;;  %s6875_s13 = smov 0  }
   0x5   :  { %s6877_s14 = smov 0   ;;  %s6879_s15 = smov 0  }
   0x6 LB: > { %s6894_s16 = sadd.s32 4294967295, %s6841_s15   ;;  %s5260_s17 = sadd.s32 4294967294, %s6841_s15   ;;  %s6841_s15 = sphi %s6879_s15, %s8736_s15   ;;  %s6837_s14 = sphi %s6877_s14, %s8735_s14   ;;  %s6833_s13 = sphi %s6875_s13, %s8734_s13   ;;  %s6829_s12 = sphi %s6873_s12, %s8733_s12  }
   0x7   : > { %p40_p0 = scmp.ne.s32.totalorder %s6833_s13, %s6829_s12  ;;  %p8715_p1 = scmp.eq.s32.totalorder %s6894_s16, 0 }
   0x8   : > { %p112_p3 = scmp.eq.s32.totalorder %s5260_s17, 1  ;;  %p5261_p5 = scmp.ge.s32.totalorder %s6841_s15, 1 }
   0x9   : > { %p6903_p4 = por %p8715_p1, %p40_p0  ;;  %p119_p7 = scmp.lt.s32.totalorder %s6841_s15, 3 }
   0xa   : > { %p6908_p6 = por %p112_p3, %p40_p0  ;;  %s6843_s21 = smov [#allocation7]  }
   0xb   : > { %s8718_s18 = scalar_select %p6903_p4, 1, 0 }
   0xc   : > { %s8719_s19 = scalar_select %p6908_p6, 1, 0 }
   0xd   : > { %p6913_p8 = pnand %p5261_p5, %p119_p7  ;;  %s131_s22 = sshll.u32 %s6843_s21, 4  ;;  %s6917_s22 = int_to_ptr.vmem [resolvable:$true] %s131_s22 }
   0xe   : > { %s6844_s24 = smov [#allocation9]   ;;  %s6685_s28 = scalar_lea.hbm %s8712_s1, 9216 }
   0xf   : > { %p6476_p9 = pneg %p6913_p8  ;;  %s144_s25 = sshll.u32 %s6844_s24, 4  ;;  %s6928_s25 = int_to_ptr.vmem [resolvable:$true] %s144_s25 }
  0x10   : > { %p6686_p12 = scmp.ne.s32.totalorder %s8712_s1, %s6685_s28  ;;  %p6692_p5 = scmp.lt.u32.totalorder %s6685_s28, %s8712_s1 }
  0x11   : > { %p6924_p11 = pnand %p6476_p9, %p8715_p1 }
  0x13   : > { %p6687_p13 = pneg %p6924_p11 }
  0x15   : > { %p6688_p0 = pnand %p6687_p13, %p6686_p12 }
  0x17   : > { %p6689_p3 = pneg %p6688_p0 }
  0x19   : > { %p6694_p7 = pnand %p6692_p5, %p6689_p3 }
  0x1b   : > { %6697 = shalt.err (!%p6694_p7)
}
  0x1c   : > { %s6698_s6 = scalar_lea.vmem %s6917_s22, 9216  ;;  %p6706_p2 = scmp.lt.s32.totalorder %s6917_s22, %s6917_s22 }
  0x1d   : > { %p6699_p9 = scmp.ne.s32.totalorder %s6917_s22, %s6698_s6  ;;  %p6707_p12 = scmp.lt.s32.totalorder %s6698_s6, %s6698_s6 }
  0x1f   : > { %p6701_p10 = pnand %p6699_p9, %p6687_p13  ;;  %p6708_p0 = por %p6707_p12, %p6706_p2 }
  0x21   : > { %p6702_p1 = pneg %p6701_p10 }
  0x23   : > { %p6709_p6 = pnand %p6708_p0, %p6702_p1 }
  0x25   : > { %6712 = shalt.err (!%p6709_p6)
}
  0x26   : > { %s6845_s7 = smov 64   ;;  %s6846_s8 = smov 4  }
  0x27   : > { %6479 = dma.hbm_to_vmem [thread:$0]  (!%p6924_p11), %s8712_s1, 9216, %s6917_s22, [#allocation8], %s6845_s7, %s6845_s7, %s6846_s8  }
  0x28   : > { %s6713_s21 = scalar_lea.hbm %s8713_s2, 9216 }
  0x29   : > { %p6714_p2 = scmp.ne.s32.totalorder %s8713_s2, %s6713_s21  ;;  %p6720_p10 = scmp.lt.u32.totalorder %s6713_s21, %s8713_s2 }
  0x2b   : > { %p6716_p1 = pnand %p6714_p2, %p6687_p13 }
  0x2d   : > { %p6717_p6 = pneg %p6716_p1 }
  0x2f   : > { %p6722_p3 = pnand %p6720_p10, %p6717_p6 }
  0x31   : > { %6725 = shalt.err (!%p6722_p3)
}
  0x32   : > { %s6726_s22 = scalar_lea.vmem %s6928_s25, 9216  ;;  %p6734_p12 = scmp.lt.s32.totalorder %s6928_s25, %s6928_s25 }
  0x33   : > { %p6727_p5 = scmp.ne.s32.totalorder %s6928_s25, %s6726_s22  ;;  %p6735_p0 = scmp.lt.s32.totalorder %s6726_s22, %s6726_s22 }
  0x35   : > { %p6729_p7 = pnand %p6727_p5, %p6687_p13  ;;  %p6736_p2 = por %p6735_p0, %p6734_p12 }
  0x37   : > { %p6730_p9 = pneg %p6729_p7 }
  0x39   : > { %p6737_p1 = pnand %p6736_p2, %p6730_p9 }
  0x3b   : > { %6740 = shalt.err (!%p6737_p1)
}
  0x3c   : > { %6482 = dma.hbm_to_vmem [thread:$0]  (!%p6924_p11), %s8713_s2, 9216, %s6928_s25, [#allocation8], %s6845_s7, %s6845_s7, %s6846_s8  }
  0x3d   : > { %s6983_s4 = sadd.s32 1, %s6841_s15   ;;  %s27_s23 = sadd.s32 1, %s6837_s14 }
  0x3e   : > { %s24_s5 = ssub.s32 %s6841_s15, %s6983_s4  ;;  %p34_p13 = scmp.ne.s32.totalorder %s6837_s14, %s6833_s13 }
  0x3f   : > { %p25_p6 = scmp.eq.s32.totalorder %s24_s5, 0  ;;  %p35_p10 = scmp.eq.s32.totalorder %s6841_s15, 0 }
  0x40   : > { %p8722_p3 = scmp.eq.s32.totalorder %s6894_s16, 1  ;;  %p6493_p7 = scmp.lt.s32.totalorder %s6841_s15, 2 }
  0x41   : > { %s6999_s9 = scalar_select %p25_p6, %s6837_s14, %s27_s23  }
  0x42   : > { %p6993_p5 = por %p8722_p3, %p34_p13  ;;  %p36_p9 = por %p35_p10, %p34_p13 }
  0x43   : > { %s158_s10 = sand.u32 1, %s6837_s14   ;;  %s5422_s25 = sshll.u32 %s6841_s15, 12 }
  0x44   : > { %s8723_s6 = scalar_select %p6993_p5, 1, 0 }
  0x45   : > { %s5265_s11 = sshll.u32 %s158_s10, 8  ;;  %s7006_s17 = scalar_lea.hbm %s8711_s0, %s5422_s25 }
  0x46   : > { %s162_s21 = scalar_lea.vmem [#allocation4], %s5265_s11  ;;  %p7010_p11 = pnand %p6493_p7, %p36_p9 }
  0x47   : > { %s169_s24 = sshll.u32 %s162_s21, 4  ;;  %s7014_s27 = scalar_lea.sflag [#allocation5], %s158_s10  ;;  %s7008_s24 = int_to_ptr.vmem [resolvable:$true] %s169_s24 }
  0x48   : > { %s6741_s28 = scalar_lea.hbm %s7006_s17, 4096  ;;  %p6743_p0 = pneg %p7010_p11 }
  0x49   : > { %p6742_p12 = scmp.ne.s32.totalorder %s7006_s17, %s6741_s28  ;;  %s6746_s30 = scalar_lea.hbm %s8711_s0, 8192 }
  0x4a   : > { %p6747_p13 = scmp.lt.u32.totalorder %s7006_s17, %s8711_s0  ;;  %p6748_p6 = scmp.lt.u32.totalorder %s6746_s30, %s6741_s28 }
  0x4b   : > { %p6744_p2 = pnand %p6743_p0, %p6742_p12  ;;  %p6750_p3 = scmp.lt.u32.totalorder %s6741_s28, %s7006_s17 }
  0x4c   : > { %p6749_p10 = por %p6748_p6, %p6747_p13 }
  0x4d   : > { %p6745_p1 = pneg %p6744_p2 }
  0x4e   : > { %p6751_p7 = por %p6750_p3, %p6749_p10 }
  0x50   : > { %p6752_p9 = pnand %p6751_p7, %p6745_p1 }
  0x52   : > { %6755 = shalt.err (!%p6752_p9)
}
  0x53   : > { %s6756_s10 = scalar_lea.vmem %s7008_s24, 4096  ;;  %s6847_s11 = smov [#allocation4]  }
  0x54   : > { %p6757_p12 = scmp.ne.s32.totalorder %s7008_s24, %s6756_s10  ;;  %s6761_s25 = sshll.u32 %s6847_s11, 4  ;;  %s6762_s25 = int_to_ptr.vmem [resolvable:$false] %s6761_s25 }
  0x55   : > { %s6763_s7 = scalar_lea.vmem %s6762_s25, 8192  ;;  %p6764_p4 = scmp.lt.s32.totalorder %s7008_s24, %s6762_s25 }
  0x56   : > { %p6759_p2 = pnand %p6757_p12, %p6743_p0  ;;  %p6765_p13 = scmp.lt.s32.totalorder %s6763_s7, %s6756_s10 }
  0x58   : > { %p6760_p5 = pneg %p6759_p2  ;;  %p6766_p6 = por %p6765_p13, %p6764_p4 }
  0x5a   : > { %p6767_p10 = pnand %p6766_p6, %p6760_p5 }
  0x5c   : > { %6770 = shalt.err (!%p6767_p10)
}
  0x5d   : > { %s6848_s8 = smov 128   ;;  %s6849_s21 = smov 8  }
  0x5e   : > { %6486 = dma.hbm_to_vmem [thread:$0]  (!%p7010_p11), %s7006_s17, 4096, %s7008_s24, %s7014_s27, %s6848_s8, %s6848_s8, %s6849_s21  }
  0x5f   : > { %181 = sbr.rel (%p6913_p8) target bundleno = 1356 (0x54c), region = 32 }
  0x66   : > { %s7045_s28 = sand.u32 1, %s6833_s13   ;;  %p8725_p4 = scmp.ne.s32.totalorder %s8718_s18, 0 }
  0x67   : > { %s5269_s22 = sshll.u32 %s7045_s28, 8  ;;  %s184_s29 = scalar_lea.sflag [#allocation5], %s7045_s28 }
  0x68   : > { %s7051_s30 = scalar_lea.vmem [#allocation4], %s5269_s22 }
  0x69   : > { %6816 = dma.done.wait (%p8725_p4), %s184_s29, 4096  }
  0x6a   : > { %6818 = vsyncadd (%p8725_p4), %s184_s29, 4294963200  ;;  %p8726_p5 = scmp.eq.s32.totalorder %s6894_s16, 0 }
  0x6c   : > { %6820 = dma.done.wait (%p8726_p5), [#allocation8], 18432   ;;  %p8727_p8 = pmov %p8726_p5 }
  0x6d   : > { %v6537_v0 = vld [vmem:[#allocation7 + $0x40] sm:$0xff]   ;;  %v6541_v4 = vld [vmem:[#allocation7 + $0x48] sm:$0xff]   ;;  %v6545_v8 = vld [vmem:[#allocation7 + $0x50] sm:$0xff]   ;;  %s8540_s18 = scalar_lea.vmem [#allocation10], %s5269_s22  ;;  %s5423_s20 = sshll.u32 %s6894_s16, 12 }
  0x6e   : > { %6822 = vsyncadd (%p8727_p8), [#allocation8], 4294948864  ;;  %v6538_v1 = vld [vmem:[#allocation7 + $0xc0] sm:$0xff]   ;;  %5424 = vmatprep.subr.bf16.mxu0 %v6537_v0  ;;  %v6542_v5 = vld [vmem:[#allocation7 + $0xc8] sm:$0xff]   ;;  %s5168_s17 = sshll.u32 %s8540_s18, 4  ;;  %s8647_s27 = scalar_lea.hbm %s8714_s3, %s5423_s20  ;;  %s8651_s17 = int_to_ptr.vmem [resolvable:$true] %s5168_s17 }
  0x6f   : > { %v6539_v2 = vld [vmem:[#allocation7] sm:$0xff]   ;;  %5536 = vmatprep.subr.bf16.mxu1 %v6538_v1  ;;  %v6543_v6 = vld [vmem:[#allocation7 + $0x8] sm:$0xff]   ;;  %v6546_v9 = vld [vmem:[#allocation7 + $0xd0] sm:$0xff]   ;;  %s5155_s16 = scalar_lea.sflag [#allocation6], %s7045_s28  ;;  %s6771_s23 = scalar_lea.vmem %s8651_s17, 4096 }
  0x70   : > { %v6540_v3 = vld [vmem:[#allocation7 + $0x80] sm:$0xff]   ;;  %5425 = vmatpush3.bf16.msra.mxu0 %v6539_v2  ;;  %v6544_v7 = vld [vmem:[#allocation7 + $0x88] sm:$0xff]   ;;  %v6547_v10 = vld [vmem:[#allocation7 + $0x10] sm:$0xff]   ;;  %p6772_p11 = scmp.ne.s32.totalorder %s8651_s17, %s6771_s23  ;;  %p8730_p0 = scmp.ne.s32.totalorder %s8723_s6, 0 }
  0x71   : > { %5537 = vmatpush3.bf16.msra.mxu1 %v6540_v3  ;;  %5426 = vmatprep.subr.bf16.mxu0 %v6541_v4  ;;  %v6548_v11 = vld [vmem:[#allocation7 + $0x90] sm:$0xff]   ;;  %v6549_v12 = vld [vmem:[#allocation7 + $0x58] sm:$0xff]   ;;  %v6553_v16 = vld [vmem:[#allocation7 + $0x60] sm:$0xff]   ;;  %s6850_s5 = smov [#allocation10]  }
  0x72   : > { %5538 = vmatprep.subr.bf16.mxu1 %v6542_v5  ;;  %v6550_v13 = vld [vmem:[#allocation7 + $0xd8] sm:$0xff]   ;;  %v6554_v17 = vld [vmem:[#allocation7 + $0xe0] sm:$0xff]   ;;  %v6557_v20 = vld [vmem:[#allocation7 + $0x68] sm:$0xff]   ;;  %p6773_p1 = pnand %p6772_p11, %p8730_p0  ;;  %s6775_s10 = sshll.u32 %s6850_s5, 4  ;;  %s6776_s10 = int_to_ptr.vmem [resolvable:$false] %s6775_s10 }
  0x73   : > { %v6551_v14 = vld [vmem:[#allocation7 + $0x18] sm:$0xff]   ;;  %v6555_v18 = vld [vmem:[#allocation7 + $0x20] sm:$0xff]   ;;  %v6558_v21 = vld [vmem:[#allocation7 + $0xe8] sm:$0xff]   ;;  %s6777_s11 = scalar_lea.vmem %s6776_s10, 8192  ;;  %p6778_p7 = scmp.lt.s32.totalorder %s8651_s17, %s6776_s10 }
  0x74   : > { %5427 = vmatpush3.bf16.msra.mxu0 %v6543_v6  ;;  %v6552_v15 = vld [vmem:[#allocation7 + $0x98] sm:$0xff]   ;;  %v6556_v19 = vld [vmem:[#allocation7 + $0xa0] sm:$0xff]   ;;  %v6559_v22 = vld [vmem:[#allocation7 + $0x28] sm:$0xff]   ;;  %p6774_p3 = pneg %p6773_p1  ;;  %p6779_p9 = scmp.lt.s32.totalorder %s6777_s11, %s6771_s23 }
  0x75   : > { %5539 = vmatpush3.bf16.msra.mxu1 %v6544_v7  ;;  %5428 = vmatprep.subr.bf16.mxu0 %v6545_v8  ;;  %v6560_v23 = vld [vmem:[#allocation7 + $0xa8] sm:$0xff]   ;;  %v6561_v24 = vld [vmem:[#allocation7 + $0x70] sm:$0xff]   ;;  %v6565_v28 = vld [vmem:[#allocation7 + $0x78] sm:$0xff]  }
  0x76   : > { %5540 = vmatprep.subr.bf16.mxu1 %v6546_v9  ;;  %v6562_v25 = vld [vmem:[#allocation7 + $0xf0] sm:$0xff]   ;;  %v6566_v29 = vld [vmem:[#allocation7 + $0xf8] sm:$0xff]   ;;  %v219_v34 = vld [vmem:[%s7051_s30] sm:$0xff]  ;;  %p6780_p12 = por %p6779_p9, %p6778_p7 }
  0x77   : > { %v6563_v26 = vld [vmem:[#allocation7 + $0x30] sm:$0xff]   ;;  %v6567_v30 = vld [vmem:[#allocation7 + $0x38] sm:$0xff]   ;;  %v220_v36 = vld [vmem:[%s7051_s30 + $0x8] sm:$0xff]  ;;  %252 = vst [vmem:[#allocation2 + $0x19] sm:$0xff] %v219_v34 }
  0x78   : > { %5429 = vmatpush3.bf16.msra.mxu0 %v6547_v10  ;;  %v6564_v27 = vld [vmem:[#allocation7 + $0xb0] sm:$0xff]   ;;  %v6568_v31 = vld [vmem:[#allocation7 + $0xb8] sm:$0xff]   ;;  %253 = vst [vmem:[#allocation2 + $0x21] sm:$0xff] %v220_v36  ;;  %v6569_v37 = vld [vmem:[#allocation7 + $0x140] sm:$0xff]   ;;  %v7092_v1 = vpack.c.bf16 %v220_v36, %v219_v34  ;;  %p6781_p2 = pnand %p6780_p12, %p6774_p3 }
  0x79   : > { %5541 = vmatpush3.bf16.msra.mxu1 %v6548_v11  ;;  %5430 = vmatprep.subr.bf16.mxu0 %v6549_v12  ;;  %v221_v32 = vld [vmem:[%s7051_s30 + $0x10] sm:$0xff]  ;;  %v222_v33 = vld [vmem:[%s7051_s30 + $0x18] sm:$0xff]  ;;  %v7069_v38 = vld [vmem:[%s7051_s30 + $0x20] sm:$0xff] }
  0x7a   : > { %5542 = vmatprep.subr.bf16.mxu1 %v6550_v13  ;;  %254 = vst [vmem:[#allocation2 + $0x31] sm:$0xff] %v221_v32  ;;  %255 = vst [vmem:[#allocation2 + $0x39] sm:$0xff] %v222_v33  ;;  %v7064_v35 = vpack.c.bf16 %v222_v33, %v221_v32  ;;  %v7072_v39 = vld [vmem:[%s7051_s30 + $0x28] sm:$0xff]  ;;  %v7077_v40 = vld [vmem:[%s7051_s30 + $0x30] sm:$0xff] }
  0x7b   : > { %284 = vst [vmem:[#allocation2 + $0x1] sm:$0xff] %v221_v32  ;;  %285 = vst [vmem:[#allocation2 + $0x9] sm:$0xff] %v222_v33  ;;  %v7080_v41 = vld [vmem:[%s7051_s30 + $0x38] sm:$0xff]  ;;  %v7083_v42 = vld [vmem:[%s7051_s30 + $0x40] sm:$0xff] }
  0x7c   : > { %5431 = vmatpush3.bf16.msra.mxu0 %v6551_v14  ;;  %1690 = vmatprep.mubr.bf16.mxu0 %v7064_v35  ;;  %256 = vst [vmem:[#allocation2 + $0x49] sm:$0xff] %v7069_v38  ;;  %257 = vst [vmem:[#allocation2 + $0x51] sm:$0xff] %v7072_v39  ;;  %v7088_v43 = vld [vmem:[%s7051_s30 + $0x48] sm:$0xff]  ;;  %v6570_v54 = vld [vmem:[#allocation7 + $0x100] sm:$0xff]  }
  0x7d   : > { %5543 = vmatpush3.bf16.msra.mxu1 %v6552_v15  ;;  %5432 = vmatprep.subr.bf16.mxu0 %v6553_v16  ;;  %258 = vst [vmem:[#allocation2 + $0x61] sm:$0xff] %v7077_v40  ;;  %259 = vst [vmem:[#allocation2 + $0x69] sm:$0xff] %v7080_v41  ;;  %v7095_v2 = vld [vmem:[%s7051_s30 + $0x50] sm:$0xff]  ;;  %v6571_v5 = vld [vmem:[#allocation7 + $0x148] sm:$0xff]  }
  0x7e   : > { %5544 = vmatprep.subr.bf16.mxu1 %v6554_v17  ;;  %260 = vst [vmem:[#allocation2 + $0x79] sm:$0xff] %v7083_v42  ;;  %v290_v44 = vld [vmem:[#allocation2 + $0x1a] sm:$0x1]  ;;  %261 = vst [vmem:[#allocation2 + $0x81] sm:$0xff] %v7088_v43  ;;  %v7098_v6 = vld [vmem:[%s7051_s30 + $0x58] sm:$0xff] }
  0x7f   : > { %308 = vst [vmem:[#allocation2 + $0x18] sm:$0x1] %v290_v44  ;;  %v326_v48 = vld [vmem:[#allocation2 + $0x27] sm:$0x1]  ;;  %262 = vst [vmem:[#allocation2 + $0x91] sm:$0xff] %v7095_v2  ;;  %v491_v8 = vld [vmem:[#allocation2 + $0x1a] sm:$0xff]  ;;  %v7141_v44 = vpack.c.bf16 %v7072_v39, %v7069_v38 }
  0x80   : > { %5433 = vmatpush3.bf16.msra.mxu0 %v6555_v18  ;;  %344 = vst [vmem:[#allocation2 + $0x29] sm:$0x1] %v326_v48  ;;  %v554_v53 = vld [vmem:[#allocation2 + $0x20] sm:$0xff]  ;;  %v6572_v9 = vld [vmem:[#allocation7 + $0x108] sm:$0xff]   ;;  %263 = vst [vmem:[#allocation2 + $0x99] sm:$0xff] %v7098_v6 }
  0x81   : > { %5545 = vmatpush3.bf16.msra.mxu1 %v6556_v19  ;;  %5434 = vmatprep.subr.bf16.mxu0 %v6557_v20  ;;  %v291_v47 = vld [vmem:[#allocation2 + $0x32] sm:$0x1]  ;;  %v327_v50 = vld [vmem:[#allocation2 + $0x3f] sm:$0x1]  ;;  %v6573_v12 = vld [vmem:[#allocation7 + $0x150] sm:$0xff]  }
  0x82   : > { %5546 = vmatprep.subr.bf16.mxu1 %v6558_v21  ;;  %v289_v45 = vld [vmem:[#allocation2 + $0x2] sm:$0x1]  ;;  %v325_v46 = vld [vmem:[#allocation2 + $0xf] sm:$0x1]  ;;  %309 = vst [vmem:[#allocation2 + $0x30] sm:$0x1] %v291_v47 }
  0x83   : > { %307 = vst [vmem:[#allocation2] sm:$0x1] %v289_v45  ;;  %343 = vst [vmem:[#allocation2 + $0x11] sm:$0x1] %v325_v46  ;;  %v292_v49 = vld [vmem:[#allocation2 + $0x4a] sm:$0x1] }
  0x84   : > { %5435 = vmatpush3.bf16.msra.mxu0 %v6559_v22  ;;  %310 = vst [vmem:[#allocation2 + $0x48] sm:$0x1] %v292_v49  ;;  %v328_v51 = vld [vmem:[#allocation2 + $0x57] sm:$0x1]  ;;  %v362_v52 = vld [vmem:[#allocation2 + $0x8] sm:$0xff]  ;;  %v556_v58 = vld [vmem:[#allocation2 + $0x38] sm:$0xff] }
  0x85   : > { %5547 = vmatpush3.bf16.msra.mxu1 %v6560_v23  ;;  %5436 = vmatprep.subr.bf16.mxu0 %v6561_v24  ;;  %345 = vst [vmem:[#allocation2 + $0x41] sm:$0x1] %v327_v50  ;;  %346 = vst [vmem:[#allocation2 + $0x59] sm:$0x1] %v328_v51  ;;  %v293_v55 = vld [vmem:[#allocation2 + $0x62] sm:$0x1] }
  0x86   : > { %5548 = vmatprep.subr.bf16.mxu1 %v6562_v25  ;;  %v294_v56 = vld [vmem:[#allocation2 + $0x7a] sm:$0x1]  ;;  %v489_v57 = vld [vmem:[#allocation2 + $0x2] sm:$0xff]  ;;  %311 = vst [vmem:[#allocation2 + $0x60] sm:$0x1] %v293_v55  ;;  %v7105_v13 = vld [vmem:[%s7051_s30 + $0x60] sm:$0xff] }
  0x87   : > { %312 = vst [vmem:[#allocation2 + $0x78] sm:$0x1] %v294_v56  ;;  %v329_v59 = vld [vmem:[#allocation2 + $0x6f] sm:$0x1]  ;;  %v553_v60 = vld [vmem:[#allocation2 + $0x18] sm:$0xff]  ;;  %v492_v11 = vld [vmem:[#allocation2 + $0x22] sm:$0xff] }
  0x88   : > { %5437 = vmatpush3.bf16.msra.mxu0 %v6563_v26  ;;  %347 = vst [vmem:[#allocation2 + $0x71] sm:$0x1] %v329_v59  ;;  %v585_v62 = vpack.c.bf16 %v554_v53, %v553_v60  ;;  %v330_v10 = vld [vmem:[#allocation2 + $0x87] sm:$0x1]  ;;  %v7110_v14 = vld [vmem:[%s7051_s30 + $0x68] sm:$0xff]  ;;  %264 = vst [vmem:[#allocation2 + $0xa9] sm:$0xff] %v7105_v13  ;;  %v7114_v17 = vpack.c.bf16 %v492_v11, %v491_v8  ;;  %v7169_v60 = vpack.c.bf16 %v7080_v41, %v7077_v40 }
  0x89   : > { %5549 = vmatpush3.bf16.msra.mxu1 %v6564_v27  ;;  %5438 = vmatprep.subr.bf16.mxu0 %v6565_v28  ;;  %v555_v4 = vld [vmem:[#allocation2 + $0x30] sm:$0xff]  ;;  %348 = vst [vmem:[#allocation2 + $0x89] sm:$0x1] %v330_v10  ;;  %265 = vst [vmem:[#allocation2 + $0xb1] sm:$0xff] %v7110_v14  ;;  %v6574_v18 = vld [vmem:[#allocation7 + $0x110] sm:$0xff]  }
  0x8a   : > { %5550 = vmatprep.subr.bf16.mxu1 %v6566_v29  ;;  %v361_v61 = vld [vmem:[#allocation2] sm:$0xff]  ;;  %v490_v0 = vld [vmem:[#allocation2 + $0xa] sm:$0xff]  ;;  %1851 = vmatprep.mubr.bf16.mxu1 %v585_v62  ;;  %v7101_v7 = vpack.c.bf16 %v556_v58, %v555_v4  ;;  %v295_v22 = vld [vmem:[#allocation2 + $0x92] sm:$0x1] }
  0x8b   : > { %v393_v63 = vpack.c.bf16 %v362_v52, %v361_v61  ;;  %v521_v3 = vpack.c.bf16 %v490_v0, %v489_v57  ;;  %v557_v15 = vld [vmem:[#allocation2 + $0x48] sm:$0xff]  ;;  %v558_v16 = vld [vmem:[#allocation2 + $0x50] sm:$0xff]  ;;  %v7117_v19 = vld [vmem:[%s7051_s30 + $0x70] sm:$0xff]  ;;  %313 = vst [vmem:[#allocation2 + $0x90] sm:$0x1] %v295_v22 }
  0x8c   : > { %5439 = vmatpush3.bf16.msra.mxu0 %v6567_v30  ;;  %v7120_v20 = vld [vmem:[%s7051_s30 + $0x78] sm:$0xff]  ;;  %v7122_v21 = vpack.c.bf16 %v558_v16, %v557_v15  ;;  %266 = vst [vmem:[#allocation2 + $0xc1] sm:$0xff] %v7117_v19  ;;  %v7127_v23 = vld [vmem:[%s7051_s30 + $0x80] sm:$0xff]  ;;  %v7130_v24 = vld [vmem:[%s7051_s30 + $0x88] sm:$0xff] }
  0x8d   : > { %5551 = vmatpush3.bf16.msra.mxu1 %v6568_v31  ;;  %5648 = vmatprep.subr.bf16.mxu0 %v6569_v37  ;;  %267 = vst [vmem:[#allocation2 + $0xc9] sm:$0xff] %v7120_v20  ;;  %v331_v25 = vld [vmem:[#allocation2 + $0x9f] sm:$0x1]  ;;  %v6575_v26 = vld [vmem:[#allocation7 + $0x158] sm:$0xff]   ;;  %268 = vst [vmem:[#allocation2 + $0xd9] sm:$0xff] %v7127_v23 }
  0x8e   : > { %269 = vst [vmem:[#allocation2 + $0xe1] sm:$0xff] %v7130_v24  ;;  %v493_v27 = vld [vmem:[#allocation2 + $0x32] sm:$0xff]  ;;  %v494_v28 = vld [vmem:[#allocation2 + $0x3a] sm:$0xff]  ;;  %349 = vst [vmem:[#allocation2 + $0xa1] sm:$0x1] %v331_v25 }
  0x8f   : > { %1691 = vmatmul.mubr.bf16.vlgmr.msra.gmra.mrb[0].mxu0 %v393_v63  ;;  %v559_v29 = vld [vmem:[#allocation2 + $0x60] sm:$0xff]  ;;  %v560_v30 = vld [vmem:[#allocation2 + $0x68] sm:$0xff]  ;;  %v6577_v34 = vld [vmem:[#allocation7 + $0x160] sm:$0xff]   ;;  %v7137_v37 = vpack.c.bf16 %v494_v28, %v493_v27 }
  0x90   : > { %1852 = vmatmul.mubr.bf16.vlgmr.msra.gmra.mrb[0].mxu1 %v521_v3  ;;  %5649 = vmatpush3.bf16.msra.mxu0 %v6570_v54  ;;  %v296_v31 = vld [vmem:[#allocation2 + $0xaa] sm:$0x1]  ;;  %v332_v33 = vld [vmem:[#allocation2 + $0xb7] sm:$0x1]  ;;  %v7143_v46 = vpack.c.bf16 %v560_v30, %v559_v29  ;;  %v7147_v39 = vld [vmem:[%s7051_s30 + $0x90] sm:$0xff] }
  0x91   : > { %1698 = vmatprep.mubr.bf16.mxu0 %v7092_v1  ;;  %1859 = vmatprep.mubr.bf16.mxu1 %v7101_v7  ;;  %314 = vst [vmem:[#allocation2 + $0xa8] sm:$0x1] %v296_v31  ;;  %v6576_v32 = vld [vmem:[#allocation7 + $0x118] sm:$0xff]   ;;  %350 = vst [vmem:[#allocation2 + $0xb9] sm:$0x1] %v332_v33  ;;  %v6578_v36 = vld [vmem:[#allocation7 + $0x1c0] sm:$0xff]  }
  0x92   : > { %5650 = vmatprep.subr.bf16.mxu0 %v6571_v5  ;;  %5760 = vmatprep.subr.bf16.mxu1 %v6578_v36  ;;  %v6579_v48 = vld [vmem:[#allocation7 + $0x120] sm:$0xff]   ;;  %v7150_v50 = vld [vmem:[%s7051_s30 + $0x98] sm:$0xff]  ;;  %v562_v52 = vld [vmem:[#allocation2 + $0x80] sm:$0xff]  ;;  %270 = vst [vmem:[#allocation2 + $0xf1] sm:$0xff] %v7147_v39 }
  0x93   : > { %v495_v49 = vld [vmem:[#allocation2 + $0x4a] sm:$0xff]  ;;  %v496_v51 = vld [vmem:[#allocation2 + $0x52] sm:$0xff]  ;;  %271 = vst [vmem:[#allocation2 + $0xf9] sm:$0xff] %v7150_v50  ;;  %v497_v4 = vld [vmem:[#allocation2 + $0x62] sm:$0xff] }
  0x94   : > { %5651 = vmatpush3.bf16.msra.mxu0 %v6572_v9  ;;  %v333_v45 = vld [vmem:[#allocation2 + $0xcf] sm:$0x1]  ;;  %v298_v47 = vld [vmem:[#allocation2 + $0xda] sm:$0x1]  ;;  %v6580_v38 = vld [vmem:[#allocation7 + $0x180] sm:$0xff]   ;;  %v7165_v59 = vpack.c.bf16 %v496_v51, %v495_v49  ;;  %v7209_v49 = vpack.c.bf16 %v7098_v6, %v7095_v2 }
  0x95   : > { %5652 = vmatprep.subr.bf16.mxu0 %v6573_v12  ;;  %351 = vst [vmem:[#allocation2 + $0xd1] sm:$0x1] %v333_v45  ;;  %316 = vst [vmem:[#allocation2 + $0xd8] sm:$0x1] %v298_v47  ;;  %v334_v53 = vld [vmem:[#allocation2 + $0xe7] sm:$0x1]  ;;  %5761 = vmatpush3.bf16.msra.mxu1 %v6580_v38 }
  0x96   : > { %v561_v54 = vld [vmem:[#allocation2 + $0x78] sm:$0xff]  ;;  %352 = vst [vmem:[#allocation2 + $0xe9] sm:$0x1] %v334_v53  ;;  %v7158_v55 = vld [vmem:[%s7051_s30 + $0xa0] sm:$0xff]  ;;  %v7177_v40 = vld [vmem:[%s7051_s30 + $0xb0] sm:$0xff] }
  0x97   : > { %1699 = vmatmul.mubr.bf16.gmra.mrb[4].mxu0 %v585_v62  ;;  %v7161_v56 = vld [vmem:[%s7051_s30 + $0xa8] sm:$0xff]  ;;  %272 = vst [vmem:[#allocation2 + $0x109] sm:$0xff] %v7158_v55  ;;  %v7171_v61 = vpack.c.bf16 %v562_v52, %v561_v54  ;;  %v498_v5 = vld [vmem:[#allocation2 + $0x6a] sm:$0xff]  ;;  %274 = vst [vmem:[#allocation2 + $0x121] sm:$0xff] %v7177_v40 }
  0x98   : > { %1860 = vmatmul.mubr.bf16.gmra.mrb[4].mxu1 %v7114_v17  ;;  %1706 = vmatprep.mubr.bf16.mxu0 %v7064_v35  ;;  %v297_v35 = vld [vmem:[#allocation2 + $0xc2] sm:$0x1]  ;;  %273 = vst [vmem:[#allocation2 + $0x111] sm:$0xff] %v7161_v56  ;;  %v6581_v57 = vld [vmem:[#allocation7 + $0x168] sm:$0xff]   ;;  %v7181_v9 = vld [vmem:[%s7051_s30 + $0xb8] sm:$0xff]  ;;  %v7187_v16 = vpack.c.bf16 %v498_v5, %v497_v4 }
  0x99   : > { %1867 = vmatprep.mubr.bf16.mxu1 %v7122_v21  ;;  %5653 = vmatpush3.bf16.msra.mxu0 %v6574_v18  ;;  %315 = vst [vmem:[#allocation2 + $0xc0] sm:$0x1] %v297_v35  ;;  %v6582_v58 = vld [vmem:[#allocation7 + $0x1c8] sm:$0xff]   ;;  %v299_v0 = vld [vmem:[#allocation2 + $0xf2] sm:$0x1]  ;;  %275 = vst [vmem:[#allocation2 + $0x129] sm:$0xff] %v7181_v9  ;;  %v7191_v18 = vpack.c.bf16 %v7088_v43, %v7083_v42 }
  0x9a   : > { %5654 = vmatprep.subr.bf16.mxu0 %v6575_v26  ;;  %5762 = vmatprep.subr.bf16.mxu1 %v6582_v58  ;;  %v6583_v62 = vld [vmem:[#allocation7 + $0x128] sm:$0xff]   ;;  %317 = vst [vmem:[#allocation2 + $0xf0] sm:$0x1] %v299_v0  ;;  %v563_v10 = vld [vmem:[#allocation2 + $0x90] sm:$0xff]  ;;  %v6585_v22 = vld [vmem:[#allocation7 + $0x170] sm:$0xff]  }
  0x9b   : > { %v6584_v63 = vld [vmem:[#allocation7 + $0x188] sm:$0xff]   ;;  %v243_v12 = vld [vmem:[%s7051_s30 + $0xc0] sm:$0xff]  ;;  %v6586_v27 = vld [vmem:[#allocation7 + $0x1d0] sm:$0xff]  }
  0x9c   : > { %v335_v3 = vld [vmem:[#allocation2 + $0xff] sm:$0x1]  ;;  %5763 = vmatpush3.bf16.msra.mxu1 %v6584_v63  ;;  %276 = vst [vmem:[#allocation2 + $0x139] sm:$0xff] %v243_v12  ;;  %v6587_v28 = vld [vmem:[#allocation7 + $0x130] sm:$0xff]   ;;  %v246_v43 = vld [vmem:[%s7051_s30 + $0xd8] sm:$0xff] }
  0x9d   : > { %5655 = vmatpush3.bf16.msra.mxu0 %v6576_v32  ;;  %353 = vst [vmem:[#allocation2 + $0x101] sm:$0x1] %v335_v3  ;;  %v564_v41 = vld [vmem:[#allocation2 + $0x98] sm:$0xff]  ;;  %5764 = vmatprep.subr.bf16.mxu1 %v6586_v27  ;;  %v6588_v29 = vld [vmem:[#allocation7 + $0x190] sm:$0xff]   ;;  %279 = vst [vmem:[#allocation2 + $0x159] sm:$0xff] %v246_v43 }
  0x9e   : > { %5656 = vmatprep.subr.bf16.mxu0 %v6577_v34  ;;  %v300_v8 = vld [vmem:[#allocation2 + $0x10a] sm:$0x1]  ;;  %v244_v15 = vld [vmem:[%s7051_s30 + $0xc8] sm:$0xff]  ;;  %v7195_v26 = vpack.c.bf16 %v564_v41, %v563_v10  ;;  %v301_v30 = vld [vmem:[#allocation2 + $0x122] sm:$0x1]  ;;  %v7225_v41 = vpack.c.bf16 %v7110_v14, %v7105_v13 }
  0x9f   : > { %1707 = vmatmul.mubr.bf16.gmra.mrb[8].mxu0 %v7101_v7  ;;  %318 = vst [vmem:[#allocation2 + $0x108] sm:$0x1] %v300_v8  ;;  %v336_v11 = vld [vmem:[#allocation2 + $0x117] sm:$0x1]  ;;  %277 = vst [vmem:[#allocation2 + $0x141] sm:$0xff] %v244_v15  ;;  %v7193_v25 = vpack.c.bf16 %v244_v15, %v243_v12  ;;  %v245_v42 = vld [vmem:[%s7051_s30 + $0xd0] sm:$0xff] }
  0xa0   : > { %1868 = vmatmul.mubr.bf16.gmra.mrb[8].mxu1 %v7137_v37  ;;  %1714 = vmatprep.mubr.bf16.mxu0 %v7141_v44  ;;  %354 = vst [vmem:[#allocation2 + $0x119] sm:$0x1] %v336_v11  ;;  %v499_v31 = vld [vmem:[#allocation2 + $0x7a] sm:$0xff]  ;;  %v500_v32 = vld [vmem:[#allocation2 + $0x82] sm:$0xff]  ;;  %319 = vst [vmem:[#allocation2 + $0x120] sm:$0x1] %v301_v30  ;;  %v7203_v34 = vpack.c.bf16 %v246_v43, %v245_v42 }
  0xa1   : > { %1875 = vmatprep.mubr.bf16.mxu1 %v7143_v46  ;;  %5657 = vmatpush3.bf16.msra.mxu0 %v6579_v48  ;;  %v337_v33 = vld [vmem:[#allocation2 + $0x12f] sm:$0x1]  ;;  %278 = vst [vmem:[#allocation2 + $0x151] sm:$0xff] %v245_v42  ;;  %v566_v35 = vld [vmem:[#allocation2 + $0xb0] sm:$0xff]  ;;  %v7205_v48 = vpack.c.bf16 %v500_v32, %v499_v31  ;;  %v248_v53 = vld [vmem:[%s7051_s30 + $0xe8] sm:$0xff] }
  0xa2   : > { %5658 = vmatprep.subr.bf16.mxu0 %v6581_v57  ;;  %v565_v36 = vld [vmem:[#allocation2 + $0xa8] sm:$0xff]  ;;  %355 = vst [vmem:[#allocation2 + $0x131] sm:$0x1] %v337_v33  ;;  %5765 = vmatpush3.bf16.msra.mxu1 %v6588_v29  ;;  %v247_v52 = vld [vmem:[%s7051_s30 + $0xe0] sm:$0xff]  ;;  %281 = vst [vmem:[#allocation2 + $0x171] sm:$0xff] %v248_v53  ;;  %v7245_v33 = vpack.c.bf16 %v7120_v20, %v7117_v19 }
  0xa3   : > { %v302_v45 = vld [vmem:[#allocation2 + $0x13a] sm:$0x1]  ;;  %v6589_v38 = vld [vmem:[#allocation7 + $0x1d8] sm:$0xff]   ;;  %v7211_v51 = vpack.c.bf16 %v566_v35, %v565_v36  ;;  %280 = vst [vmem:[#allocation2 + $0x169] sm:$0xff] %v247_v52  ;;  %287 = vst [vmem:[#allocation2 + $0x199] sm:$0xff] %v247_v52  ;;  %v7215_v57 = vpack.c.bf16 %v248_v53, %v247_v52 }
  0xa4   : > { %320 = vst [vmem:[#allocation2 + $0x138] sm:$0x1] %v302_v45  ;;  %5766 = vmatprep.subr.bf16.mxu1 %v6589_v38  ;;  %288 = vst [vmem:[#allocation2 + $0x1a1] sm:$0xff] %v248_v53  ;;  %v6590_v54 = vld [vmem:[#allocation7 + $0x198] sm:$0xff]   ;;  %v501_v2 = vld [vmem:[#allocation2 + $0x92] sm:$0xff] }
  0xa5   : > { %5659 = vmatpush3.bf16.msra.mxu0 %v6583_v62  ;;  %v6591_v58 = vld [vmem:[#allocation7 + $0x178] sm:$0xff]   ;;  %v502_v62 = vld [vmem:[#allocation2 + $0x9a] sm:$0xff]  ;;  %v6593_v8 = vld [vmem:[#allocation7 + $0x1e0] sm:$0xff]  }
  0xa6   : > { %5660 = vmatprep.subr.bf16.mxu0 %v6585_v22  ;;  %v338_v47 = vld [vmem:[#allocation2 + $0x147] sm:$0x1]  ;;  %v568_v63 = vld [vmem:[#allocation2 + $0xc8] sm:$0xff]  ;;  %5767 = vmatpush3.bf16.msra.mxu1 %v6590_v54  ;;  %v339_v0 = vld [vmem:[#allocation2 + $0x15f] sm:$0x1]  ;;  %v7221_v5 = vpack.c.bf16 %v502_v62, %v501_v2 }
  0xa7   : > { %1715 = vmatmul.mubr.bf16.gmra.mrb[12].mxu0 %v7122_v21  ;;  %356 = vst [vmem:[#allocation2 + $0x149] sm:$0x1] %v338_v47  ;;  %v567_v3 = vld [vmem:[#allocation2 + $0xc0] sm:$0xff]  ;;  %357 = vst [vmem:[#allocation2 + $0x161] sm:$0x1] %v339_v0  ;;  %v6592_v4 = vld [vmem:[#allocation7 + $0x138] sm:$0xff]   ;;  %5768 = vmatprep.subr.bf16.mxu1 %v6593_v8 }
  0xa8   : > { %1876 = vmatmul.mubr.bf16.gmra.mrb[12].mxu1 %v7165_v59  ;;  %1722 = vmatprep.mubr.bf16.mxu0 %v7169_v60  ;;  %v303_v6 = vld [vmem:[#allocation2 + $0x152] sm:$0x1]  ;;  %v7227_v10 = vpack.c.bf16 %v568_v63, %v567_v3  ;;  %v6595_v15 = vld [vmem:[#allocation7 + $0x1e8] sm:$0xff]   ;;  %v503_v22 = vld [vmem:[#allocation2 + $0xaa] sm:$0xff] }
  0xa9   : > { %1883 = vmatprep.mubr.bf16.mxu1 %v7171_v61  ;;  %5661 = vmatpush3.bf16.msra.mxu0 %v6587_v28  ;;  %321 = vst [vmem:[#allocation2 + $0x150] sm:$0x1] %v303_v6  ;;  %v6594_v12 = vld [vmem:[#allocation7 + $0x1a0] sm:$0xff]   ;;  %v7231_v27 = vld [vmem:[%s7051_s30 + $0xf0] sm:$0xff]  ;;  %v7234_v28 = vld [vmem:[%s7051_s30 + $0xf8] sm:$0xff] }
  0xaa   : > { %5662 = vmatprep.subr.bf16.mxu0 %v6591_v58  ;;  %v304_v11 = vld [vmem:[#allocation2 + $0x16a] sm:$0x1]  ;;  %5769 = vmatpush3.bf16.msra.mxu1 %v6594_v12  ;;  %v570_v13 = vld [vmem:[#allocation2 + $0xe0] sm:$0xff]  ;;  %282 = vst [vmem:[#allocation2 + $0x181] sm:$0xff] %v7231_v27  ;;  %283 = vst [vmem:[#allocation2 + $0x189] sm:$0xff] %v7234_v28  ;;  %v7260_v58 = vpack.c.bf16 %v7130_v24, %v7127_v23  ;;  %v7272_v23 = vpack.c.bf16 %v7150_v50, %v7147_v39 }
  0xab   : > { %322 = vst [vmem:[#allocation2 + $0x168] sm:$0x1] %v304_v11  ;;  %v6596_v14 = vld [vmem:[#allocation7 + $0x1a8] sm:$0xff]   ;;  %5770 = vmatprep.subr.bf16.mxu1 %v6595_v15  ;;  %v340_v42 = vld [vmem:[#allocation2 + $0x177] sm:$0x1]  ;;  %v6597_v43 = vld [vmem:[#allocation7 + $0x1f0] sm:$0xff]   ;;  %v7284_v39 = vpack.c.bf16 %v7161_v56, %v7158_v55  ;;  %v7296_v55 = vpack.c.bf16 %v7181_v9, %v7177_v40 }
  0xac   : > { %v504_v29 = vld [vmem:[#allocation2 + $0xb2] sm:$0xff]  ;;  %358 = vst [vmem:[#allocation2 + $0x179] sm:$0x1] %v340_v42  ;;  %v6598_v31 = vld [vmem:[#allocation7 + $0x1b0] sm:$0xff]   ;;  %v6599_v35 = vld [vmem:[#allocation7 + $0x1f8] sm:$0xff]  }
  0xad   : > { %5663 = vmatpush3.bf16.msra.mxu0 %v6592_v4  ;;  %v569_v30 = vld [vmem:[#allocation2 + $0xd8] sm:$0xff]  ;;  %v7241_v32 = vpack.c.bf16 %v504_v29, %v503_v22  ;;  %v6600_v47 = vld [vmem:[#allocation7 + $0x1b8] sm:$0xff]   ;;  %v7250_v38 = vld [vmem:[#allocation7 + $0x200] sm:$0xff]  }
  0xae   : > { %5771 = vmatpush3.bf16.msra.mxu1 %v6596_v14  ;;  %v7247_v36 = vpack.c.bf16 %v570_v13, %v569_v30  ;;  %v505_v52 = vld [vmem:[#allocation2 + $0xc2] sm:$0xff]  ;;  %v506_v19 = vld [vmem:[#allocation2 + $0xca] sm:$0xff]  ;;  %v572_v20 = vld [vmem:[#allocation2 + $0xf8] sm:$0xff]  ;;  %6368 = vmatprep.subr.bf16.mxu0 %v7250_v38 }
  0xaf   : > { %1723 = vmatmul.mubr.bf16.gmra.mrb[16].mxu0 %v7143_v46  ;;  %5772 = vmatprep.subr.bf16.mxu1 %v6597_v43  ;;  %v571_v53 = vld [vmem:[#allocation2 + $0xf0] sm:$0xff]  ;;  %v7256_v54 = vpack.c.bf16 %v506_v19, %v505_v52  ;;  %v507_v6 = vld [vmem:[#allocation2 + $0xda] sm:$0xff]  ;;  %v508_v62 = vld [vmem:[#allocation2 + $0xe2] sm:$0xff] }
  0xb0   : > { %1884 = vmatmul.mubr.bf16.gmra.mrb[16].mxu1 %v7187_v16  ;;  %1730 = vmatprep.mubr.bf16.mxu0 %v7191_v18  ;;  %v7262_v2 = vpack.c.bf16 %v572_v20, %v571_v53  ;;  %v573_v63 = vld [vmem:[#allocation2 + $0x108] sm:$0xff]  ;;  %v574_v0 = vld [vmem:[#allocation2 + $0x110] sm:$0xff]  ;;  %v7268_v3 = vpack.c.bf16 %v508_v62, %v507_v6  ;;  %v510_v8 = vld [vmem:[#allocation2 + $0xfa] sm:$0xff] }
  0xb1   : > { %1891 = vmatprep.mubr.bf16.mxu1 %v7195_v26  ;;  %v305_v45 = vld [vmem:[#allocation2 + $0x182] sm:$0x1]  ;;  %v7274_v24 = vpack.c.bf16 %v574_v0, %v573_v63  ;;  %v509_v4 = vld [vmem:[#allocation2 + $0xf2] sm:$0xff]  ;;  %v576_v12 = vld [vmem:[#allocation2 + $0x128] sm:$0xff] }
  0xb2   : > { %5773 = vmatpush3.bf16.msra.mxu1 %v6598_v31  ;;  %323 = vst [vmem:[#allocation2 + $0x180] sm:$0x1] %v305_v45  ;;  %v575_v11 = vld [vmem:[#allocation2 + $0x120] sm:$0xff]  ;;  %v7280_v15 = vpack.c.bf16 %v510_v8, %v509_v4  ;;  %v511_v22 = vld [vmem:[#allocation2 + $0x10a] sm:$0xff]  ;;  %v512_v13 = vld [vmem:[#allocation2 + $0x112] sm:$0xff] }
  0xb3   : > { %5774 = vmatprep.subr.bf16.mxu1 %v6599_v35  ;;  %v7286_v50 = vpack.c.bf16 %v576_v12, %v575_v11  ;;  %v577_v14 = vld [vmem:[#allocation2 + $0x138] sm:$0xff]  ;;  %v578_v29 = vld [vmem:[#allocation2 + $0x140] sm:$0xff]  ;;  %v7292_v30 = vpack.c.bf16 %v512_v13, %v511_v22  ;;  %v514_v43 = vld [vmem:[#allocation2 + $0x12a] sm:$0xff]  ;;  %v7327_v12 = vpack.c.bf16 %v7234_v28, %v7231_v27 }
  0xb4   : > { %v7298_v56 = vpack.c.bf16 %v578_v29, %v577_v14  ;;  %v513_v42 = vld [vmem:[#allocation2 + $0x122] sm:$0xff]  ;;  %v579_v31 = vld [vmem:[#allocation2 + $0x150] sm:$0xff]  ;;  %v580_v35 = vld [vmem:[#allocation2 + $0x158] sm:$0xff] }
  0xb5   : > { %v7304_v45 = vpack.c.bf16 %v514_v43, %v513_v42  ;;  %v515_v40 = vld [vmem:[#allocation2 + $0x13a] sm:$0xff]  ;;  %v516_v9 = vld [vmem:[#allocation2 + $0x142] sm:$0xff]  ;;  %v582_v19 = vld [vmem:[#allocation2 + $0x170] sm:$0xff] }
  0xb6   : > { %5775 = vmatpush3.bf16.msra.mxu1 %v6600_v47  ;;  %v7306_v47 = vpack.c.bf16 %v580_v35, %v579_v31  ;;  %v581_v52 = vld [vmem:[#allocation2 + $0x168] sm:$0xff]  ;;  %v7312_v20 = vpack.c.bf16 %v516_v9, %v515_v40  ;;  %v517_v6 = vld [vmem:[#allocation2 + $0x152] sm:$0xff]  ;;  %v518_v62 = vld [vmem:[#allocation2 + $0x15a] sm:$0xff] }
  0xb7   : > { %1731 = vmatmul.mubr.bf16.gmra.mrb[20].mxu0 %v7171_v61  ;;  %v7314_v53 = vpack.c.bf16 %v582_v19, %v581_v52  ;;  %v584_v0 = vld [vmem:[#allocation2 + $0x188] sm:$0xff]  ;;  %v7320_v4 = vpack.c.bf16 %v518_v62, %v517_v6  ;;  %v306_v22 = vld [vmem:[#allocation2 + $0x19a] sm:$0x1]  ;;  %v520_v14 = vld [vmem:[#allocation2 + $0x172] sm:$0xff] }
  0xb8   : > { %1892 = vmatmul.mubr.bf16.gmra.mrb[20].mxu1 %v7205_v48  ;;  %1738 = vmatprep.mubr.bf16.mxu0 %v7209_v49  ;;  %v341_v8 = vld [vmem:[#allocation2 + $0x18f] sm:$0x1]  ;;  %324 = vst [vmem:[#allocation2 + $0x198] sm:$0x1] %v306_v22  ;;  %v810_v29 = vld [vmem:[#allocation2 + $0x31] sm:$0xff]  ;;  %v811_v42 = vld [vmem:[#allocation2 + $0x39] sm:$0xff] }
  0xb9   : > { %1899 = vmatprep.mubr.bf16.mxu1 %v7211_v51  ;;  %v583_v63 = vld [vmem:[#allocation2 + $0x180] sm:$0xff]  ;;  %359 = vst [vmem:[#allocation2 + $0x191] sm:$0x1] %v341_v8  ;;  %v519_v13 = vld [vmem:[#allocation2 + $0x16a] sm:$0xff]  ;;  %v842_v31 = vpack.c.bf16 %v811_v42, %v810_v29  ;;  %v6602_v27 = vld [vmem:[#allocation7 + $0x208] sm:$0xff]  }
  0xba   : > { %v7322_v11 = vpack.c.bf16 %v584_v0, %v583_v63  ;;  %v7332_v43 = vpack.c.bf16 %v520_v14, %v519_v13  ;;  %v6603_v28 = vld [vmem:[#allocation7 + $0x210] sm:$0xff]   ;;  %v6604_v35 = vld [vmem:[#allocation7 + $0x218] sm:$0xff]  }
  0xbb   : > { %v711_v0 = vld [vmem:[#allocation2 + $0x182] sm:$0xff] }
  0xbf   : > { %1739 = vmatmul.mubr.bf16.gmra.mrb[24].mxu0 %v7195_v26 }
  0xc0   : > { %1900 = vmatmul.mubr.bf16.gmra.mrb[24].mxu1 %v7221_v5  ;;  %1746 = vmatprep.mubr.bf16.mxu0 %v7225_v41 }
  0xc1   : > { %1907 = vmatprep.mubr.bf16.mxu1 %v7227_v10 }
  0xc7   : > { %1747 = vmatmul.mubr.bf16.gmra.mrb[28].mxu0 %v7211_v51 }
  0xc8   : > { %1908 = vmatmul.mubr.bf16.gmra.mrb[28].mxu1 %v7241_v32  ;;  %1754 = vmatprep.mubr.bf16.mxu0 %v7245_v33 }
  0xc9   : > { %1915 = vmatprep.mubr.bf16.mxu1 %v7247_v36 }
  0xcf   : > { %1755 = vmatmul.mubr.bf16.gmra.mrb[32].mxu0 %v7227_v10 }
  0xd0   : > { %1916 = vmatmul.mubr.bf16.gmra.mrb[32].mxu1 %v7256_v54  ;;  %1762 = vmatprep.mubr.bf16.mxu0 %v7260_v58 }
  0xd1   : > { %1923 = vmatprep.mubr.bf16.mxu1 %v7262_v2 }
  0xd7   : > { %1763 = vmatmul.mubr.bf16.gmra.mrb[36].mxu0 %v7247_v36 }
  0xd8   : > { %1924 = vmatmul.mubr.bf16.gmra.mrb[36].mxu1 %v7268_v3  ;;  %1770 = vmatprep.mubr.bf16.mxu0 %v7272_v23 }
  0xd9   : > { %1931 = vmatprep.mubr.bf16.mxu1 %v7274_v24 }
  0xdf   : > { %1771 = vmatmul.mubr.bf16.gmra.mrb[40].mxu0 %v7262_v2 }
  0xe0   : > { %1932 = vmatmul.mubr.bf16.gmra.mrb[40].mxu1 %v7280_v15  ;;  %1778 = vmatprep.mubr.bf16.mxu0 %v7284_v39 }
  0xe1   : > { %1939 = vmatprep.mubr.bf16.mxu1 %v7286_v50 }
  0xe7   : > { %1779 = vmatmul.mubr.bf16.gmra.mrb[44].mxu0 %v7274_v24 }
  0xe8   : > { %1940 = vmatmul.mubr.bf16.gmra.mrb[44].mxu1 %v7292_v30  ;;  %1786 = vmatprep.mubr.bf16.mxu0 %v7296_v55 }
  0xe9   : > { %1947 = vmatprep.mubr.bf16.mxu1 %v7298_v56 }
  0xef   : > { %1787 = vmatmul.mubr.bf16.gmra.mrb[48].mxu0 %v7286_v50 }
  0xf0   : > { %1948 = vmatmul.mubr.bf16.gmra.mrb[48].mxu1 %v7304_v45  ;;  %1794 = vmatprep.mubr.bf16.mxu0 %v7193_v25 }
  0xf1   : > { %1955 = vmatprep.mubr.bf16.mxu1 %v7306_v47 }
  0xf7   : > { %1795 = vmatmul.mubr.bf16.gmra.mrb[52].mxu0 %v7298_v56 }
  0xf8   : > { %1956 = vmatmul.mubr.bf16.gmra.mrb[52].mxu1 %v7312_v20  ;;  %1802 = vmatprep.mubr.bf16.mxu0 %v7203_v34 }
  0xf9   : > { %1963 = vmatprep.mubr.bf16.mxu1 %v7314_v53 }
  0xff   : > { %1803 = vmatmul.mubr.bf16.gmra.mrb[56].mxu0 %v7306_v47 }
 0x100   : > { %1964 = vmatmul.mubr.bf16.gmra.mrb[56].mxu1 %v7320_v4  ;;  %1810 = vmatprep.mubr.bf16.mxu0 %v7215_v57 }
 0x101   : > { %1971 = vmatprep.mubr.bf16.mxu1 %v7322_v11 }
 0x107   : > { %1811 = vmatmul.mubr.bf16.gmra.mrb[60].mxu0 %v7314_v53 }
 0x108   : > { %1972 = vmatmul.mubr.bf16.gmra.mrb[60].mxu1 %v7332_v43  ;;  %2012 = vmatprep.mubr.bf16.mxu0 %v7114_v17  ;;  %v6607_v17 = vld [vmem:[#allocation7 + $0x230] sm:$0xff]  }
 0x109   : > { %2173 = vmatprep.mubr.bf16.mxu1 %v842_v31 }
 0x10f   : > { %2013 = vmatmul.mubr.bf16.vlgmr.msra.gmra.mrb[64].mxu0 %v7092_v1  ;;  %v6605_v1 = vld [vmem:[#allocation7 + $0x220] sm:$0xff]  }
 0x110   : > { %6369 = vmatpush3.bf16.msra.mxu0 %v7250_v38  ;;  %2174 = vmatmul.mubr.bf16.vlgmr.msra.gmra.mrb[64].mxu1 %v7101_v7  ;;  %v6606_v7 = vld [vmem:[#allocation7 + $0x228] sm:$0xff]  }
 0x111   : > { %2020 = vmatprep.mubr.bf16.mxu0 %v7137_v37  ;;  %2181 = vmatprep.mubr.bf16.mxu1 %v7141_v44  ;;  %v342_v37 = vld [vmem:[#allocation2 + $0x1a7] sm:$0x1] }
 0x112   : > { %6370 = vmatprep.subr.bf16.mxu0 %v6602_v27  ;;  %360 = vst [vmem:[#allocation2 + $0x1a9] sm:$0x1] %v342_v37  ;;  %v874_v37 = vld [vmem:[#allocation2 + $0x32] sm:$0xff] }
 0x114   : > { %6371 = vmatpush3.bf16.msra.mxu0 %v6602_v27 }
 0x115   : > { %6372 = vmatprep.subr.bf16.mxu0 %v6603_v28 }
 0x117   : > { %2021 = vmatmul.mubr.bf16.gmra.mrb[68].mxu0 %v842_v31 }
 0x118   : > { %2182 = vmatmul.mubr.bf16.gmra.mrb[68].mxu1 %v7122_v21  ;;  %2028 = vmatprep.mubr.bf16.mxu0 %v7165_v59  ;;  %v6608_v21 = vld [vmem:[#allocation7 + $0x238] sm:$0xff]  }
 0x119   : > { %2189 = vmatprep.mubr.bf16.mxu1 %v7169_v60  ;;  %6373 = vmatpush3.bf16.msra.mxu0 %v6603_v28 }
 0x11a   : > { %6374 = vmatprep.subr.bf16.mxu0 %v6604_v35 }
 0x11d   : > { %6375 = vmatpush3.bf16.msra.mxu0 %v6604_v35 }
 0x11e   : > { %6376 = vmatprep.subr.bf16.mxu0 %v6605_v1 }
 0x11f   : > { %2029 = vmatmul.mubr.bf16.gmra.mrb[72].mxu0 %v7141_v44 }
 0x120   : > { %2190 = vmatmul.mubr.bf16.gmra.mrb[72].mxu1 %v7143_v46  ;;  %2036 = vmatprep.mubr.bf16.mxu0 %v7187_v16 }
 0x121   : > { %2197 = vmatprep.mubr.bf16.mxu1 %v7191_v18  ;;  %6377 = vmatpush3.bf16.msra.mxu0 %v6605_v1 }
 0x122   : > { %6378 = vmatprep.subr.bf16.mxu0 %v6606_v7 }
 0x125   : > { %6379 = vmatpush3.bf16.msra.mxu0 %v6606_v7 }
 0x126   : > { %6380 = vmatprep.subr.bf16.mxu0 %v6607_v17 }
 0x127   : > { %2037 = vmatmul.mubr.bf16.gmra.mrb[76].mxu0 %v7169_v60 }
 0x128   : > { %2198 = vmatmul.mubr.bf16.gmra.mrb[76].mxu1 %v7171_v61  ;;  %2044 = vmatprep.mubr.bf16.mxu0 %v7205_v48 }
 0x129   : > { %2205 = vmatprep.mubr.bf16.mxu1 %v7209_v49  ;;  %6381 = vmatpush3.bf16.msra.mxu0 %v6607_v17  ;;  %v776_v17 = vld [vmem:[#allocation2 + $0x198] sm:$0xff] }
 0x12a   : > { %6382 = vmatprep.subr.bf16.mxu0 %v6608_v21 }
 0x12d   : > { %6383 = vmatpush3.bf16.msra.mxu0 %v6608_v21  ;;  %v777_v21 = vld [vmem:[#allocation2 + $0x1a0] sm:$0xff] }
 0x12f   : > { %2045 = vmatmul.mubr.bf16.gmra.mrb[80].mxu0 %v7191_v18 }
 0x130   : > { %2206 = vmatmul.mubr.bf16.gmra.mrb[80].mxu1 %v7195_v26  ;;  %2052 = vmatprep.mubr.bf16.mxu0 %v7221_v5 }
 0x131   : > { %2213 = vmatprep.mubr.bf16.mxu1 %v7225_v41 }
 0x137   : > { %2053 = vmatmul.mubr.bf16.gmra.mrb[84].mxu0 %v7209_v49 }
 0x138   : > { %2214 = vmatmul.mubr.bf16.gmra.mrb[84].mxu1 %v7211_v51  ;;  %2060 = vmatprep.mubr.bf16.mxu0 %v7241_v32 }
 0x139   : > { %2221 = vmatprep.mubr.bf16.mxu1 %v7245_v33 }
 0x13f   : > { %2061 = vmatmul.mubr.bf16.gmra.mrb[88].mxu0 %v7225_v41 }
 0x140   : > { %2222 = vmatmul.mubr.bf16.gmra.mrb[88].mxu1 %v7227_v10  ;;  %2068 = vmatprep.mubr.bf16.mxu0 %v7256_v54 }
 0x141   : > { %2229 = vmatprep.mubr.bf16.mxu1 %v7260_v58 }
 0x147   : > { %2069 = vmatmul.mubr.bf16.gmra.mrb[92].mxu0 %v7245_v33 }
 0x148   : > { %2230 = vmatmul.mubr.bf16.gmra.mrb[92].mxu1 %v7247_v36  ;;  %2076 = vmatprep.mubr.bf16.mxu0 %v7268_v3 }
 0x149   : > { %2237 = vmatprep.mubr.bf16.mxu1 %v7272_v23 }
 0x14f   : > { %2077 = vmatmul.mubr.bf16.gmra.mrb[96].mxu0 %v7260_v58 }
 0x150   : > { %2238 = vmatmul.mubr.bf16.gmra.mrb[96].mxu1 %v7262_v2  ;;  %2084 = vmatprep.mubr.bf16.mxu0 %v7280_v15 }
 0x151   : > { %2245 = vmatprep.mubr.bf16.mxu1 %v7284_v39 }
 0x157   : > { %2085 = vmatmul.mubr.bf16.gmra.mrb[100].mxu0 %v7272_v23 }
 0x158   : > { %2246 = vmatmul.mubr.bf16.gmra.mrb[100].mxu1 %v7274_v24  ;;  %2092 = vmatprep.mubr.bf16.mxu0 %v7292_v30 }
 0x159   : > { %2253 = vmatprep.mubr.bf16.mxu1 %v7296_v55 }
 0x15f   : > { %2093 = vmatmul.mubr.bf16.gmra.mrb[104].mxu0 %v7284_v39 }
 0x160   : > { %2254 = vmatmul.mubr.bf16.gmra.mrb[104].mxu1 %v7286_v50  ;;  %2100 = vmatprep.mubr.bf16.mxu0 %v7304_v45 }
 0x161   : > { %2261 = vmatprep.mubr.bf16.mxu1 %v7193_v25 }
 0x162   : > { %v5440_v44 = vpop.f32.mrb[0].mxu0 }
 0x163   : > { %v5552_v46 = vpop.f32.mrb[0].mxu1  ;;  %v5441_v59 = vpop.f32.mrb[1].mxu0 }
 0x164   : > { %v5442_v60 = vadd.f32 %v5441_v59, %v5440_v44  ;;  %v5553_v61 = vpop.f32.mrb[1].mxu1  ;;  %v5443_v16 = vpop.f32.mrb[2].mxu0  ;;  %v875_v44 = vld [vmem:[#allocation2 + $0x3a] sm:$0xff] }
 0x165   : > { %v5554_v18 = vadd.f32 %v5553_v61, %v5552_v46  ;;  %v5555_v26 = vpop.f32.mrb[2].mxu1  ;;  %v5444_v48 = vpop.f32.mrb[3].mxu0 }
 0x166   : > { %v5445_v49 = vadd.f32 %v5444_v48, %v5443_v16  ;;  %v5556_v51 = vpop.f32.mrb[3].mxu1  ;;  %v793_v48 = vpack.c.bf16 %v777_v21, %v776_v17 }
 0x167   : > { %v5557_v5 = vadd.f32 %v5556_v51, %v5555_v26  ;;  %2101 = vmatmul.mubr.bf16.gmra.mrb[108].mxu0 %v7296_v55  ;;  %v7382_v41 = vadd.f32 %v5554_v18, %v5442_v60 }
 0x168   : > { %2262 = vmatmul.mubr.bf16.gmra.mrb[108].mxu1 %v7298_v56  ;;  %2108 = vmatprep.mubr.bf16.mxu0 %v7312_v20 }
 0x169   : > { %2269 = vmatprep.mubr.bf16.mxu1 %v7203_v34  ;;  %v7387_v10 = vadd.f32 %v5557_v5, %v5445_v49  ;;  %v906_v49 = vpack.c.bf16 %v875_v44, %v874_v37 }
 0x16a   : > { %v5446_v32 = vpop.f32.mrb[4].mxu0 }
 0x16b   : > { %v5558_v33 = vpop.f32.mrb[4].mxu1  ;;  %v5447_v36 = vpop.f32.mrb[5].mxu0 }
 0x16c   : > { %v5448_v38 = vadd.f32 %v5447_v36, %v5446_v32  ;;  %v5559_v54 = vpop.f32.mrb[5].mxu1  ;;  %v5449_v58 = vpop.f32.mrb[6].mxu0 }
 0x16d   : > { %v5560_v2 = vadd.f32 %v5559_v54, %v5558_v33  ;;  %v5561_v3 = vpop.f32.mrb[6].mxu1  ;;  %v5450_v23 = vpop.f32.mrb[7].mxu0  ;;  %v877_v54 = vld [vmem:[#allocation2 + $0x52] sm:$0xff] }
 0x16e   : > { %v5451_v24 = vadd.f32 %v5450_v23, %v5449_v58  ;;  %v5562_v15 = vpop.f32.mrb[7].mxu1  ;;  %v878_v58 = vld [vmem:[#allocation2 + $0x62] sm:$0xff] }
 0x16f   : > { %v5563_v39 = vadd.f32 %v5562_v15, %v5561_v3  ;;  %2109 = vmatmul.mubr.bf16.gmra.mrb[112].mxu0 %v7193_v25  ;;  %v7390_v50 = vadd.f32 %v5560_v2, %v5448_v38  ;;  %v876_v38 = vld [vmem:[#allocation2 + $0x4a] sm:$0xff] }
 0x170   : > { %2270 = vmatmul.mubr.bf16.gmra.mrb[112].mxu1 %v7306_v47  ;;  %2116 = vmatprep.mubr.bf16.mxu0 %v7320_v4  ;;  %v712_v4 = vld [vmem:[#allocation2 + $0x18a] sm:$0xff] }
 0x171   : > { %2277 = vmatprep.mubr.bf16.mxu1 %v7215_v57  ;;  %v7395_v30 = vadd.f32 %v5563_v39, %v5451_v24  ;;  %v7405_v27 = vpack.c.bf16 %v712_v4, %v711_v0  ;;  %v879_v2 = vld [vmem:[#allocation2 + $0x6a] sm:$0xff]  ;;  %v907_v39 = vpack.c.bf16 %v877_v54, %v876_v38  ;;  %v882_v0 = vld [vmem:[#allocation2 + $0x92] sm:$0xff]  ;;  %v883_v4 = vld [vmem:[#allocation2 + $0x9a] sm:$0xff] }
 0x172   : > { %v5452_v55 = vpop.f32.mrb[8].mxu0 }
 0x173   : > { %v5564_v56 = vpop.f32.mrb[8].mxu1  ;;  %v5453_v45 = vpop.f32.mrb[9].mxu0 }
 0x174   : > { %v5454_v40 = vadd.f32 %v5453_v45, %v5452_v55  ;;  %v5565_v9 = vpop.f32.mrb[9].mxu1  ;;  %v5455_v52 = vpop.f32.mrb[10].mxu0 }
 0x175   : > { %v5566_v19 = vadd.f32 %v5565_v9, %v5564_v56  ;;  %v5567_v20 = vpop.f32.mrb[10].mxu1  ;;  %v5456_v6 = vpop.f32.mrb[11].mxu0 }
 0x176   : > { %v5457_v25 = vadd.f32 %v5456_v6, %v5455_v52  ;;  %v5568_v62 = vpop.f32.mrb[11].mxu1 }
 0x177   : > { %v5569_v63 = vadd.f32 %v5568_v62, %v5567_v20  ;;  %2117 = vmatmul.mubr.bf16.gmra.mrb[116].mxu0 %v7203_v34  ;;  %v7398_v47 = vadd.f32 %v5566_v19, %v5454_v40  ;;  %v908_v40 = vpack.c.bf16 %v879_v2, %v878_v58  ;;  %v880_v62 = vld [vmem:[#allocation2 + $0x7a] sm:$0xff] }
 0x178   : > { %2278 = vmatmul.mubr.bf16.gmra.mrb[116].mxu1 %v7314_v53  ;;  %2124 = vmatprep.mubr.bf16.mxu0 %v7332_v43 }
 0x179   : > { %2285 = vmatprep.mubr.bf16.mxu1 %v7327_v12  ;;  %v7403_v8 = vadd.f32 %v5569_v63, %v5457_v25  ;;  %v881_v63 = vld [vmem:[#allocation2 + $0x82] sm:$0xff] }
 0x17a   : > { %v5458_v22 = vpop.f32.mrb[12].mxu0 }
 0x17b   : > { %v5570_v13 = vpop.f32.mrb[12].mxu1  ;;  %v5459_v14 = vpop.f32.mrb[13].mxu0 }
 0x17c   : > { %v5460_v29 = vadd.f32 %v5459_v14, %v5458_v22  ;;  %v5571_v42 = vpop.f32.mrb[13].mxu1  ;;  %v5461_v31 = vpop.f32.mrb[14].mxu0 }
 0x17d   : > { %v5572_v34 = vadd.f32 %v5571_v42, %v5570_v13  ;;  %v5573_v28 = vpop.f32.mrb[14].mxu1  ;;  %v5462_v35 = vpop.f32.mrb[15].mxu0  ;;  %v909_v42 = vpack.c.bf16 %v881_v63, %v880_v62 }
 0x17e   : > { %v5463_v53 = vadd.f32 %v5462_v35, %v5461_v31  ;;  %v5574_v1 = vpop.f32.mrb[15].mxu1  ;;  %v910_v35 = vpack.c.bf16 %v883_v4, %v882_v0 }
 0x17f   : > { %v5575_v43 = vadd.f32 %v5574_v1, %v5573_v28  ;;  %2125 = vmatmul.mubr.bf16.gmra.mrb[120].mxu0 %v7215_v57  ;;  %v7408_v7 = vadd.f32 %v5572_v34, %v5460_v29 }
 0x180   : > { %2286 = vmatmul.mubr.bf16.gmra.mrb[120].mxu1 %v7322_v11  ;;  %2132 = vmatprep.mubr.bf16.mxu0 %v7405_v27 }
 0x181   : > { %2293 = vmatprep.mubr.bf16.mxu1 %v7215_v57  ;;  %v7413_v46 = vadd.f32 %v5575_v43, %v5463_v53 }
 0x182   : > { %v5464_v59 = vpop.f32.mrb[16].mxu0 }
 0x183   : > { %v5576_v60 = vpop.f32.mrb[16].mxu1  ;;  %v5465_v61 = vpop.f32.mrb[17].mxu0 }
 0x184   : > { %v5466_v16 = vadd.f32 %v5465_v61, %v5464_v59  ;;  %v5577_v18 = vpop.f32.mrb[17].mxu1  ;;  %v5467_v26 = vpop.f32.mrb[18].mxu0  ;;  %v884_v59 = vld [vmem:[#allocation2 + $0xaa] sm:$0xff]  ;;  %v886_v61 = vld [vmem:[#allocation2 + $0xc2] sm:$0xff] }
 0x185   : > { %v5578_v51 = vadd.f32 %v5577_v18, %v5576_v60  ;;  %v5579_v11 = vpop.f32.mrb[18].mxu1  ;;  %v5468_v5 = vpop.f32.mrb[19].mxu0  ;;  %v885_v60 = vld [vmem:[#allocation2 + $0xb2] sm:$0xff] }
 0x186   : > { %v5469_v32 = vadd.f32 %v5468_v5, %v5467_v26  ;;  %v5580_v33 = vpop.f32.mrb[19].mxu1 }
 0x187   : > { %v5581_v36 = vadd.f32 %v5580_v33, %v5579_v11  ;;  %2133 = vmatmul.mubr.bf16.gmra.mrb[124].mxu0 %v7327_v12  ;;  %v7416_v57 = vadd.f32 %v5578_v51, %v5466_v16  ;;  %v887_v16 = vld [vmem:[#allocation2 + $0xca] sm:$0xff]  ;;  %v911_v51 = vpack.c.bf16 %v885_v60, %v884_v59 }
 0x188   : > { %2294 = vmatmul.mubr.bf16.gmra.mrb[124].mxu1 %v793_v48  ;;  %6384 = vmatprep.mubr.bf16.mxu0 %v906_v49  ;;  %v912_v33 = vpack.c.bf16 %v887_v16, %v886_v61 }
 0x189   : > { %v7418_v3 = vadd.f32 %v5581_v36, %v5469_v32 }
 0x18a   : > { %v5470_v23 = vpop.f32.mrb[20].mxu0 }
 0x18b   : > { %v5582_v24 = vpop.f32.mrb[20].mxu1  ;;  %v5471_v15 = vpop.f32.mrb[21].mxu0 }
 0x18c   : > { %v5472_v55 = vadd.f32 %v5471_v15, %v5470_v23  ;;  %v5583_v56 = vpop.f32.mrb[21].mxu1  ;;  %v5473_v45 = vpop.f32.mrb[22].mxu0  ;;  %v888_v15 = vld [vmem:[#allocation2 + $0xda] sm:$0xff] }
 0x18d   : > { %v5584_v9 = vadd.f32 %v5583_v56, %v5582_v24  ;;  %v5585_v12 = vpop.f32.mrb[22].mxu1  ;;  %v5474_v52 = vpop.f32.mrb[23].mxu0  ;;  %v891_v56 = vld [vmem:[#allocation2 + $0xfa] sm:$0xff] }
 0x18e   : > { %v5475_v19 = vadd.f32 %v5474_v52, %v5473_v45  ;;  %v5586_v20 = vpop.f32.mrb[23].mxu1 }
 0x18f   : > { %v5587_v6 = vadd.f32 %v5586_v20, %v5585_v12  ;;  %6385 = vmatmul.mubr.bf16.vlgmr.msra.gmra.mrb[128].mxu0 %v907_v39  ;;  %v7420_v25 = vadd.f32 %v5584_v9, %v5472_v55  ;;  %v889_v39 = vld [vmem:[#allocation2 + $0xe2] sm:$0xff]  ;;  %v890_v55 = vld [vmem:[#allocation2 + $0xf2] sm:$0xff] }
 0x190   : > { %6388 = vmatprep.mubr.bf16.mxu0 %v908_v40  ;;  %v913_v52 = vpack.c.bf16 %v889_v39, %v888_v15  ;;  %v914_v62 = vpack.c.bf16 %v891_v56, %v890_v55 }
 0x191   : > { %v7422_v22 = vadd.f32 %v5587_v6, %v5475_v19 }
 0x192   : > { %v5476_v13 = vpop.f32.mrb[24].mxu0 }
 0x193   : > { %v5588_v14 = vpop.f32.mrb[24].mxu1  ;;  %v5477_v29 = vpop.f32.mrb[25].mxu0 }
 0x194   : > { %v5478_v31 = vadd.f32 %v5477_v29, %v5476_v13  ;;  %v5589_v34 = vpop.f32.mrb[25].mxu1  ;;  %v5479_v28 = vpop.f32.mrb[26].mxu0 }
 0x195   : > { %v5590_v53 = vadd.f32 %v5589_v34, %v5588_v14  ;;  %v5591_v1 = vpop.f32.mrb[26].mxu1  ;;  %v5480_v43 = vpop.f32.mrb[27].mxu0  ;;  %v893_v34 = vld [vmem:[#allocation2 + $0x112] sm:$0xff] }
 0x196   : > { %v5481_v17 = vadd.f32 %v5480_v43, %v5479_v28  ;;  %v5592_v21 = vpop.f32.mrb[27].mxu1 }
 0x197   : > { %v5593_v37 = vadd.f32 %v5592_v21, %v5591_v1  ;;  %6389 = vmatmul.mubr.bf16.gmra.mrb[132].mxu0 %v909_v42  ;;  %v7424_v44 = vadd.f32 %v5590_v53, %v5478_v31  ;;  %v892_v31 = vld [vmem:[#allocation2 + $0x10a] sm:$0xff] }
 0x198   : > { %6392 = vmatprep.mubr.bf16.mxu0 %v910_v35  ;;  %v894_v35 = vld [vmem:[#allocation2 + $0x122] sm:$0xff]  ;;  %v895_v53 = vld [vmem:[#allocation2 + $0x12a] sm:$0xff]  ;;  %v915_v21 = vpack.c.bf16 %v893_v34, %v892_v31 }
 0x199   : > { %v7426_v18 = vadd.f32 %v5593_v37, %v5481_v17  ;;  %v916_v61 = vpack.c.bf16 %v895_v53, %v894_v35 }
 0x19a   : > { %v5482_v26 = vpop.f32.mrb[28].mxu0 }
 0x19b   : > { %v5594_v48 = vpop.f32.mrb[28].mxu1  ;;  %v5483_v49 = vpop.f32.mrb[29].mxu0 }
 0x19c   : > { %v5484_v11 = vadd.f32 %v5483_v49, %v5482_v26  ;;  %v5595_v5 = vpop.f32.mrb[29].mxu1  ;;  %v5485_v32 = vpop.f32.mrb[30].mxu0 }
 0x19d   : > { %v5596_v36 = vadd.f32 %v5595_v5, %v5594_v48  ;;  %v5597_v38 = vpop.f32.mrb[30].mxu1  ;;  %v5486_v54 = vpop.f32.mrb[31].mxu0 }
 0x19e   : > { %v5487_v58 = vadd.f32 %v5486_v54, %v5485_v32  ;;  %v5598_v2 = vpop.f32.mrb[31].mxu1  ;;  %v896_v32 = vld [vmem:[#allocation2 + $0x13a] sm:$0xff] }
 0x19f   : > { %v5599_v23 = vadd.f32 %v5598_v2, %v5597_v38  ;;  %6393 = vmatmul.mubr.bf16.gmra.mrb[136].mxu0 %v911_v51  ;;  %v7428_v24 = vadd.f32 %v5596_v36, %v5484_v11  ;;  %v898_v38 = vld [vmem:[#allocation2 + $0x152] sm:$0xff]  ;;  %v899_v54 = vld [vmem:[#allocation2 + $0x15a] sm:$0xff] }
 0x1a0   : > { %6396 = vmatprep.mubr.bf16.mxu0 %v912_v33  ;;  %v897_v33 = vld [vmem:[#allocation2 + $0x142] sm:$0xff] }
 0x1a1   : > { %v7430_v45 = vadd.f32 %v5599_v23, %v5487_v58  ;;  %v917_v15 = vpack.c.bf16 %v897_v33, %v896_v32 }
 0x1a2   : > { %v5488_v40 = vpop.f32.mrb[32].mxu0 }
 0x1a3   : > { %v5600_v9 = vpop.f32.mrb[32].mxu1  ;;  %v5489_v12 = vpop.f32.mrb[33].mxu0 }
 0x1a4   : > { %v5490_v19 = vadd.f32 %v5489_v12, %v5488_v40  ;;  %v5601_v20 = vpop.f32.mrb[33].mxu1  ;;  %v5491_v6 = vpop.f32.mrb[34].mxu0  ;;  %v918_v40 = vpack.c.bf16 %v899_v54, %v898_v38 }
 0x1a5   : > { %v5602_v63 = vadd.f32 %v5601_v20, %v5600_v9  ;;  %v5603_v0 = vpop.f32.mrb[34].mxu1  ;;  %v5492_v4 = vpop.f32.mrb[35].mxu0 }
 0x1a6   : > { %v5493_v13 = vadd.f32 %v5492_v4, %v5491_v6  ;;  %v5604_v14 = vpop.f32.mrb[35].mxu1 }
 0x1a7   : > { %v7432_v29 = vadd.f32 %v5602_v63, %v5490_v19  ;;  %v5605_v42 = vadd.f32 %v5604_v14, %v5603_v0  ;;  %6397 = vmatmul.mubr.bf16.gmra.mrb[140].mxu0 %v913_v52  ;;  %v900_v63 = vld [vmem:[#allocation2 + $0x16a] sm:$0xff]  ;;  %v901_v0 = vld [vmem:[#allocation2 + $0x172] sm:$0xff] }
 0x1a8   : > { %6400 = vmatprep.mubr.bf16.mxu0 %v914_v62  ;;  %v919_v31 = vpack.c.bf16 %v901_v0, %v900_v63 }
 0x1a9   : > { %v7434_v28 = vadd.f32 %v5605_v42, %v5493_v13 }
 0x1aa   : > { %v5494_v1 = vpop.f32.mrb[36].mxu0 }
 0x1ab   : > { %v5606_v43 = vpop.f32.mrb[36].mxu1  ;;  %v5495_v17 = vpop.f32.mrb[37].mxu0 }
 0x1ac   : > { %v5496_v37 = vadd.f32 %v5495_v17, %v5494_v1  ;;  %v5607_v59 = vpop.f32.mrb[37].mxu1  ;;  %v5497_v60 = vpop.f32.mrb[38].mxu0 }
 0x1ad   : > { %v5608_v16 = vadd.f32 %v5607_v59, %v5606_v43  ;;  %v5609_v26 = vpop.f32.mrb[38].mxu1  ;;  %v5498_v48 = vpop.f32.mrb[39].mxu0 }
 0x1ae   : > { %v5499_v49 = vadd.f32 %v5498_v48, %v5497_v60  ;;  %v5610_v51 = vpop.f32.mrb[39].mxu1 }
 0x1af   : > { %v7436_v11 = vadd.f32 %v5608_v16, %v5496_v37  ;;  %v5611_v5 = vadd.f32 %v5610_v51, %v5609_v26  ;;  %6401 = vmatmul.mubr.bf16.gmra.mrb[144].mxu0 %v915_v21  ;;  %v905_v16 = vld [vmem:[#allocation2 + $0x1a2] sm:$0xff] }
 0x1b0   : > { %6404 = vmatprep.mubr.bf16.mxu0 %v916_v61  ;;  %v904_v61 = vld [vmem:[#allocation2 + $0x19a] sm:$0xff] }
 0x1b1   : > { %v7438_v36 = vadd.f32 %v5611_v5, %v5499_v49  ;;  %v921_v5 = vpack.c.bf16 %v905_v16, %v904_v61 }
 0x1b2   : > { %v5500_v58 = vpop.f32.mrb[40].mxu0 }
 0x1b3   : > { %v5612_v2 = vpop.f32.mrb[40].mxu1  ;;  %v5501_v23 = vpop.f32.mrb[41].mxu0 }
 0x1b4   : > { %v5502_v39 = vadd.f32 %v5501_v23, %v5500_v58  ;;  %v5613_v55 = vpop.f32.mrb[41].mxu1  ;;  %v5503_v56 = vpop.f32.mrb[42].mxu0 }
 0x1b5   : > { %v5614_v9 = vadd.f32 %v5613_v55, %v5612_v2  ;;  %v5615_v12 = vpop.f32.mrb[42].mxu1  ;;  %v5504_v52 = vpop.f32.mrb[43].mxu0 }
 0x1b6   : > { %v5505_v19 = vadd.f32 %v5504_v52, %v5503_v56  ;;  %v5616_v20 = vpop.f32.mrb[43].mxu1 }
 0x1b7   : > { %v7440_v6 = vadd.f32 %v5614_v9, %v5502_v39  ;;  %v5617_v62 = vadd.f32 %v5616_v20, %v5615_v12  ;;  %6405 = vmatmul.mubr.bf16.gmra.mrb[148].mxu0 %v917_v15 }
 0x1b8   : > { %6408 = vmatprep.mubr.bf16.mxu0 %v918_v40 }
 0x1b9   : > { %v7442_v4 = vadd.f32 %v5617_v62, %v5505_v19 }
 0x1ba   : > { %v5506_v13 = vpop.f32.mrb[44].mxu0 }
 0x1bb   : > { %v5618_v14 = vpop.f32.mrb[44].mxu1  ;;  %v5507_v42 = vpop.f32.mrb[45].mxu0 }
 0x1bc   : > { %v5508_v34 = vadd.f32 %v5507_v42, %v5506_v13  ;;  %v5619_v35 = vpop.f32.mrb[45].mxu1  ;;  %v5509_v53 = vpop.f32.mrb[46].mxu0 }
 0x1bd   : > { %v5620_v1 = vadd.f32 %v5619_v35, %v5618_v14  ;;  %v5621_v43 = vpop.f32.mrb[46].mxu1  ;;  %v5510_v17 = vpop.f32.mrb[47].mxu0 }
 0x1be   : > { %v5511_v21 = vadd.f32 %v5510_v17, %v5509_v53  ;;  %v5622_v37 = vpop.f32.mrb[47].mxu1 }
 0x1bf   : > { %v7444_v59 = vadd.f32 %v5620_v1, %v5508_v34  ;;  %v5623_v60 = vadd.f32 %v5622_v37, %v5621_v43  ;;  %6409 = vmatmul.mubr.bf16.gmra.mrb[152].mxu0 %v919_v31 }
 0x1c0   : > { %6412 = vmatprep.mubr.bf16.mxu0 %v7405_v27 }
 0x1c1   : > { %v7447_v26 = vadd.f32 %v5623_v60, %v5511_v21 }
 0x1c2   : > { %v5512_v48 = vpop.f32.mrb[48].mxu0 }
 0x1c3   : > { %v5624_v49 = vpop.f32.mrb[48].mxu1  ;;  %v5513_v51 = vpop.f32.mrb[49].mxu0 }
 0x1c4   : > { %v5514_v32 = vadd.f32 %v5513_v51, %v5512_v48  ;;  %v5625_v33 = vpop.f32.mrb[49].mxu1  ;;  %v5515_v38 = vpop.f32.mrb[50].mxu0 }
 0x1c5   : > { %v5626_v54 = vadd.f32 %v5625_v33, %v5624_v49  ;;  %v5627_v58 = vpop.f32.mrb[50].mxu1  ;;  %v5516_v2 = vpop.f32.mrb[51].mxu0 }
 0x1c6   : > { %v5517_v23 = vadd.f32 %v5516_v2, %v5515_v38  ;;  %v5628_v15 = vpop.f32.mrb[51].mxu1 }
 0x1c7   : > { %v7449_v39 = vadd.f32 %v5626_v54, %v5514_v32  ;;  %v5629_v55 = vadd.f32 %v5628_v15, %v5627_v58  ;;  %6413 = vmatmul.mubr.bf16.gmra.mrb[156].mxu0 %v921_v5 }
 0x1c9   : > { %v7451_v27 = vadd.f32 %v5629_v55, %v5517_v23 }
 0x1ca   : > { %v5518_v56 = vpop.f32.mrb[52].mxu0 }
 0x1cb   : > { %v5630_v40 = vpop.f32.mrb[52].mxu1  ;;  %v5519_v9 = vpop.f32.mrb[53].mxu0 }
 0x1cc   : > { %v5520_v12 = vadd.f32 %v5519_v9, %v5518_v56  ;;  %v5631_v52 = vpop.f32.mrb[53].mxu1  ;;  %v5521_v19 = vpop.f32.mrb[54].mxu0 }
 0x1cd   : > { %v5632_v20 = vadd.f32 %v5631_v52, %v5630_v40  ;;  %v5633_v62 = vpop.f32.mrb[54].mxu1  ;;  %v5522_v63 = vpop.f32.mrb[55].mxu0  ;;  %v6610_v52 = vld [vmem:[#allocation9] sm:$0xff]  }
 0x1ce   : > { %v5523_v0 = vadd.f32 %v5522_v63, %v5521_v19  ;;  %v5634_v13 = vpop.f32.mrb[55].mxu1 }
 0x1cf   : > { %v7453_v14 = vadd.f32 %v5632_v20, %v5520_v12  ;;  %v5635_v42 = vadd.f32 %v5634_v13, %v5633_v62  ;;  %v6609_v12 = vld [vmem:[#allocation9 + $0x40] sm:$0xff]  }
 0x1d0   : > { %5896 = vmatprep.subr.bf16.mxu1 %v6609_v12 }
 0x1d1   : > { %v7455_v31 = vadd.f32 %v5635_v42, %v5523_v0  ;;  %5897 = vmatpush3.bf16.msra.mxu1 %v6610_v52 }
 0x1d2   : > { %v5524_v34 = vpop.f32.mrb[56].mxu0 }
 0x1d3   : > { %v5636_v35 = vpop.f32.mrb[56].mxu1  ;;  %v5525_v53 = vpop.f32.mrb[57].mxu0 }
 0x1d4   : > { %v5526_v1 = vadd.f32 %v5525_v53, %v5524_v34  ;;  %v5637_v43 = vpop.f32.mrb[57].mxu1  ;;  %v5527_v17 = vpop.f32.mrb[58].mxu0 }
 0x1d5   : > { %v5638_v21 = vadd.f32 %v5637_v43, %v5636_v35  ;;  %v5639_v37 = vpop.f32.mrb[58].mxu1  ;;  %v5528_v60 = vpop.f32.mrb[59].mxu0 }
 0x1d6   : > { %v5529_v61 = vadd.f32 %v5528_v60, %v5527_v17  ;;  %v5640_v16 = vpop.f32.mrb[59].mxu1 }
 0x1d7   : > { %v7457_v48 = vadd.f32 %v5638_v21, %v5526_v1  ;;  %v5641_v49 = vadd.f32 %v5640_v16, %v5639_v37 }
 0x1d9   : > { %v7459_v51 = vadd.f32 %v5641_v49, %v5529_v61 }
 0x1da   : > { %v5530_v5 = vpop.f32.mrb[60].mxu0 }
 0x1db   : > { %v5642_v32 = vpop.f32.mrb[60].mxu1  ;;  %v5531_v33 = vpop.f32.mrb[61].mxu0 }
 0x1dc   : > { %v5532_v38 = vadd.f32 %v5531_v33, %v5530_v5  ;;  %v5643_v54 = vpop.f32.mrb[61].mxu1  ;;  %v5533_v58 = vpop.f32.mrb[62].mxu0 }
 0x1dd   : > { %v5644_v2 = vadd.f32 %v5643_v54, %v5642_v32  ;;  %v5645_v23 = vpop.f32.mrb[62].mxu1  ;;  %v5534_v15 = vpop.f32.mrb[63].mxu0 }
 0x1de   : > { %v5535_v55 = vadd.f32 %v5534_v15, %v5533_v58  ;;  %v5646_v56 = vpop.f32.mrb[63].mxu1 }
 0x1df   : > { %v7461_v40 = vadd.f32 %v5644_v2, %v5532_v38  ;;  %v5647_v9 = vadd.f32 %v5646_v56, %v5645_v23 }
 0x1e1   : > { %v7463_v19 = vadd.f32 %v5647_v9, %v5535_v55 }
 0x1e2   : > { %v5664_v20 = vpop.f32.mrb[64].mxu0 }
 0x1e3   : > { %v5665_v62 = vpop.f32.mrb[65].mxu0  ;;  %v5776_v63 = vpop.f32.mrb[64].mxu1 }
 0x1e4   : > { %v5666_v0 = vadd.f32 %v5665_v62, %v5664_v20  ;;  %v5667_v13 = vpop.f32.mrb[66].mxu0  ;;  %v5777_v42 = vpop.f32.mrb[65].mxu1 }
 0x1e5   : > { %v5668_v34 = vpop.f32.mrb[67].mxu0  ;;  %v5778_v35 = vadd.f32 %v5777_v42, %v5776_v63  ;;  %v5779_v53 = vpop.f32.mrb[66].mxu1  ;;  %v6612_v42 = vld [vmem:[#allocation9 + $0x8] sm:$0xff]  }
 0x1e6   : > { %v2015_v1 = vadd.f32 %v5666_v0, %v7382_v41  ;;  %v5669_v43 = vadd.f32 %v5668_v34, %v5667_v13  ;;  %v5780_v17 = vpop.f32.mrb[67].mxu1  ;;  %v6611_v13 = vld [vmem:[#allocation9 + $0x48] sm:$0xff]  }
 0x1e7   : > { %v5781_v21 = vadd.f32 %v5780_v17, %v5779_v53  ;;  %5898 = vmatprep.subr.bf16.mxu1 %v6611_v13  ;;  %v6613_v13 = vld [vmem:[#allocation9 + $0x50] sm:$0xff]  }
 0x1e8   : > { %v2018_v37 = vadd.f32 %v5669_v43, %v7387_v10  ;;  %v7467_v60 = vadd.f32 %v5778_v35, %v2015_v1  ;;  %5899 = vmatpush3.bf16.msra.mxu1 %v6612_v42  ;;  %v6614_v42 = vld [vmem:[#allocation9 + $0x10] sm:$0xff]  }
 0x1e9   : > { %5900 = vmatprep.subr.bf16.mxu1 %v6613_v13  ;;  %v6615_v13 = vld [vmem:[#allocation9 + $0x58] sm:$0xff]  }
 0x1ea   : > { %v5670_v61 = vpop.f32.mrb[68].mxu0  ;;  %v7469_v16 = vadd.f32 %v5781_v21, %v2018_v37 }
 0x1eb   : > { %v5671_v49 = vpop.f32.mrb[69].mxu0  ;;  %v5782_v5 = vpop.f32.mrb[68].mxu1 }
 0x1ec   : > { %v5672_v32 = vadd.f32 %v5671_v49, %v5670_v61  ;;  %v5673_v33 = vpop.f32.mrb[70].mxu0  ;;  %v5783_v38 = vpop.f32.mrb[69].mxu1  ;;  %5901 = vmatpush3.bf16.msra.mxu1 %v6614_v42  ;;  %v6616_v42 = vld [vmem:[#allocation9 + $0x18] sm:$0xff]  }
 0x1ed   : > { %v5674_v54 = vpop.f32.mrb[71].mxu0  ;;  %v5784_v58 = vadd.f32 %v5783_v38, %v5782_v5  ;;  %v5785_v2 = vpop.f32.mrb[70].mxu1  ;;  %5902 = vmatprep.subr.bf16.mxu1 %v6615_v13 }
 0x1ee   : > { %v2023_v41 = vadd.f32 %v5672_v32, %v7390_v50  ;;  %v5675_v23 = vadd.f32 %v5674_v54, %v5673_v33  ;;  %v5786_v15 = vpop.f32.mrb[71].mxu1 }
 0x1ef   : > { %v5787_v55 = vadd.f32 %v5786_v15, %v5785_v2 }
 0x1f0   : > { %v2026_v10 = vadd.f32 %v5675_v23, %v7395_v30  ;;  %v7473_v56 = vadd.f32 %v5784_v58, %v2023_v41  ;;  %5903 = vmatpush3.bf16.msra.mxu1 %v6616_v42 }
 0x1f2   : > { %v5676_v9 = vpop.f32.mrb[72].mxu0  ;;  %v7475_v12 = vadd.f32 %v5787_v55, %v2026_v10 }
 0x1f3   : > { %v5677_v52 = vpop.f32.mrb[73].mxu0  ;;  %v5788_v20 = vpop.f32.mrb[72].mxu1 }
 0x1f4   : > { %v5678_v62 = vadd.f32 %v5677_v52, %v5676_v9  ;;  %v5679_v63 = vpop.f32.mrb[74].mxu0  ;;  %v5789_v0 = vpop.f32.mrb[73].mxu1 }
 0x1f5   : > { %v5680_v34 = vpop.f32.mrb[75].mxu0  ;;  %v5790_v35 = vadd.f32 %v5789_v0, %v5788_v20  ;;  %v5791_v50 = vpop.f32.mrb[74].mxu1 }
 0x1f6   : > { %v2031_v53 = vadd.f32 %v5678_v62, %v7398_v47  ;;  %v5681_v1 = vadd.f32 %v5680_v34, %v5679_v63  ;;  %v5792_v43 = vpop.f32.mrb[75].mxu1 }
 0x1f7   : > { %v5793_v30 = vadd.f32 %v5792_v43, %v5791_v50 }
 0x1f8   : > { %v2034_v17 = vadd.f32 %v5681_v1, %v7403_v8  ;;  %v7479_v21 = vadd.f32 %v5790_v35, %v2031_v53 }
 0x1fa   : > { %v5682_v37 = vpop.f32.mrb[76].mxu0  ;;  %v7481_v61 = vadd.f32 %v5793_v30, %v2034_v17 }
 0x1fb   : > { %v5683_v49 = vpop.f32.mrb[77].mxu0  ;;  %v5794_v5 = vpop.f32.mrb[76].mxu1 }
 0x1fc   : > { %v5684_v32 = vadd.f32 %v5683_v49, %v5682_v37  ;;  %v5685_v33 = vpop.f32.mrb[78].mxu0  ;;  %v5795_v38 = vpop.f32.mrb[77].mxu1 }
 0x1fd   : > { %v5686_v54 = vpop.f32.mrb[79].mxu0  ;;  %v5796_v58 = vadd.f32 %v5795_v38, %v5794_v5  ;;  %v5797_v47 = vpop.f32.mrb[78].mxu1 }
 0x1fe   : > { %v2039_v2 = vadd.f32 %v5684_v32, %v7408_v7  ;;  %v5687_v41 = vadd.f32 %v5686_v54, %v5685_v33  ;;  %v5798_v23 = vpop.f32.mrb[79].mxu1 }
 0x1ff   : > { %v5799_v15 = vadd.f32 %v5798_v23, %v5797_v47 }
 0x200   : > { %v2042_v8 = vadd.f32 %v5687_v41, %v7413_v46  ;;  %v7485_v55 = vadd.f32 %v5796_v58, %v2039_v2 }
 0x202   : > { %v5688_v10 = vpop.f32.mrb[80].mxu0  ;;  %v7487_v9 = vadd.f32 %v5799_v15, %v2042_v8 }
 0x203   : > { %v5689_v52 = vpop.f32.mrb[81].mxu0  ;;  %v5800_v20 = vpop.f32.mrb[80].mxu1 }
 0x204   : > { %v5690_v62 = vadd.f32 %v5689_v52, %v5688_v10  ;;  %v5691_v63 = vpop.f32.mrb[82].mxu0  ;;  %v5801_v0 = vpop.f32.mrb[81].mxu1 }
 0x205   : > { %v5692_v34 = vpop.f32.mrb[83].mxu0  ;;  %v5802_v35 = vadd.f32 %v5801_v0, %v5800_v20  ;;  %v5803_v7 = vpop.f32.mrb[82].mxu1 }
 0x206   : > { %v2047_v50 = vadd.f32 %v5690_v62, %v7416_v57  ;;  %v5693_v53 = vadd.f32 %v5692_v34, %v5691_v63  ;;  %v5804_v1 = vpop.f32.mrb[83].mxu1 }
 0x207   : > { %v5805_v46 = vadd.f32 %v5804_v1, %v5803_v7 }
 0x208   : > { %v2050_v43 = vadd.f32 %v5693_v53, %v7418_v3  ;;  %v7491_v30 = vadd.f32 %v5802_v35, %v2047_v50 }
 0x20a   : > { %v5694_v17 = vpop.f32.mrb[84].mxu0  ;;  %v7493_v37 = vadd.f32 %v5805_v46, %v2050_v43 }
 0x20b   : > { %v5695_v49 = vpop.f32.mrb[85].mxu0  ;;  %v5806_v5 = vpop.f32.mrb[84].mxu1 }
 0x20c   : > { %v5696_v32 = vadd.f32 %v5695_v49, %v5694_v17  ;;  %v5697_v33 = vpop.f32.mrb[86].mxu0  ;;  %v5807_v38 = vpop.f32.mrb[85].mxu1 }
 0x20d   : > { %v5698_v54 = vpop.f32.mrb[87].mxu0  ;;  %v5808_v58 = vadd.f32 %v5807_v38, %v5806_v5  ;;  %v5809_v57 = vpop.f32.mrb[86].mxu1 }
 0x20e   : > { %v2055_v47 = vadd.f32 %v5696_v32, %v7420_v25  ;;  %v5699_v2 = vadd.f32 %v5698_v54, %v5697_v33  ;;  %v5810_v41 = vpop.f32.mrb[87].mxu1 }
 0x20f   : > { %v5811_v23 = vadd.f32 %v5810_v41, %v5809_v57 }
 0x210   : > { %v2058_v3 = vadd.f32 %v5699_v2, %v7422_v22  ;;  %v7497_v15 = vadd.f32 %v5808_v58, %v2055_v47 }
 0x212   : > { %v5700_v8 = vpop.f32.mrb[88].mxu0  ;;  %v7499_v10 = vadd.f32 %v5811_v23, %v2058_v3 }
 0x213   : > { %v5701_v52 = vpop.f32.mrb[89].mxu0  ;;  %v5812_v20 = vpop.f32.mrb[88].mxu1 }
 0x214   : > { %v5702_v62 = vadd.f32 %v5701_v52, %v5700_v8  ;;  %v5703_v63 = vpop.f32.mrb[90].mxu0  ;;  %v5813_v0 = vpop.f32.mrb[89].mxu1 }
 0x215   : > { %v5704_v34 = vpop.f32.mrb[91].mxu0  ;;  %v5814_v35 = vadd.f32 %v5813_v0, %v5812_v20  ;;  %v5815_v25 = vpop.f32.mrb[90].mxu1 }
 0x216   : > { %v2063_v7 = vadd.f32 %v5702_v62, %v7424_v44  ;;  %v5705_v50 = vadd.f32 %v5704_v34, %v5703_v63  ;;  %v5816_v53 = vpop.f32.mrb[91].mxu1 }
 0x217   : > { %v5817_v22 = vadd.f32 %v5816_v53, %v5815_v25 }
 0x218   : > { %v2066_v1 = vadd.f32 %v5705_v50, %v7426_v18  ;;  %v7503_v46 = vadd.f32 %v5814_v35, %v2063_v7 }
 0x21a   : > { %v5706_v43 = vpop.f32.mrb[92].mxu0  ;;  %v7505_v17 = vadd.f32 %v5817_v22, %v2066_v1 }
 0x21b   : > { %v5707_v49 = vpop.f32.mrb[93].mxu0  ;;  %v5818_v5 = vpop.f32.mrb[92].mxu1 }
 0x21c   : > { %v5708_v32 = vadd.f32 %v5707_v49, %v5706_v43  ;;  %v5709_v33 = vpop.f32.mrb[94].mxu0  ;;  %v5819_v38 = vpop.f32.mrb[93].mxu1 }
 0x21d   : > { %v5710_v54 = vpop.f32.mrb[95].mxu0  ;;  %v5820_v58 = vadd.f32 %v5819_v38, %v5818_v5  ;;  %v5821_v44 = vpop.f32.mrb[94].mxu1 }
 0x21e   : > { %v2071_v57 = vadd.f32 %v5708_v32, %v7428_v24  ;;  %v5711_v47 = vadd.f32 %v5710_v54, %v5709_v33  ;;  %v5822_v2 = vpop.f32.mrb[95].mxu1 }
 0x21f   : > { %v5823_v41 = vadd.f32 %v5822_v2, %v5821_v44 }
 0x220   : > { %v2074_v18 = vadd.f32 %v5711_v47, %v7430_v45  ;;  %v7509_v23 = vadd.f32 %v5820_v58, %v2071_v57 }
 0x222   : > { %v5712_v3 = vpop.f32.mrb[96].mxu0  ;;  %v7511_v8 = vadd.f32 %v5823_v41, %v2074_v18 }
 0x223   : > { %v5713_v52 = vpop.f32.mrb[97].mxu0  ;;  %v5824_v20 = vpop.f32.mrb[96].mxu1 }
 0x224   : > { %v5714_v62 = vadd.f32 %v5713_v52, %v5712_v3  ;;  %v5715_v63 = vpop.f32.mrb[98].mxu0  ;;  %v5825_v0 = vpop.f32.mrb[97].mxu1 }
 0x225   : > { %v5716_v13 = vpop.f32.mrb[99].mxu0  ;;  %v5826_v42 = vadd.f32 %v5825_v0, %v5824_v20  ;;  %v5827_v34 = vpop.f32.mrb[98].mxu1 }
 0x226   : > { %v2079_v24 = vadd.f32 %v5714_v62, %v7432_v29  ;;  %v5717_v35 = vadd.f32 %v5716_v13, %v5715_v63  ;;  %v5828_v25 = vpop.f32.mrb[99].mxu1 }
 0x227   : > { %v5829_v7 = vadd.f32 %v5828_v25, %v5827_v34 }
 0x228   : > { %v2082_v45 = vadd.f32 %v5717_v35, %v7434_v28  ;;  %v7515_v50 = vadd.f32 %v5826_v42, %v2079_v24 }
 0x22a   : > { %v5718_v53 = vpop.f32.mrb[100].mxu0  ;;  %v7517_v22 = vadd.f32 %v5829_v7, %v2082_v45 }
 0x22b   : > { %v5719_v1 = vpop.f32.mrb[101].mxu0  ;;  %v5830_v43 = vpop.f32.mrb[100].mxu1 }
 0x22c   : > { %v5720_v49 = vadd.f32 %v5719_v1, %v5718_v53  ;;  %v5721_v5 = vpop.f32.mrb[102].mxu0  ;;  %v5831_v32 = vpop.f32.mrb[101].mxu1 }
 0x22d   : > { %v5722_v33 = vpop.f32.mrb[103].mxu0  ;;  %v5832_v38 = vadd.f32 %v5831_v32, %v5830_v43  ;;  %v5833_v54 = vpop.f32.mrb[102].mxu1 }
 0x22e   : > { %v2087_v29 = vadd.f32 %v5720_v49, %v7436_v11  ;;  %v5723_v58 = vadd.f32 %v5722_v33, %v5721_v5  ;;  %v5834_v44 = vpop.f32.mrb[103].mxu1 }
 0x22f   : > { %v5835_v57 = vadd.f32 %v5834_v44, %v5833_v54 }
 0x230   : > { %v2090_v28 = vadd.f32 %v5723_v58, %v7438_v36  ;;  %v7521_v47 = vadd.f32 %v5832_v38, %v2087_v29 }
 0x232   : > { %v5724_v2 = vpop.f32.mrb[104].mxu0  ;;  %v7523_v41 = vadd.f32 %v5835_v57, %v2090_v28 }
 0x233   : > { %v5725_v18 = vpop.f32.mrb[105].mxu0  ;;  %v5836_v3 = vpop.f32.mrb[104].mxu1 }
 0x234   : > { %v5726_v52 = vadd.f32 %v5725_v18, %v5724_v2  ;;  %v5727_v20 = vpop.f32.mrb[106].mxu0  ;;  %v5837_v62 = vpop.f32.mrb[105].mxu1 }
 0x235   : > { %v5728_v63 = vpop.f32.mrb[107].mxu0  ;;  %v5838_v0 = vadd.f32 %v5837_v62, %v5836_v3  ;;  %v5839_v13 = vpop.f32.mrb[106].mxu1 }
 0x236   : > { %v2095_v11 = vadd.f32 %v5726_v52, %v7440_v6  ;;  %v5729_v42 = vadd.f32 %v5728_v63, %v5727_v20  ;;  %v5840_v34 = vpop.f32.mrb[107].mxu1 }
 0x237   : > { %v5841_v24 = vadd.f32 %v5840_v34, %v5839_v13  ;;  %v6623_v34 = vld [vmem:[#allocation9 + $0xc0] sm:$0xff]  }
 0x238   : > { %v2098_v36 = vadd.f32 %v5729_v42, %v7442_v4  ;;  %v7527_v35 = vadd.f32 %v5838_v0, %v2095_v11  ;;  %6008 = vmatprep.subr.bf16.mxu0 %v6623_v34 }
 0x23a   : > { %v5730_v25 = vpop.f32.mrb[108].mxu0  ;;  %v7529_v7 = vadd.f32 %v5841_v24, %v2098_v36 }
 0x23b   : > { %v5731_v45 = vpop.f32.mrb[109].mxu0  ;;  %v5842_v53 = vpop.f32.mrb[108].mxu1 }
 0x23c   : > { %v5732_v1 = vadd.f32 %v5731_v45, %v5730_v25  ;;  %v5733_v43 = vpop.f32.mrb[110].mxu0  ;;  %v5843_v49 = vpop.f32.mrb[109].mxu1  ;;  %v6624_v25 = vld [vmem:[#allocation9 + $0x80] sm:$0xff]  }
 0x23d   : > { %v5734_v5 = vpop.f32.mrb[111].mxu0  ;;  %v5844_v32 = vadd.f32 %v5843_v49, %v5842_v53  ;;  %v5845_v33 = vpop.f32.mrb[110].mxu1  ;;  %6009 = vmatpush3.bf16.msra.mxu0 %v6624_v25  ;;  %v6630_v25 = vld [vmem:[#allocation9 + $0x98] sm:$0xff]  }
 0x23e   : > { %v2103_v6 = vadd.f32 %v5732_v1, %v7444_v59  ;;  %v5735_v38 = vadd.f32 %v5734_v5, %v5733_v43  ;;  %v5846_v54 = vpop.f32.mrb[111].mxu1 }
 0x23f   : > { %v5847_v29 = vadd.f32 %v5846_v54, %v5845_v33  ;;  %v6625_v33 = vld [vmem:[#allocation9 + $0xc8] sm:$0xff]  }
 0x240   : > { %v2106_v4 = vadd.f32 %v5735_v38, %v7447_v26  ;;  %v7533_v58 = vadd.f32 %v5844_v32, %v2103_v6  ;;  %v6626_v54 = vld [vmem:[#allocation9 + $0x88] sm:$0xff]   ;;  %6010 = vmatprep.subr.bf16.mxu0 %v6625_v33  ;;  %v6634_v33 = vld [vmem:[#allocation9 + $0xa0] sm:$0xff]  }
 0x241   : > { %6011 = vmatpush3.bf16.msra.mxu0 %v6626_v54  ;;  %v6635_v54 = vld [vmem:[#allocation9 + $0xe8] sm:$0xff]  }
 0x242   : > { %v5736_v44 = vpop.f32.mrb[112].mxu0  ;;  %v7535_v57 = vadd.f32 %v5847_v29, %v2106_v4 }
 0x243   : > { %v5737_v28 = vpop.f32.mrb[113].mxu0  ;;  %v5848_v2 = vpop.f32.mrb[112].mxu1 }
 0x244   : > { %v5738_v18 = vadd.f32 %v5737_v28, %v5736_v44  ;;  %v5739_v3 = vpop.f32.mrb[114].mxu0  ;;  %v5849_v52 = vpop.f32.mrb[113].mxu1  ;;  %v6627_v28 = vld [vmem:[#allocation9 + $0xd0] sm:$0xff]  }
 0x245   : > { %v5740_v20 = vpop.f32.mrb[115].mxu0  ;;  %v5850_v62 = vadd.f32 %v5849_v52, %v5848_v2  ;;  %v5851_v63 = vpop.f32.mrb[114].mxu1  ;;  %6012 = vmatprep.subr.bf16.mxu0 %v6627_v28 }
 0x246   : > { %v2111_v59 = vadd.f32 %v5738_v18, %v7449_v39  ;;  %v5741_v0 = vadd.f32 %v5740_v20, %v5739_v3  ;;  %v5852_v13 = vpop.f32.mrb[115].mxu1  ;;  %v6628_v3 = vld [vmem:[#allocation9 + $0x90] sm:$0xff]  }
 0x247   : > { %v5853_v11 = vadd.f32 %v5852_v13, %v5851_v63  ;;  %6013 = vmatpush3.bf16.msra.mxu0 %v6628_v3 }
 0x248   : > { %v2114_v26 = vadd.f32 %v5741_v0, %v7451_v27  ;;  %v7539_v42 = vadd.f32 %v5850_v62, %v2111_v59 }
 0x24a   : > { %v5742_v24 = vpop.f32.mrb[116].mxu0  ;;  %v7541_v36 = vadd.f32 %v5853_v11, %v2114_v26  ;;  %v6629_v11 = vld [vmem:[#allocation9 + $0xd8] sm:$0xff]  }
 0x24b   : > { %v5743_v45 = vpop.f32.mrb[117].mxu0  ;;  %v5854_v53 = vpop.f32.mrb[116].mxu1  ;;  %6014 = vmatprep.subr.bf16.mxu0 %v6629_v11 }
 0x24c   : > { %v5744_v1 = vadd.f32 %v5743_v45, %v5742_v24  ;;  %v5745_v43 = vpop.f32.mrb[118].mxu0  ;;  %v5855_v49 = vpop.f32.mrb[117].mxu1  ;;  %v6617_v24 = vld [vmem:[#allocation9 + $0x60] sm:$0xff]   ;;  %6015 = vmatpush3.bf16.msra.mxu0 %v6630_v25  ;;  %v6639_v25 = vld [vmem:[#allocation9 + $0xf8] sm:$0xff]  }
 0x24d   : > { %v5746_v39 = vpop.f32.mrb[119].mxu0  ;;  %v5856_v5 = vadd.f32 %v5855_v49, %v5854_v53  ;;  %v5857_v32 = vpop.f32.mrb[118].mxu1  ;;  %5904 = vmatprep.subr.bf16.mxu1 %v6617_v24  ;;  %v6619_v49 = vld [vmem:[#allocation9 + $0x68] sm:$0xff]  }
 0x24e   : > { %v2119_v27 = vadd.f32 %v5744_v1, %v7453_v14  ;;  %v5747_v6 = vadd.f32 %v5746_v39, %v5745_v43  ;;  %v5858_v38 = vpop.f32.mrb[119].mxu1  ;;  %v6618_v43 = vld [vmem:[#allocation9 + $0x20] sm:$0xff]  }
 0x24f   : > { %v5859_v29 = vadd.f32 %v5858_v38, %v5857_v32  ;;  %5905 = vmatpush3.bf16.msra.mxu1 %v6618_v43  ;;  %v6620_v32 = vld [vmem:[#allocation9 + $0x28] sm:$0xff]   ;;  %v6621_v38 = vld [vmem:[#allocation9 + $0x70] sm:$0xff]   ;;  %v6641_v43 = vld [vmem:[#allocation9 + $0x140] sm:$0xff]  }
 0x250   : > { %v2122_v4 = vadd.f32 %v5747_v6, %v7455_v31  ;;  %v7545_v44 = vadd.f32 %v5856_v5, %v2119_v27  ;;  %5906 = vmatprep.subr.bf16.mxu1 %v6619_v49 }
 0x252   : > { %v5748_v2 = vpop.f32.mrb[120].mxu0  ;;  %v7547_v18 = vadd.f32 %v5859_v29, %v2122_v4 }
 0x253   : > { %v5749_v52 = vpop.f32.mrb[121].mxu0  ;;  %v5860_v20 = vpop.f32.mrb[120].mxu1  ;;  %5907 = vmatpush3.bf16.msra.mxu1 %v6620_v32 }
 0x254   : > { %v5750_v62 = vadd.f32 %v5749_v52, %v5748_v2  ;;  %v5751_v14 = vpop.f32.mrb[122].mxu0  ;;  %v5861_v63 = vpop.f32.mrb[121].mxu1  ;;  %v6636_v52 = vld [vmem:[#allocation9 + $0xa8] sm:$0xff]   ;;  %5908 = vmatprep.subr.bf16.mxu1 %v6621_v38 }
 0x255   : > { %v5752_v59 = vpop.f32.mrb[123].mxu0  ;;  %v5862_v0 = vadd.f32 %v5861_v63, %v5860_v20  ;;  %v5863_v13 = vpop.f32.mrb[122].mxu1  ;;  %v6622_v63 = vld [vmem:[#allocation9 + $0x30] sm:$0xff]  }
 0x256   : > { %v2127_v31 = vadd.f32 %v5750_v62, %v7457_v48  ;;  %v5753_v26 = vadd.f32 %v5752_v59, %v5751_v14  ;;  %v5864_v34 = vpop.f32.mrb[123].mxu1  ;;  %v6633_v48 = vld [vmem:[#allocation9 + $0xe0] sm:$0xff]   ;;  %v6637_v59 = vld [vmem:[#allocation9 + $0xf0] sm:$0xff]  }
 0x257   : > { %v5865_v45 = vadd.f32 %v5864_v34, %v5863_v13  ;;  %6016 = vmatprep.subr.bf16.mxu0 %v6633_v48  ;;  %v6631_v13 = vld [vmem:[#allocation9 + $0x78] sm:$0xff]   ;;  %5909 = vmatpush3.bf16.msra.mxu1 %v6622_v63 }
 0x258   : > { %v2130_v53 = vadd.f32 %v5753_v26, %v7459_v51  ;;  %v7551_v1 = vadd.f32 %v5862_v0, %v2127_v31  ;;  %6017 = vmatpush3.bf16.msra.mxu0 %v6634_v33  ;;  %v6638_v26 = vld [vmem:[#allocation9 + $0xb0] sm:$0xff]   ;;  %5910 = vmatprep.subr.bf16.mxu1 %v6631_v13  ;;  %v6640_v48 = vld [vmem:[#allocation9 + $0xb8] sm:$0xff]  }
 0x259   : > { %6018 = vmatprep.subr.bf16.mxu0 %v6635_v54 }
 0x25a   : > { %v5754_v39 = vpop.f32.mrb[124].mxu0  ;;  %v7553_v5 = vadd.f32 %v5865_v45, %v2130_v53 }
 0x25b   : > { %v5755_v27 = vpop.f32.mrb[125].mxu0  ;;  %v5866_v6 = vpop.f32.mrb[124].mxu1 }
 0x25c   : > { %v5756_v29 = vadd.f32 %v5755_v27, %v5754_v39  ;;  %v5757_v51 = vpop.f32.mrb[126].mxu0  ;;  %v5867_v4 = vpop.f32.mrb[125].mxu1  ;;  %6019 = vmatpush3.bf16.msra.mxu0 %v6636_v52 }
 0x25d   : > { %v5758_v28 = vpop.f32.mrb[127].mxu0  ;;  %v5868_v2 = vadd.f32 %v5867_v4, %v5866_v6  ;;  %v5869_v3 = vpop.f32.mrb[126].mxu1  ;;  %6020 = vmatprep.subr.bf16.mxu0 %v6637_v59 }
 0x25e   : > { %v2135_v20 = vadd.f32 %v5756_v29, %v7461_v40  ;;  %v5759_v62 = vadd.f32 %v5758_v28, %v5757_v51  ;;  %v5870_v14 = vpop.f32.mrb[127].mxu1  ;;  %v6632_v40 = vld [vmem:[#allocation9 + $0x38] sm:$0xff]  }
 0x25f   : > { %v5871_v0 = vadd.f32 %v5870_v14, %v5869_v3  ;;  %5911 = vmatpush3.bf16.msra.mxu1 %v6632_v40 }
 0x260   : > { %v2138_v11 = vadd.f32 %v5759_v62, %v7463_v19  ;;  %v7557_v31 = vadd.f32 %v5868_v2, %v2135_v20  ;;  %6021 = vmatpush3.bf16.msra.mxu0 %v6638_v26  ;;  %6120 = vmatprep.subr.bf16.mxu1 %v6641_v43 }
 0x261   : > { %6022 = vmatprep.subr.bf16.mxu0 %v6639_v25 }
 0x262   : > { %v6386_v34 = vpop.f32.mrb[128].mxu0  ;;  %v7559_v24 = vadd.f32 %v5871_v0, %v2138_v11 }
 0x263   : > { %v7562_v45 = vadd.f32 %v6386_v34, %v7473_v56  ;;  %v2336_v53 = vpop.f32.mrb[129].mxu0 }
 0x264   : > { %v7565_v49 = vadd.f32 %v2336_v53, %v7467_v60  ;;  %v6387_v19 = vpop.f32.mrb[130].mxu0  ;;  %6023 = vmatpush3.bf16.msra.mxu0 %v6640_v48 }
 0x265   : > { %v7568_v39 = vadd.f32 %v6387_v19, %v7475_v12  ;;  %v2339_v32 = vpop.f32.mrb[131].mxu0  ;;  %v2503_v12 = vmul.f32 %v7562_v45, %v7562_v45 }
 0x266   : > { %v7571_v33 = vadd.f32 %v2339_v32, %v7469_v16  ;;  %v2501_v56 = vmul.f32 %v7565_v49, %v7565_v49 }
 0x267   : > { %v2504_v51 = vmul.f32 %v7568_v39, %v7568_v39 }
 0x268   : > { %v2463_v60 = vadd.f32 %v7571_v33, %v7565_v49  ;;  %v2502_v27 = vmul.f32 %v7571_v33, %v7571_v33 }
 0x26a   : > { %v2464_v6 = vadd.f32 %v2463_v60, %v7562_v45  ;;  %v2533_v16 = vadd.f32 %v2502_v27, %v2501_v56  ;;  %v6390_v38 = vpop.f32.mrb[132].mxu0 }
 0x26b   : > { %v7583_v54 = vadd.f32 %v6390_v38, %v7485_v55  ;;  %v2352_v29 = vpop.f32.mrb[133].mxu0 }
 0x26c   : > { %v2534_v4 = vadd.f32 %v2533_v16, %v2503_v12  ;;  %v7588_v28 = vadd.f32 %v2352_v29, %v7479_v21  ;;  %v2465_v2 = vadd.f32 %v2464_v6, %v7568_v39  ;;  %v6391_v3 = vpop.f32.mrb[134].mxu0 }
 0x26d   : > { %v7592_v52 = vadd.f32 %v6391_v3, %v7487_v9  ;;  %v2355_v20 = vpop.f32.mrb[135].mxu0  ;;  %v2507_v9 = vmul.f32 %v7583_v54, %v7583_v54 }
 0x26e   : > { %v2466_v62 = vadd.f32 %v2465_v2, %v7588_v28  ;;  %v2505_v55 = vmul.f32 %v7588_v28, %v7588_v28  ;;  %v2535_v14 = vadd.f32 %v2534_v4, %v2504_v51  ;;  %v7598_v63 = vadd.f32 %v2355_v20, %v7481_v61 }
 0x26f   : > { %v2508_v61 = vmul.f32 %v7592_v52, %v7592_v52 }
 0x270   : > { %v2536_v59 = vadd.f32 %v2535_v14, %v2505_v55  ;;  %v2467_v21 = vadd.f32 %v2466_v62, %v7598_v63  ;;  %v2506_v0 = vmul.f32 %v7598_v63, %v7598_v63 }
 0x272   : > { %v2468_v13 = vadd.f32 %v2467_v21, %v7583_v54  ;;  %v2537_v11 = vadd.f32 %v2536_v59, %v2506_v0  ;;  %v6394_v26 = vpop.f32.mrb[136].mxu0 }
 0x273   : > { %v7607_v34 = vadd.f32 %v6394_v26, %v7497_v15  ;;  %v2368_v40 = vpop.f32.mrb[137].mxu0 }
 0x274   : > { %v2538_v25 = vadd.f32 %v2537_v11, %v2507_v9  ;;  %v7612_v53 = vadd.f32 %v2368_v40, %v7491_v30  ;;  %v2469_v43 = vadd.f32 %v2468_v13, %v7592_v52  ;;  %v6395_v19 = vpop.f32.mrb[138].mxu0 }
 0x275   : > { %v7616_v32 = vadd.f32 %v6395_v19, %v7499_v10  ;;  %v2371_v48 = vpop.f32.mrb[139].mxu0  ;;  %v2511_v10 = vmul.f32 %v7607_v34, %v7607_v34 }
 0x276   : > { %v2470_v56 = vadd.f32 %v2469_v43, %v7612_v53  ;;  %v2509_v15 = vmul.f32 %v7612_v53, %v7612_v53  ;;  %v2539_v60 = vadd.f32 %v2538_v25, %v2508_v61  ;;  %v7622_v27 = vadd.f32 %v2371_v48, %v7493_v37 }
 0x277   : > { %v2512_v37 = vmul.f32 %v7616_v32, %v7616_v32 }
 0x278   : > { %v2540_v12 = vadd.f32 %v2539_v60, %v2509_v15  ;;  %v2471_v30 = vadd.f32 %v2470_v56, %v7622_v27  ;;  %v2510_v6 = vmul.f32 %v7622_v27, %v7622_v27 }
 0x27a   : > { %v2472_v16 = vadd.f32 %v2471_v30, %v7607_v34  ;;  %v2541_v38 = vadd.f32 %v2540_v12, %v2510_v6  ;;  %v6398_v29 = vpop.f32.mrb[140].mxu0 }
 0x27b   : > { %v7631_v51 = vadd.f32 %v6398_v29, %v7509_v23  ;;  %v2384_v4 = vpop.f32.mrb[141].mxu0 }
 0x27c   : > { %v2542_v2 = vadd.f32 %v2541_v38, %v2511_v10  ;;  %v7636_v3 = vadd.f32 %v2384_v4, %v7503_v46  ;;  %v2473_v20 = vadd.f32 %v2472_v16, %v7616_v32  ;;  %v6399_v62 = vpop.f32.mrb[142].mxu0 }
 0x27d   : > { %v7640_v55 = vadd.f32 %v6399_v62, %v7511_v8  ;;  %v2387_v14 = vpop.f32.mrb[143].mxu0  ;;  %v2515_v8 = vmul.f32 %v7631_v51, %v7631_v51 }
 0x27e   : > { %v2474_v59 = vadd.f32 %v2473_v20, %v7636_v3  ;;  %v2513_v23 = vmul.f32 %v7636_v3, %v7636_v3  ;;  %v2543_v21 = vadd.f32 %v2542_v2, %v2512_v37  ;;  %v7646_v0 = vadd.f32 %v2387_v14, %v7505_v17 }
 0x27f   : > { %v2516_v17 = vmul.f32 %v7640_v55, %v7640_v55 }
 0x280   : > { %v2544_v9 = vadd.f32 %v2543_v21, %v2513_v23  ;;  %v2475_v46 = vadd.f32 %v2474_v59, %v7646_v0  ;;  %v2514_v13 = vmul.f32 %v7646_v0, %v7646_v0 }
 0x282   : > { %v2476_v11 = vadd.f32 %v2475_v46, %v7631_v51  ;;  %v2545_v26 = vadd.f32 %v2544_v9, %v2514_v13  ;;  %v6402_v40 = vpop.f32.mrb[144].mxu0 }
 0x283   : > { %v7655_v61 = vadd.f32 %v6402_v40, %v7521_v47  ;;  %v2400_v25 = vpop.f32.mrb[145].mxu0 }
 0x284   : > { %v2546_v43 = vadd.f32 %v2545_v26, %v2515_v8  ;;  %v7660_v19 = vadd.f32 %v2400_v25, %v7515_v50  ;;  %v2477_v48 = vadd.f32 %v2476_v11, %v7640_v55  ;;  %v6403_v56 = vpop.f32.mrb[146].mxu0 }
 0x285   : > { %v7664_v15 = vadd.f32 %v6403_v56, %v7523_v41  ;;  %v2403_v60 = vpop.f32.mrb[147].mxu0  ;;  %v2519_v41 = vmul.f32 %v7655_v61, %v7655_v61 }
 0x286   : > { %v2478_v12 = vadd.f32 %v2477_v48, %v7660_v19  ;;  %v2517_v47 = vmul.f32 %v7660_v19, %v7660_v19  ;;  %v2547_v30 = vadd.f32 %v2546_v43, %v2516_v17  ;;  %v7670_v6 = vadd.f32 %v2403_v60, %v7517_v22 }
 0x287   : > { %v2520_v22 = vmul.f32 %v7664_v15, %v7664_v15 }
 0x288   : > { %v2548_v10 = vadd.f32 %v2547_v30, %v2517_v47  ;;  %v2479_v50 = vadd.f32 %v2478_v12, %v7670_v6  ;;  %v2518_v16 = vmul.f32 %v7670_v6, %v7670_v6 }
 0x28a   : > { %v2480_v38 = vadd.f32 %v2479_v50, %v7655_v61  ;;  %v2549_v29 = vadd.f32 %v2548_v10, %v2518_v16  ;;  %v6406_v4 = vpop.f32.mrb[148].mxu0 }
 0x28b   : > { %v7679_v37 = vadd.f32 %v6406_v4, %v7533_v58  ;;  %v2416_v2 = vpop.f32.mrb[149].mxu0 }
 0x28c   : > { %v2550_v20 = vadd.f32 %v2549_v29, %v2519_v41  ;;  %v7684_v62 = vadd.f32 %v2416_v2, %v7527_v35  ;;  %v2481_v14 = vadd.f32 %v2480_v38, %v7664_v15  ;;  %v6407_v59 = vpop.f32.mrb[150].mxu0 }
 0x28d   : > { %v7688_v23 = vadd.f32 %v6407_v59, %v7535_v57  ;;  %v2419_v21 = vpop.f32.mrb[151].mxu0  ;;  %v2523_v57 = vmul.f32 %v7679_v37, %v7679_v37 }
 0x28e   : > { %v2482_v9 = vadd.f32 %v2481_v14, %v7684_v62  ;;  %v2521_v58 = vmul.f32 %v7684_v62, %v7684_v62  ;;  %v2551_v46 = vadd.f32 %v2550_v20, %v2520_v22  ;;  %v7694_v13 = vadd.f32 %v2419_v21, %v7529_v7 }
 0x28f   : > { %v2524_v7 = vmul.f32 %v7688_v23, %v7688_v23 }
 0x290   : > { %v2552_v8 = vadd.f32 %v2551_v46, %v2521_v58  ;;  %v2483_v35 = vadd.f32 %v2482_v9, %v7694_v13  ;;  %v2522_v11 = vmul.f32 %v7694_v13, %v7694_v13 }
 0x292   : > { %v2484_v26 = vadd.f32 %v2483_v35, %v7679_v37  ;;  %v2553_v40 = vadd.f32 %v2552_v8, %v2522_v11  ;;  %v6410_v25 = vpop.f32.mrb[152].mxu0 }
 0x293   : > { %v7703_v17 = vadd.f32 %v6410_v25, %v7545_v44  ;;  %v2432_v43 = vpop.f32.mrb[153].mxu0 }
 0x294   : > { %v2554_v48 = vadd.f32 %v2553_v40, %v2523_v57  ;;  %v7708_v56 = vadd.f32 %v2432_v43, %v7539_v42  ;;  %v2485_v60 = vadd.f32 %v2484_v26, %v7688_v23  ;;  %v6411_v12 = vpop.f32.mrb[154].mxu0  ;;  %v6650_v43 = vld [vmem:[#allocation9 + $0x1c0] sm:$0xff]  }
 0x295   : > { %v7712_v47 = vadd.f32 %v6411_v12, %v7547_v18  ;;  %v2435_v30 = vpop.f32.mrb[155].mxu0  ;;  %v2527_v18 = vmul.f32 %v7703_v17, %v7703_v17  ;;  %6232 = vmatprep.subr.bf16.mxu0 %v6650_v43 }
 0x296   : > { %v2486_v10 = vadd.f32 %v2485_v60, %v7708_v56  ;;  %v2525_v44 = vmul.f32 %v7708_v56, %v7708_v56  ;;  %v2555_v50 = vadd.f32 %v2554_v48, %v2524_v7  ;;  %v7718_v16 = vadd.f32 %v2435_v30, %v7541_v36 }
 0x297   : > { %v2528_v36 = vmul.f32 %v7712_v47, %v7712_v47 }
 0x298   : > { %v2556_v41 = vadd.f32 %v2555_v50, %v2525_v44  ;;  %v2487_v42 = vadd.f32 %v2486_v10, %v7718_v16  ;;  %v2526_v38 = vmul.f32 %v7718_v16, %v7718_v16 }
 0x29a   : > { %v2488_v29 = vadd.f32 %v2487_v42, %v7703_v17  ;;  %v2557_v4 = vadd.f32 %v2556_v41, %v2526_v38  ;;  %v6414_v2 = vpop.f32.mrb[156].mxu0 }
 0x29b   : > { %v7727_v22 = vadd.f32 %v6414_v2, %v7557_v31  ;;  %v2448_v20 = vpop.f32.mrb[157].mxu0 }
 0x29c   : > { %v2558_v14 = vadd.f32 %v2557_v4, %v2527_v18  ;;  %v7732_v59 = vadd.f32 %v2448_v20, %v7551_v1  ;;  %v2489_v21 = vadd.f32 %v2488_v29, %v7712_v47  ;;  %v6415_v9 = vpop.f32.mrb[158].mxu0 }
 0x29d   : > { %v7736_v58 = vadd.f32 %v6415_v9, %v7559_v24  ;;  %v2451_v46 = vpop.f32.mrb[159].mxu0  ;;  %v2531_v24 = vmul.f32 %v7727_v22, %v7727_v22 }
 0x29e   : > { %v2490_v8 = vadd.f32 %v2489_v21, %v7732_v59  ;;  %v2529_v31 = vmul.f32 %v7732_v59, %v7732_v59  ;;  %v2559_v35 = vadd.f32 %v2558_v14, %v2528_v36  ;;  %v7742_v11 = vadd.f32 %v2451_v46, %v7553_v5 }
 0x29f   : > { %v2532_v7 = vmul.f32 %v7736_v58, %v7736_v58 }
 0x2a0   : > { %v2560_v57 = vadd.f32 %v2559_v35, %v2529_v31  ;;  %v2491_v1 = vadd.f32 %v2490_v8, %v7742_v11  ;;  %v2530_v26 = vmul.f32 %v7742_v11, %v7742_v11 }
 0x2a2   : > { %v2492_v40 = vadd.f32 %v2491_v1, %v7727_v22  ;;  %v2561_v25 = vadd.f32 %v2560_v57, %v2530_v26 }
 0x2a4   : > { %v2493_v48 = vadd.f32 %v2492_v40, %v7736_v58  ;;  %v2562_v5 = vadd.f32 %v2561_v25, %v2531_v24 }
 0x2a6   : > { %v2494_v60 = vrot.slane %v2493_v48, 4  ;;  %v2563_v12 = vadd.f32 %v2562_v5, %v2532_v7 }
 0x2a8   : > { %v2495_v30 = vadd.f32 %v2494_v60, %v2493_v48  ;;  %v2564_v10 = vrot.slane %v2563_v12, 4 }
 0x2aa   : > { %v2496_v44 = vrot.slane %v2495_v30, 2  ;;  %v2565_v50 = vadd.f32 %v2564_v10, %v2563_v12 }
 0x2ac   : > { %v2497_v41 = vadd.f32 %v2496_v44, %v2495_v30  ;;  %v2566_v42 = vrot.slane %v2565_v50, 2 }
 0x2ae   : > { %v2498_v38 = vrot.slane %v2497_v41, 1  ;;  %v2567_v18 = vadd.f32 %v2566_v42, %v2565_v50 }
 0x2b0   : > { %v2499_v29 = vadd.f32 %v2498_v38, %v2497_v41  ;;  %v2568_v4 = vrot.slane %v2567_v18, 1 }
 0x2b2   : > { %v7753_v2 = vmul.f32 0.00390625, %v2499_v29  ;;  %v2569_v20 = vadd.f32 %v2568_v4, %v2567_v18 }
 0x2b4   : > { %v2570_v36 = vmul.f32 0.00390625, %v2569_v20  ;;  %v2571_v14 = vmul.f32 %v7753_v2, %v7753_v2  ;;  %v2603_v21 = vsub.f32 %v7742_v11, %v7753_v2  ;;  %v2583_v46 = vsub.f32 %v7622_v27, %v7753_v2 }
 0x2b5   : > { %v2585_v8 = vsub.f32 %v7616_v32, %v7753_v2  ;;  %v2586_v35 = vsub.f32 %v7636_v3, %v7753_v2  ;;  %v2587_v57 = vsub.f32 %v7646_v0, %v7753_v2  ;;  %v2588_v1 = vsub.f32 %v7631_v51, %v7753_v2 }
 0x2b6   : > { %v2572_v9 = vsub.f32 %v2570_v36, %v2571_v14  ;;  %v2589_v11 = vsub.f32 %v7640_v55, %v7753_v2  ;;  %v2590_v26 = vsub.f32 %v7660_v19, %v7753_v2  ;;  %v2591_v27 = vsub.f32 %v7670_v6, %v7753_v2 }
 0x2b7   : > { %v2592_v32 = vsub.f32 %v7655_v61, %v7753_v2  ;;  %v2593_v3 = vsub.f32 %v7664_v15, %v7753_v2  ;;  %v2594_v0 = vsub.f32 %v7684_v62, %v7753_v2  ;;  %v2595_v51 = vsub.f32 %v7694_v13, %v7753_v2 }
 0x2b8   : > { %v2573_v31 = vmax.f32 %v2572_v9, 0.0  ;;  %v2596_v55 = vsub.f32 %v7679_v37, %v7753_v2  ;;  %v2597_v19 = vsub.f32 %v7688_v23, %v7753_v2  ;;  %v2598_v6 = vsub.f32 %v7708_v56, %v7753_v2 }
 0x2b9   : > { %v2599_v61 = vsub.f32 %v7718_v16, %v7753_v2  ;;  %v2600_v15 = vsub.f32 %v7703_v17, %v7753_v2  ;;  %v2601_v62 = vsub.f32 %v7712_v47, %v7753_v2  ;;  %v2602_v13 = vsub.f32 %v7732_v59, %v7753_v2 }
 0x2ba   : > { %v2606_v24 = vadd.f32 1e-05, %v2573_v31  ;;  %v2604_v37 = vsub.f32 %v7727_v22, %v7753_v2  ;;  %v2605_v23 = vsub.f32 %v7736_v58, %v7753_v2  ;;  %v2574_v56 = vsub.f32 %v7565_v49, %v7753_v2 }
 0x2bb   : > { %v2575_v16 = vsub.f32 %v7571_v33, %v7753_v2  ;;  %v2576_v17 = vsub.f32 %v7562_v45, %v7753_v2  ;;  %v2577_v47 = vsub.f32 %v7568_v39, %v7753_v2  ;;  %v2578_v59 = vsub.f32 %v7588_v28, %v7753_v2 }
 0x2bc   : > { %6681 = vrsqrt.f32 %v2606_v24  ;;  %v2579_v22 = vsub.f32 %v7598_v63, %v7753_v2  ;;  %v2580_v58 = vsub.f32 %v7583_v54, %v7753_v2  ;;  %v2581_v49 = vsub.f32 %v7592_v52, %v7753_v2 }
 0x2bd   : > { %v2582_v33 = vsub.f32 %v7612_v53, %v7753_v2  ;;  %v2584_v45 = vsub.f32 %v7607_v34, %v7753_v2 }
 0x2c6   : > { %v6682_v40 = vpop.eup %6681 }
 0x2c7   : > { %v2637_v39 = vmul.f32 %v6682_v40, %v2603_v21  ;;  %v7821_v25 = vmul.f32 %v6682_v40, %v2574_v56  ;;  %v7823_v28 = vmul.f32 %v6682_v40, %v2575_v16  ;;  %v2610_v43 = vmul.f32 %v6682_v40, %v2576_v17 }
 0x2c8   : > { %v2611_v63 = vmul.f32 %v6682_v40, %v2577_v47  ;;  %v7825_v7 = vmul.f32 %v6682_v40, %v2578_v59  ;;  %v7827_v48 = vmul.f32 %v6682_v40, %v2579_v22  ;;  %v7829_v54 = vmul.f32 %v6682_v40, %v2580_v58 }
 0x2c9   : > { %v2669_v52 = vmax.f32 %v2637_v39, 0.0  ;;  %v7831_v5 = vmul.f32 %v6682_v40, %v2581_v49  ;;  %v7833_v53 = vmul.f32 %v6682_v40, %v2582_v33  ;;  %v7835_v60 = vmul.f32 %v6682_v40, %v2583_v46 }
 0x2ca   : > { %v7837_v34 = vmul.f32 %v6682_v40, %v2584_v45  ;;  %v7839_v12 = vmul.f32 %v6682_v40, %v2585_v8  ;;  %v7841_v30 = vmul.f32 %v6682_v40, %v2586_v35  ;;  %v7843_v10 = vmul.f32 %v6682_v40, %v2587_v57 }
 0x2cb   : > { %2701 = vst [vmem:[#allocation2 + $0x171] sm:$0xff] %v2669_v52  ;;  %2707 = vst [vmem:[#allocation2 + $0x1a1] sm:$0xff] %v2669_v52  ;;  %v7845_v44 = vmul.f32 %v6682_v40, %v2588_v1  ;;  %v7847_v50 = vmul.f32 %v6682_v40, %v2589_v11  ;;  %v7849_v41 = vmul.f32 %v6682_v40, %v2590_v26  ;;  %v2640_v35 = vmax.f32 %v7821_v25, 0.0 }
 0x2cc   : > { %v7851_v42 = vmul.f32 %v6682_v40, %v2591_v27  ;;  %v7853_v38 = vmul.f32 %v6682_v40, %v2592_v32  ;;  %v7855_v18 = vmul.f32 %v6682_v40, %v2593_v3  ;;  %v7857_v29 = vmul.f32 %v6682_v40, %v2594_v0 }
 0x2cd   : > { %v7859_v4 = vmul.f32 %v6682_v40, %v2595_v51  ;;  %v7861_v2 = vmul.f32 %v6682_v40, %v2596_v55  ;;  %v7863_v20 = vmul.f32 %v6682_v40, %v2597_v19  ;;  %v7865_v36 = vmul.f32 %v6682_v40, %v2598_v6  ;;  %2672 = vst [vmem:[#allocation2 + $0x19] sm:$0xff] %v2640_v35 }
 0x2ce   : > { %v7867_v14 = vmul.f32 %v6682_v40, %v2599_v61  ;;  %v7869_v21 = vmul.f32 %v6682_v40, %v2600_v15  ;;  %v7871_v9 = vmul.f32 %v6682_v40, %v2601_v62  ;;  %v2636_v46 = vmul.f32 %v6682_v40, %v2602_v13 }
 0x2cf   : > { %v7873_v8 = vmul.f32 %v6682_v40, %v2604_v37  ;;  %v7875_v31 = vmul.f32 %v6682_v40, %v2605_v23  ;;  %v2641_v57 = vmax.f32 %v7823_v28, 0.0  ;;  %v2642_v1 = vmax.f32 %v2610_v43, 0.0 }
 0x2d0   : > { %v2643_v11 = vmax.f32 %v2611_v63, 0.0  ;;  %v2644_v26 = vmax.f32 %v7825_v7, 0.0  ;;  %v2645_v27 = vmax.f32 %v7827_v48, 0.0  ;;  %v2646_v32 = vmax.f32 %v7829_v54, 0.0 }
 0x2d1   : > { %v2647_v24 = vmax.f32 %v7831_v5, 0.0  ;;  %v2648_v3 = vmax.f32 %v7833_v53, 0.0  ;;  %v2649_v0 = vmax.f32 %v7835_v60, 0.0  ;;  %v2650_v51 = vmax.f32 %v7837_v34, 0.0  ;;  %2673 = vst [vmem:[#allocation2 + $0x21] sm:$0xff] %v2641_v57  ;;  %2674 = vst [vmem:[#allocation2 + $0x31] sm:$0xff] %v2642_v1 }
 0x2d2   : > { %2704 = vst [vmem:[#allocation2 + $0x1] sm:$0xff] %v2642_v1  ;;  %v2651_v55 = vmax.f32 %v7839_v12, 0.0  ;;  %v2652_v19 = vmax.f32 %v7841_v30, 0.0  ;;  %v2653_v6 = vmax.f32 %v7843_v10, 0.0  ;;  %v2654_v61 = vmax.f32 %v7845_v44, 0.0  ;;  %2675 = vst [vmem:[#allocation2 + $0x39] sm:$0xff] %v2643_v11 }
 0x2d3   : > { %2676 = vst [vmem:[#allocation2 + $0x49] sm:$0xff] %v2644_v26  ;;  %2677 = vst [vmem:[#allocation2 + $0x51] sm:$0xff] %v2645_v27  ;;  %v2655_v15 = vmax.f32 %v7847_v50, 0.0  ;;  %v2656_v62 = vmax.f32 %v7849_v41, 0.0  ;;  %v2657_v13 = vmax.f32 %v7851_v42, 0.0  ;;  %v2658_v37 = vmax.f32 %v7853_v38, 0.0 }
 0x2d4   : > { %2678 = vst [vmem:[#allocation2 + $0x61] sm:$0xff] %v2646_v32  ;;  %2705 = vst [vmem:[#allocation2 + $0x9] sm:$0xff] %v2643_v11  ;;  %v2659_v23 = vmax.f32 %v7855_v18, 0.0  ;;  %v2660_v56 = vmax.f32 %v7857_v29, 0.0  ;;  %v2661_v16 = vmax.f32 %v7859_v4, 0.0  ;;  %v2662_v17 = vmax.f32 %v7861_v2, 0.0 }
 0x2d5   : > { %2679 = vst [vmem:[#allocation2 + $0x69] sm:$0xff] %v2647_v24  ;;  %2680 = vst [vmem:[#allocation2 + $0x79] sm:$0xff] %v2648_v3  ;;  %v2663_v47 = vmax.f32 %v7863_v20, 0.0  ;;  %v2664_v59 = vmax.f32 %v7865_v36, 0.0  ;;  %v2665_v22 = vmax.f32 %v7867_v14, 0.0  ;;  %v2666_v40 = vmax.f32 %v7869_v21, 0.0 }
 0x2d6   : > { %2681 = vst [vmem:[#allocation2 + $0x81] sm:$0xff] %v2649_v0  ;;  %2682 = vst [vmem:[#allocation2 + $0x91] sm:$0xff] %v2650_v51  ;;  %v2667_v58 = vmax.f32 %v7871_v9, 0.0  ;;  %v7909_v49 = vmax.f32 %v2636_v46, 0.0  ;;  %v2670_v33 = vmax.f32 %v7873_v8, 0.0  ;;  %v2671_v45 = vmax.f32 %v7875_v31, 0.0 }
 0x2d7   : > { %2683 = vst [vmem:[#allocation2 + $0x99] sm:$0xff] %v2651_v55  ;;  %2684 = vst [vmem:[#allocation2 + $0xa9] sm:$0xff] %v2652_v19  ;;  %v7913_v39 = vpack.c.bf16 %v2643_v11, %v2642_v1  ;;  %v7915_v25 = vpack.c.bf16 %v2641_v57, %v2640_v35  ;;  %v7917_v28 = vpack.c.bf16 %v2645_v27, %v2644_v26  ;;  %v2759_v63 = vld [vmem:[#allocation2 + $0x177] sm:$0x1]  ;;  %v2761_v7 = vld [vmem:[#allocation2 + $0x1a7] sm:$0x1] }
 0x2d8   : > { %2685 = vst [vmem:[#allocation2 + $0xb1] sm:$0xff] %v2653_v6  ;;  %2686 = vst [vmem:[#allocation2 + $0xc1] sm:$0xff] %v2654_v61  ;;  %v7919_v43 = vpack.c.bf16 %v2647_v24, %v2646_v32  ;;  %v2709_v54 = vld [vmem:[#allocation2 + $0x1a] sm:$0x1]  ;;  %v7927_v52 = vpack.c.bf16 %v2649_v0, %v2648_v3  ;;  %v7931_v5 = vpack.c.bf16 %v2651_v55, %v2650_v51  ;;  %v2710_v50 = vld [vmem:[#allocation2 + $0x32] sm:$0x1] }
 0x2d9   : > { %2687 = vst [vmem:[#allocation2 + $0xc9] sm:$0xff] %v2655_v15  ;;  %2688 = vst [vmem:[#allocation2 + $0xd9] sm:$0xff] %v2656_v62  ;;  %v2708_v48 = vld [vmem:[#allocation2 + $0x2] sm:$0x1]  ;;  %v7933_v12 = vpack.c.bf16 %v2653_v6, %v2652_v19  ;;  %v7935_v30 = vpack.c.bf16 %v2655_v15, %v2654_v61  ;;  %4108 = vmatprep.mubr.bf16.mxu1 %v7913_v39  ;;  %v7938_v53 = vpack.c.bf16 %v2657_v13, %v2656_v62  ;;  %v2745_v41 = vld [vmem:[#allocation2 + $0x27] sm:$0x1] }
 0x2da   : > { %2689 = vst [vmem:[#allocation2 + $0xe1] sm:$0xff] %v2657_v13  ;;  %2690 = vst [vmem:[#allocation2 + $0xf1] sm:$0xff] %v2658_v37  ;;  %v7940_v60 = vpack.c.bf16 %v2659_v23, %v2658_v37  ;;  %v7942_v44 = vpack.c.bf16 %v2661_v16, %v2660_v56  ;;  %v7944_v34 = vpack.c.bf16 %v2663_v47, %v2662_v17  ;;  %v2711_v18 = vld [vmem:[#allocation2 + $0x4a] sm:$0x1]  ;;  %v2746_v29 = vld [vmem:[#allocation2 + $0x3f] sm:$0x1] }
 0x2db   : > { %2691 = vst [vmem:[#allocation2 + $0xf9] sm:$0xff] %v2659_v23  ;;  %2692 = vst [vmem:[#allocation2 + $0x109] sm:$0xff] %v2660_v56  ;;  %v2744_v10 = vld [vmem:[#allocation2 + $0xf] sm:$0x1]  ;;  %v7946_v42 = vpack.c.bf16 %v2665_v22, %v2664_v59  ;;  %v7948_v38 = vpack.c.bf16 %v2667_v58, %v2666_v40  ;;  %v2712_v4 = vld [vmem:[#allocation2 + $0x62] sm:$0x1] }
 0x2dc   : > { %2693 = vst [vmem:[#allocation2 + $0x111] sm:$0xff] %v2661_v16  ;;  %2694 = vst [vmem:[#allocation2 + $0x121] sm:$0xff] %v2662_v17  ;;  %v2747_v2 = vld [vmem:[#allocation2 + $0x57] sm:$0x1]  ;;  %v2713_v20 = vld [vmem:[#allocation2 + $0x7a] sm:$0x1] }
 0x2dd   : > { %2695 = vst [vmem:[#allocation2 + $0x129] sm:$0xff] %v2663_v47  ;;  %2696 = vst [vmem:[#allocation2 + $0x139] sm:$0xff] %v2664_v59  ;;  %v2748_v36 = vld [vmem:[#allocation2 + $0x6f] sm:$0x1]  ;;  %v2973_v21 = vld [vmem:[#allocation2 + $0x20] sm:$0xff] }
 0x2de   : > { %2697 = vst [vmem:[#allocation2 + $0x141] sm:$0xff] %v2665_v22  ;;  %2698 = vst [vmem:[#allocation2 + $0x151] sm:$0xff] %v2666_v40  ;;  %v2781_v14 = vld [vmem:[#allocation2 + $0x8] sm:$0xff]  ;;  %v6642_v9 = vld [vmem:[#allocation9 + $0x100] sm:$0xff]  }
 0x2df   : > { %2699 = vst [vmem:[#allocation2 + $0x159] sm:$0xff] %v2667_v58  ;;  %2700 = vst [vmem:[#allocation2 + $0x169] sm:$0xff] %v7909_v49  ;;  %v2714_v46 = vld [vmem:[#allocation2 + $0x92] sm:$0x1]  ;;  %v6643_v35 = vld [vmem:[#allocation9 + $0x148] sm:$0xff]  }
 0x2e0   : > { %2702 = vst [vmem:[#allocation2 + $0x181] sm:$0xff] %v2670_v33  ;;  %2703 = vst [vmem:[#allocation2 + $0x189] sm:$0xff] %v2671_v45  ;;  %v2749_v57 = vld [vmem:[#allocation2 + $0x87] sm:$0x1]  ;;  %v2715_v32 = vld [vmem:[#allocation2 + $0xaa] sm:$0x1] }
 0x2e1   : > { %2706 = vst [vmem:[#allocation2 + $0x199] sm:$0xff] %v7909_v49  ;;  %2777 = vst [vmem:[#allocation2 + $0x179] sm:$0x1] %v2759_v63  ;;  %v2908_v26 = vld [vmem:[#allocation2 + $0x2] sm:$0xff]  ;;  %v2975_v0 = vld [vmem:[#allocation2 + $0x38] sm:$0xff] }
 0x2e2   : > { %2779 = vst [vmem:[#allocation2 + $0x1a9] sm:$0x1] %v2761_v7  ;;  %2726 = vst [vmem:[#allocation2] sm:$0x1] %v2708_v48  ;;  %v6652_v51 = vld [vmem:[#allocation9 + $0x180] sm:$0xff]   ;;  %v6654_v6 = vld [vmem:[#allocation9 + $0x1c8] sm:$0xff]  }
 0x2e3   : > { %2727 = vst [vmem:[#allocation2 + $0x18] sm:$0x1] %v2709_v54  ;;  %2762 = vst [vmem:[#allocation2 + $0x11] sm:$0x1] %v2744_v10  ;;  %v2750_v19 = vld [vmem:[#allocation2 + $0x9f] sm:$0x1] }
 0x2e4   : > { %2728 = vst [vmem:[#allocation2 + $0x30] sm:$0x1] %v2710_v50  ;;  %2763 = vst [vmem:[#allocation2 + $0x29] sm:$0x1] %v2745_v41  ;;  %v2716_v61 = vld [vmem:[#allocation2 + $0xc2] sm:$0x1] }
 0x2e5   : > { %2729 = vst [vmem:[#allocation2 + $0x48] sm:$0x1] %v2711_v18  ;;  %2764 = vst [vmem:[#allocation2 + $0x41] sm:$0x1] %v2746_v29  ;;  %v6644_v15 = vld [vmem:[#allocation9 + $0x108] sm:$0xff]   ;;  %v6645_v13 = vld [vmem:[#allocation9 + $0x150] sm:$0xff]  }
 0x2e6   : > { %2730 = vst [vmem:[#allocation2 + $0x60] sm:$0x1] %v2712_v4  ;;  %2765 = vst [vmem:[#allocation2 + $0x59] sm:$0x1] %v2747_v2  ;;  %v2751_v62 = vld [vmem:[#allocation2 + $0xb7] sm:$0x1] }
 0x2e7   : > { %2731 = vst [vmem:[#allocation2 + $0x78] sm:$0x1] %v2713_v20  ;;  %2766 = vst [vmem:[#allocation2 + $0x71] sm:$0x1] %v2748_v36  ;;  %v6656_v37 = vld [vmem:[#allocation9 + $0x188] sm:$0xff]   ;;  %v6646_v56 = vld [vmem:[#allocation9 + $0x110] sm:$0xff]  }
 0x2e8   : > { %2732 = vst [vmem:[#allocation2 + $0x90] sm:$0x1] %v2714_v46  ;;  %2767 = vst [vmem:[#allocation2 + $0x89] sm:$0x1] %v2749_v57  ;;  %v2717_v16 = vld [vmem:[#allocation2 + $0xda] sm:$0x1] }
 0x2e9   : > { %v2780_v8 = vld [vmem:[#allocation2] sm:$0xff]  ;;  %2733 = vst [vmem:[#allocation2 + $0xa8] sm:$0x1] %v2715_v32  ;;  %2768 = vst [vmem:[#allocation2 + $0xa1] sm:$0x1] %v2750_v19  ;;  %v6647_v59 = vld [vmem:[#allocation9 + $0x158] sm:$0xff]  }
 0x2ea   : > { %v2972_v31 = vld [vmem:[#allocation2 + $0x18] sm:$0xff]  ;;  %v2812_v1 = vpack.c.bf16 %v2781_v14, %v2780_v8  ;;  %v2909_v27 = vld [vmem:[#allocation2 + $0xa] sm:$0xff]  ;;  %2734 = vst [vmem:[#allocation2 + $0xc0] sm:$0x1] %v2716_v61  ;;  %2769 = vst [vmem:[#allocation2 + $0xb9] sm:$0x1] %v2751_v62 }
 0x2eb   : > { %v3004_v11 = vpack.c.bf16 %v2973_v21, %v2972_v31  ;;  %v2940_v24 = vpack.c.bf16 %v2909_v27, %v2908_v26  ;;  %v2974_v3 = vld [vmem:[#allocation2 + $0x30] sm:$0xff]  ;;  %v2911_v23 = vld [vmem:[#allocation2 + $0x22] sm:$0xff]  ;;  %2735 = vst [vmem:[#allocation2 + $0xd8] sm:$0x1] %v2717_v16  ;;  %v2752_v22 = vld [vmem:[#allocation2 + $0xcf] sm:$0x1] }
 0x2ec   : > { %4109 = vmatmul.mubr.bf16.vlgmr.msra.gmra.mrb[128].mxu1 %v2812_v1  ;;  %v7950_v55 = vpack.c.bf16 %v2975_v0, %v2974_v3  ;;  %v6658_v17 = vld [vmem:[#allocation9 + $0x1d0] sm:$0xff]   ;;  %v2976_v47 = vld [vmem:[#allocation2 + $0x48] sm:$0xff]  ;;  %2770 = vst [vmem:[#allocation2 + $0xd1] sm:$0x1] %v2752_v22  ;;  %v2718_v58 = vld [vmem:[#allocation2 + $0xf2] sm:$0x1] }
 0x2ed   : > { %4269 = vmatprep.mubr.bf16.mxu0 %v3004_v11  ;;  %4116 = vmatprep.mubr.bf16.mxu1 %v7915_v25  ;;  %v2910_v40 = vld [vmem:[#allocation2 + $0x1a] sm:$0xff]  ;;  %v2977_v25 = vld [vmem:[#allocation2 + $0x50] sm:$0xff]  ;;  %2736 = vst [vmem:[#allocation2 + $0xf0] sm:$0x1] %v2718_v58  ;;  %v2753_v63 = vld [vmem:[#allocation2 + $0xe7] sm:$0x1] }
 0x2ee   : > { %4270 = vmatmul.mubr.bf16.vlgmr.msra.gmra.mrb[160].mxu0 %v2940_v24  ;;  %6121 = vmatpush3.bf16.msra.mxu1 %v6642_v9  ;;  %v6660_v33 = vld [vmem:[#allocation9 + $0x190] sm:$0xff]   ;;  %v7954_v45 = vpack.c.bf16 %v2911_v23, %v2910_v40  ;;  %v2719_v7 = vld [vmem:[#allocation2 + $0x10a] sm:$0x1]  ;;  %v7956_v48 = vpack.c.bf16 %v2977_v25, %v2976_v47  ;;  %2771 = vst [vmem:[#allocation2 + $0xe9] sm:$0x1] %v2753_v63  ;;  %v6649_v29 = vld [vmem:[#allocation9 + $0x160] sm:$0xff]  }
 0x2ef   : > { %4277 = vmatprep.mubr.bf16.mxu0 %v7950_v55  ;;  %6122 = vmatprep.subr.bf16.mxu1 %v6643_v35  ;;  %2737 = vst [vmem:[#allocation2 + $0x108] sm:$0x1] %v2719_v7  ;;  %v2754_v54 = vld [vmem:[#allocation2 + $0xff] sm:$0x1]  ;;  %v6661_v10 = vld [vmem:[#allocation9 + $0x1d8] sm:$0xff]   ;;  %v2978_v14 = vld [vmem:[#allocation2 + $0x60] sm:$0xff] }
 0x2f0   : > { %6233 = vmatpush3.bf16.msra.mxu0 %v6652_v51  ;;  %2772 = vst [vmem:[#allocation2 + $0x101] sm:$0x1] %v2754_v54  ;;  %v2720_v50 = vld [vmem:[#allocation2 + $0x122] sm:$0x1]  ;;  %v6648_v41 = vld [vmem:[#allocation9 + $0x118] sm:$0xff]   ;;  %v2913_v20 = vld [vmem:[#allocation2 + $0x3a] sm:$0xff] }
 0x2f1   : > { %6234 = vmatprep.subr.bf16.mxu0 %v6654_v6  ;;  %2738 = vst [vmem:[#allocation2 + $0x120] sm:$0x1] %v2720_v50  ;;  %v2755_v18 = vld [vmem:[#allocation2 + $0x117] sm:$0x1]  ;;  %v2721_v4 = vld [vmem:[#allocation2 + $0x13a] sm:$0x1] }
 0x2f2   : > { %6123 = vmatpush3.bf16.msra.mxu1 %v6644_v15  ;;  %2773 = vst [vmem:[#allocation2 + $0x119] sm:$0x1] %v2755_v18  ;;  %v6662_v2 = vld [vmem:[#allocation9 + $0x198] sm:$0xff]   ;;  %2739 = vst [vmem:[#allocation2 + $0x138] sm:$0x1] %v2721_v4  ;;  %v6651_v21 = vld [vmem:[#allocation9 + $0x120] sm:$0xff]  }
 0x2f3   : > { %6124 = vmatprep.subr.bf16.mxu1 %v6645_v13  ;;  %v2756_v36 = vld [vmem:[#allocation2 + $0x12f] sm:$0x1]  ;;  %v2722_v9 = vld [vmem:[#allocation2 + $0x152] sm:$0x1]  ;;  %v6653_v8 = vld [vmem:[#allocation9 + $0x168] sm:$0xff]  }
 0x2f4   : > { %6235 = vmatpush3.bf16.msra.mxu0 %v6656_v37  ;;  %4117 = vmatmul.mubr.bf16.gmra.mrb[132].mxu1 %v3004_v11  ;;  %2774 = vst [vmem:[#allocation2 + $0x131] sm:$0x1] %v2756_v36  ;;  %v2912_v46 = vld [vmem:[#allocation2 + $0x32] sm:$0xff]  ;;  %2740 = vst [vmem:[#allocation2 + $0x150] sm:$0x1] %v2722_v9  ;;  %v2979_v57 = vld [vmem:[#allocation2 + $0x68] sm:$0xff] }
 0x2f5   : > { %6236 = vmatprep.subr.bf16.mxu0 %v6658_v17  ;;  %4124 = vmatprep.mubr.bf16.mxu1 %v7913_v39  ;;  %v6665_v39 = vld [vmem:[#allocation9 + $0x1e0] sm:$0xff]   ;;  %v2757_v31 = vld [vmem:[#allocation2 + $0x147] sm:$0x1]  ;;  %v7961_v35 = vpack.c.bf16 %v2913_v20, %v2912_v46  ;;  %v2723_v1 = vld [vmem:[#allocation2 + $0x16a] sm:$0x1]  ;;  %v7964_v26 = vpack.c.bf16 %v2979_v57, %v2978_v14 }
 0x2f6   : > { %4278 = vmatmul.mubr.bf16.gmra.mrb[164].mxu0 %v7954_v45  ;;  %6125 = vmatpush3.bf16.msra.mxu1 %v6646_v56  ;;  %2775 = vst [vmem:[#allocation2 + $0x149] sm:$0x1] %v2757_v31  ;;  %v6666_v11 = vld [vmem:[#allocation9 + $0x1a0] sm:$0xff]   ;;  %2741 = vst [vmem:[#allocation2 + $0x168] sm:$0x1] %v2723_v1  ;;  %v6667_v32 = vld [vmem:[#allocation9 + $0x1e8] sm:$0xff]  }
 0x2f7   : > { %4285 = vmatprep.mubr.bf16.mxu0 %v7956_v48  ;;  %6126 = vmatprep.subr.bf16.mxu1 %v6647_v59  ;;  %v2758_v27 = vld [vmem:[#allocation2 + $0x15f] sm:$0x1]  ;;  %v2724_v24 = vld [vmem:[#allocation2 + $0x182] sm:$0x1]  ;;  %v2915_v19 = vld [vmem:[#allocation2 + $0x52] sm:$0xff] }
 0x2f8   : > { %6237 = vmatpush3.bf16.msra.mxu0 %v6660_v33  ;;  %2776 = vst [vmem:[#allocation2 + $0x161] sm:$0x1] %v2758_v27  ;;  %v6655_v3 = vld [vmem:[#allocation9 + $0x128] sm:$0xff]   ;;  %2742 = vst [vmem:[#allocation2 + $0x180] sm:$0x1] %v2724_v24  ;;  %v6657_v0 = vld [vmem:[#allocation9 + $0x170] sm:$0xff]  }
 0x2f9   : > { %6238 = vmatprep.subr.bf16.mxu0 %v6661_v10  ;;  %v6668_v51 = vld [vmem:[#allocation9 + $0x1a8] sm:$0xff]   ;;  %v6669_v6 = vld [vmem:[#allocation9 + $0x1f0] sm:$0xff]   ;;  %v2914_v15 = vld [vmem:[#allocation2 + $0x4a] sm:$0xff] }
 0x2fa   : > { %6127 = vmatpush3.bf16.msra.mxu1 %v6648_v41  ;;  %v2980_v61 = vld [vmem:[#allocation2 + $0x78] sm:$0xff]  ;;  %v7969_v62 = vpack.c.bf16 %v2915_v19, %v2914_v15  ;;  %v2981_v13 = vld [vmem:[#allocation2 + $0x80] sm:$0xff]  ;;  %v6663_v37 = vld [vmem:[#allocation9 + $0x178] sm:$0xff]  }
 0x2fb   : > { %6128 = vmatprep.subr.bf16.mxu1 %v6649_v29  ;;  %v6670_v23 = vld [vmem:[#allocation9 + $0x1b0] sm:$0xff]   ;;  %v7972_v56 = vpack.c.bf16 %v2981_v13, %v2980_v61  ;;  %v6671_v16 = vld [vmem:[#allocation9 + $0x1f8] sm:$0xff]   ;;  %v7977_v59 = vld [vmem:[#allocation9 + $0x200] sm:$0xff]  }
 0x2fc   : > { %6239 = vmatpush3.bf16.msra.mxu0 %v6662_v2  ;;  %4125 = vmatmul.mubr.bf16.gmra.mrb[136].mxu1 %v7950_v55  ;;  %v6664_v17 = vld [vmem:[#allocation9 + $0x138] sm:$0xff]   ;;  %v2982_v40 = vld [vmem:[#allocation2 + $0x90] sm:$0xff]  ;;  %v2983_v25 = vld [vmem:[#allocation2 + $0x98] sm:$0xff] }
 0x2fd   : > { %6240 = vmatprep.subr.bf16.mxu0 %v6665_v39  ;;  %4132 = vmatprep.mubr.bf16.mxu1 %v7917_v28  ;;  %v6659_v28 = vld [vmem:[#allocation9 + $0x130] sm:$0xff]   ;;  %v6672_v47 = vld [vmem:[#allocation9 + $0x1b8] sm:$0xff]   ;;  %v2725_v7 = vld [vmem:[#allocation2 + $0x19a] sm:$0x1] }
 0x2fe   : > { %4286 = vmatmul.mubr.bf16.gmra.mrb[168].mxu0 %v7961_v35  ;;  %6129 = vmatpush3.bf16.msra.mxu1 %v6651_v21  ;;  %v2917_v22 = vld [vmem:[#allocation2 + $0x6a] sm:$0xff]  ;;  %v2916_v58 = vld [vmem:[#allocation2 + $0x62] sm:$0xff]  ;;  %2743 = vst [vmem:[#allocation2 + $0x198] sm:$0x1] %v2725_v7  ;;  %v2918_v50 = vld [vmem:[#allocation2 + $0x7a] sm:$0xff] }
 0x2ff   : > { %4293 = vmatprep.mubr.bf16.mxu0 %v7964_v26  ;;  %6130 = vmatprep.subr.bf16.mxu1 %v6653_v8  ;;  %v7979_v33 = vpack.c.bf16 %v2917_v22, %v2916_v58  ;;  %v2760_v63 = vld [vmem:[#allocation2 + $0x18f] sm:$0x1]  ;;  %v2919_v54 = vld [vmem:[#allocation2 + $0x82] sm:$0xff]  ;;  %v2985_v18 = vld [vmem:[#allocation2 + $0xb0] sm:$0xff] }
 0x300   : > { %6241 = vmatpush3.bf16.msra.mxu0 %v6666_v11  ;;  %2778 = vst [vmem:[#allocation2 + $0x191] sm:$0x1] %v2760_v63  ;;  %v2984_v10 = vld [vmem:[#allocation2 + $0xa8] sm:$0xff]  ;;  %v7988_v41 = vpack.c.bf16 %v2919_v54, %v2918_v50  ;;  %v2986_v4 = vld [vmem:[#allocation2 + $0xc0] sm:$0xff]  ;;  %v2920_v2 = vld [vmem:[#allocation2 + $0x92] sm:$0xff] }
 0x301   : > { %6242 = vmatprep.subr.bf16.mxu0 %v6667_v32  ;;  %v7991_v29 = vpack.c.bf16 %v2985_v18, %v2984_v10  ;;  %v2987_v36 = vld [vmem:[#allocation2 + $0xc8] sm:$0xff]  ;;  %v2988_v14 = vld [vmem:[#allocation2 + $0xd8] sm:$0xff]  ;;  %v2989_v46 = vld [vmem:[#allocation2 + $0xe0] sm:$0xff] }
 0x302   : > { %6131 = vmatpush3.bf16.msra.mxu1 %v6655_v3  ;;  %v7999_v39 = vpack.c.bf16 %v2987_v36, %v2986_v4  ;;  %v2922_v21 = vld [vmem:[#allocation2 + $0xaa] sm:$0xff]  ;;  %v8007_v8 = vpack.c.bf16 %v2989_v46, %v2988_v14  ;;  %v2924_v57 = vld [vmem:[#allocation2 + $0xc2] sm:$0xff]  ;;  %v2991_v11 = vld [vmem:[#allocation2 + $0xf8] sm:$0xff] }
 0x303   : > { %6132 = vmatprep.subr.bf16.mxu1 %v6657_v0  ;;  %v2990_v31 = vld [vmem:[#allocation2 + $0xf0] sm:$0xff]  ;;  %v2992_v32 = vld [vmem:[#allocation2 + $0x108] sm:$0xff]  ;;  %v2926_v24 = vld [vmem:[#allocation2 + $0xda] sm:$0xff] }
 0x304   : > { %6243 = vmatpush3.bf16.msra.mxu0 %v6668_v51  ;;  %4133 = vmatmul.mubr.bf16.gmra.mrb[140].mxu1 %v7956_v48  ;;  %v8015_v27 = vpack.c.bf16 %v2991_v11, %v2990_v31  ;;  %v2993_v0 = vld [vmem:[#allocation2 + $0x110] sm:$0xff]  ;;  %v2994_v19 = vld [vmem:[#allocation2 + $0x120] sm:$0xff]  ;;  %v2995_v15 = vld [vmem:[#allocation2 + $0x128] sm:$0xff] }
 0x305   : > { %6244 = vmatprep.subr.bf16.mxu0 %v6669_v6  ;;  %4140 = vmatprep.mubr.bf16.mxu1 %v7919_v43  ;;  %v7983_v43 = vpack.c.bf16 %v2983_v25, %v2982_v40  ;;  %v8023_v51 = vpack.c.bf16 %v2993_v0, %v2992_v32  ;;  %v2928_v6 = vld [vmem:[#allocation2 + $0xf2] sm:$0xff]  ;;  %v2932_v22 = vld [vmem:[#allocation2 + $0x122] sm:$0xff]  ;;  %v2934_v7 = vld [vmem:[#allocation2 + $0x13a] sm:$0xff] }
 0x306   : > { %4294 = vmatmul.mubr.bf16.gmra.mrb[172].mxu0 %v7969_v62  ;;  %6133 = vmatpush3.bf16.msra.mxu1 %v6659_v28  ;;  %v8031_v28 = vpack.c.bf16 %v2995_v15, %v2994_v19  ;;  %v2996_v13 = vld [vmem:[#allocation2 + $0x138] sm:$0xff]  ;;  %v3000_v63 = vld [vmem:[#allocation2 + $0x168] sm:$0xff]  ;;  %v3001_v10 = vld [vmem:[#allocation2 + $0x170] sm:$0xff] }
 0x307   : > { %4301 = vmatprep.mubr.bf16.mxu0 %v7972_v56  ;;  %6134 = vmatprep.subr.bf16.mxu1 %v6663_v37  ;;  %v2930_v37 = vld [vmem:[#allocation2 + $0x10a] sm:$0xff]  ;;  %v2999_v58 = vld [vmem:[#allocation2 + $0x158] sm:$0xff]  ;;  %v8055_v50 = vpack.c.bf16 %v3001_v10, %v3000_v63  ;;  %v3037_v11 = vld [vmem:[#allocation2 + $0x21] sm:$0xff] }
 0x308   : > { %6245 = vmatpush3.bf16.msra.mxu0 %v6670_v23  ;;  %v2937_v18 = vld [vmem:[#allocation2 + $0x15a] sm:$0xff]  ;;  %v2936_v4 = vld [vmem:[#allocation2 + $0x152] sm:$0xff]  ;;  %v6676_v15 = vld [vmem:[#allocation9 + $0x218] sm:$0xff]  }
 0x309   : > { %6246 = vmatprep.subr.bf16.mxu0 %v6671_v16  ;;  %v2997_v16 = vld [vmem:[#allocation2 + $0x140] sm:$0xff]  ;;  %v8064_v36 = vpack.c.bf16 %v2937_v18, %v2936_v4  ;;  %v3231_v32 = vld [vmem:[#allocation2 + $0x51] sm:$0xff] }
 0x30a   : > { %6135 = vmatpush3.bf16.msra.mxu1 %v6664_v17  ;;  %v8039_v17 = vpack.c.bf16 %v2997_v16, %v2996_v13  ;;  %v3229_v46 = vld [vmem:[#allocation2 + $0x39] sm:$0xff] }
 0x30b   : > { %6416 = vmatprep.subr.bf16.mxu1 %v7977_v59  ;;  %v6674_v0 = vld [vmem:[#allocation9 + $0x208] sm:$0xff]   ;;  %v6675_v19 = vld [vmem:[#allocation9 + $0x210] sm:$0xff]  }
 0x30c   : > { %6247 = vmatpush3.bf16.msra.mxu0 %v6672_v47  ;;  %4141 = vmatmul.mubr.bf16.gmra.mrb[144].mxu1 %v7964_v26  ;;  %v2998_v47 = vld [vmem:[#allocation2 + $0x150] sm:$0xff]  ;;  %v6678_v13 = vld [vmem:[#allocation9 + $0x228] sm:$0xff]  }
 0x30d   : > { %4148 = vmatprep.mubr.bf16.mxu1 %v7927_v52  ;;  %v2921_v52 = vld [vmem:[#allocation2 + $0x9a] sm:$0xff]  ;;  %v8047_v25 = vpack.c.bf16 %v2999_v58, %v2998_v47 }
 0x30e   : > { %4302 = vmatmul.mubr.bf16.gmra.mrb[176].mxu0 %v7979_v33  ;;  %v7996_v20 = vpack.c.bf16 %v2921_v52, %v2920_v2  ;;  %v3002_v52 = vld [vmem:[#allocation2 + $0x180] sm:$0xff] }
 0x30f   : > { %4309 = vmatprep.mubr.bf16.mxu0 %v7983_v43  ;;  %v3237_v16 = vld [vmem:[#allocation2 + $0x99] sm:$0xff]  ;;  %v3240_v58 = vld [vmem:[#allocation2 + $0xc1] sm:$0xff] }
 0x314   : > { %4149 = vmatmul.mubr.bf16.gmra.mrb[148].mxu1 %v7972_v56 }
 0x315   : > { %4156 = vmatprep.mubr.bf16.mxu1 %v7931_v5  ;;  %v2923_v5 = vld [vmem:[#allocation2 + $0xb2] sm:$0xff] }
 0x316   : > { %4310 = vmatmul.mubr.bf16.gmra.mrb[180].mxu0 %v7988_v41  ;;  %v8004_v9 = vpack.c.bf16 %v2923_v5, %v2922_v21  ;;  %v3003_v5 = vld [vmem:[#allocation2 + $0x188] sm:$0xff]  ;;  %v3228_v21 = vld [vmem:[#allocation2 + $0x31] sm:$0xff] }
 0x317   : > { %4317 = vmatprep.mubr.bf16.mxu0 %v7991_v29  ;;  %v8067_v14 = vpack.c.bf16 %v3003_v5, %v3002_v52 }
 0x31c   : > { %4157 = vmatmul.mubr.bf16.gmra.mrb[152].mxu1 %v7983_v43 }
 0x31d   : > { %4164 = vmatprep.mubr.bf16.mxu1 %v7933_v12  ;;  %v2925_v12 = vld [vmem:[#allocation2 + $0xca] sm:$0xff] }
 0x31e   : > { %4318 = vmatmul.mubr.bf16.gmra.mrb[184].mxu0 %v7996_v20  ;;  %v8012_v1 = vpack.c.bf16 %v2925_v12, %v2924_v57  ;;  %v2938_v12 = vld [vmem:[#allocation2 + $0x16a] sm:$0xff]  ;;  %v3036_v57 = vld [vmem:[#allocation2 + $0x19] sm:$0xff] }
 0x31f   : > { %4325 = vmatprep.mubr.bf16.mxu0 %v7999_v39 }
 0x324   : > { %4165 = vmatmul.mubr.bf16.gmra.mrb[156].mxu1 %v7991_v29 }
 0x325   : > { %4172 = vmatprep.mubr.bf16.mxu1 %v7935_v30  ;;  %v2927_v30 = vld [vmem:[#allocation2 + $0xe2] sm:$0xff] }
 0x326   : > { %4326 = vmatmul.mubr.bf16.gmra.mrb[188].mxu0 %v8004_v9  ;;  %v8020_v3 = vpack.c.bf16 %v2927_v30, %v2926_v24  ;;  %v3230_v30 = vld [vmem:[#allocation2 + $0x49] sm:$0xff]  ;;  %v3068_v24 = vpack.c.bf16 %v3037_v11, %v3036_v57 }
 0x327   : > { %4333 = vmatprep.mubr.bf16.mxu0 %v8007_v8 }
 0x32c   : > { %4173 = vmatmul.mubr.bf16.gmra.mrb[160].mxu1 %v7999_v39 }
 0x32d   : > { %4180 = vmatprep.mubr.bf16.mxu1 %v7938_v53  ;;  %v2929_v53 = vld [vmem:[#allocation2 + $0xfa] sm:$0xff] }
 0x32e   : > { %4334 = vmatmul.mubr.bf16.gmra.mrb[192].mxu0 %v8012_v1  ;;  %v8028_v61 = vpack.c.bf16 %v2929_v53, %v2928_v6  ;;  %v3261_v53 = vpack.c.bf16 %v3231_v32, %v3230_v30  ;;  %v3232_v6 = vld [vmem:[#allocation2 + $0x61] sm:$0xff] }
 0x32f   : > { %4341 = vmatprep.mubr.bf16.mxu0 %v8015_v27 }
 0x334   : > { %4181 = vmatmul.mubr.bf16.gmra.mrb[164].mxu1 %v8007_v8 }
 0x335   : > { %4188 = vmatprep.mubr.bf16.mxu1 %v7940_v60  ;;  %v2931_v60 = vld [vmem:[#allocation2 + $0x112] sm:$0xff] }
 0x336   : > { %4342 = vmatmul.mubr.bf16.gmra.mrb[196].mxu0 %v8020_v3  ;;  %v8036_v23 = vpack.c.bf16 %v2931_v60, %v2930_v37 }
 0x337   : > { %4349 = vmatprep.mubr.bf16.mxu0 %v8023_v51 }
 0x33c   : > { %4189 = vmatmul.mubr.bf16.gmra.mrb[168].mxu1 %v8015_v27 }
 0x33d   : > { %4196 = vmatprep.mubr.bf16.mxu1 %v7942_v44  ;;  %v2933_v44 = vld [vmem:[#allocation2 + $0x12a] sm:$0xff] }
 0x33e   : > { %4350 = vmatmul.mubr.bf16.gmra.mrb[200].mxu0 %v8028_v61  ;;  %v8044_v40 = vpack.c.bf16 %v2933_v44, %v2932_v22  ;;  %v6680_v44 = vld [vmem:[#allocation9 + $0x238] sm:$0xff]  }
 0x33f   : > { %4357 = vmatprep.mubr.bf16.mxu0 %v8031_v28 }
 0x344   : > { %4197 = vmatmul.mubr.bf16.gmra.mrb[172].mxu1 %v8023_v51 }
 0x345   : > { %4204 = vmatprep.mubr.bf16.mxu1 %v7944_v34  ;;  %v2935_v34 = vld [vmem:[#allocation2 + $0x142] sm:$0xff] }
 0x346   : > { %4358 = vmatmul.mubr.bf16.gmra.mrb[204].mxu0 %v8036_v23  ;;  %v8052_v54 = vpack.c.bf16 %v2935_v34, %v2934_v7  ;;  %v3241_v34 = vld [vmem:[#allocation2 + $0xc9] sm:$0xff] }
 0x347   : > { %4365 = vmatprep.mubr.bf16.mxu0 %v8039_v17  ;;  %v3266_v63 = vpack.c.bf16 %v3241_v34, %v3240_v58  ;;  %v3257_v58 = vld [vmem:[#allocation2 + $0x189] sm:$0xff] }
 0x34c   : > { %4205 = vmatmul.mubr.bf16.gmra.mrb[176].mxu1 %v8031_v28 }
 0x34d   : > { %4212 = vmatprep.mubr.bf16.mxu1 %v7946_v42  ;;  %v8060_v42 = vld [vmem:[#allocation2 + $0x171] sm:$0xff] }
 0x34e   : > { %4366 = vmatmul.mubr.bf16.gmra.mrb[208].mxu0 %v8044_v40  ;;  %v2891_v2 = vpack.c.bf16 %v8060_v42, %v7909_v49  ;;  %v3260_v49 = vpack.c.bf16 %v3229_v46, %v3228_v21  ;;  %v3252_v46 = vld [vmem:[#allocation2 + $0x151] sm:$0xff] }
 0x34f   : > { %4373 = vmatprep.mubr.bf16.mxu0 %v8047_v25 }
 0x354   : > { %4213 = vmatmul.mubr.bf16.gmra.mrb[180].mxu1 %v8039_v17 }
 0x355   : > { %4220 = vmatprep.mubr.bf16.mxu1 %v7948_v38  ;;  %v2939_v38 = vld [vmem:[#allocation2 + $0x172] sm:$0xff] }
 0x356   : > { %4374 = vmatmul.mubr.bf16.gmra.mrb[212].mxu0 %v8052_v54  ;;  %v8071_v31 = vpack.c.bf16 %v2939_v38, %v2938_v12 }
 0x357   : > { %4381 = vmatprep.mubr.bf16.mxu0 %v8055_v50 }
 0x35c   : > { %4221 = vmatmul.mubr.bf16.gmra.mrb[184].mxu1 %v8047_v25 }
 0x35d   : > { %4228 = vmatprep.mubr.bf16.mxu1 %v2891_v2 }
 0x35e   : > { %4382 = vmatmul.mubr.bf16.gmra.mrb[216].mxu0 %v8064_v36 }
 0x35f   : > { %4389 = vmatprep.mubr.bf16.mxu0 %v8067_v14 }
 0x364   : > { %4229 = vmatmul.mubr.bf16.gmra.mrb[188].mxu1 %v8055_v50 }
 0x365   : > { %4430 = vmatprep.mubr.bf16.mxu1 %v7954_v45  ;;  %v3233_v45 = vld [vmem:[#allocation2 + $0x69] sm:$0xff] }
 0x366   : > { %4390 = vmatmul.mubr.bf16.gmra.mrb[220].mxu0 %v8071_v31  ;;  %v3262_v60 = vpack.c.bf16 %v3233_v45, %v3232_v6 }
 0x367   : > { %4591 = vmatprep.mubr.bf16.mxu0 %v3260_v49 }
 0x36c   : > { %4431 = vmatmul.mubr.bf16.vlgmr.msra.gmra.mrb[192].mxu1 %v3068_v24 }
 0x36d   : > { %4438 = vmatprep.mubr.bf16.mxu1 %v7961_v35  ;;  %6417 = vmatpush3.bf16.msra.mxu1 %v7977_v59  ;;  %v3234_v35 = vld [vmem:[#allocation2 + $0x79] sm:$0xff]  ;;  %v3235_v59 = vld [vmem:[#allocation2 + $0x81] sm:$0xff] }
 0x36e   : > { %4592 = vmatmul.mubr.bf16.vlgmr.msra.gmra.mrb[224].mxu0 %v7950_v55  ;;  %6418 = vmatprep.subr.bf16.mxu1 %v6674_v0  ;;  %v6677_v55 = vld [vmem:[#allocation9 + $0x220] sm:$0xff]   ;;  %v3263_v37 = vpack.c.bf16 %v3235_v59, %v3234_v35 }
 0x36f   : > { %4599 = vmatprep.mubr.bf16.mxu0 %v3261_v53 }
 0x371   : > { %6419 = vmatpush3.bf16.msra.mxu1 %v6674_v0 }
 0x372   : > { %6420 = vmatprep.subr.bf16.mxu1 %v6675_v19 }
 0x374   : > { %4439 = vmatmul.mubr.bf16.gmra.mrb[196].mxu1 %v3260_v49 }
 0x375   : > { %4446 = vmatprep.mubr.bf16.mxu1 %v7969_v62  ;;  %6421 = vmatpush3.bf16.msra.mxu1 %v6675_v19  ;;  %v6679_v62 = vld [vmem:[#allocation9 + $0x230] sm:$0xff]  }
 0x376   : > { %4600 = vmatmul.mubr.bf16.gmra.mrb[228].mxu0 %v7956_v48  ;;  %6422 = vmatprep.subr.bf16.mxu1 %v6676_v15  ;;  %v3236_v48 = vld [vmem:[#allocation2 + $0x91] sm:$0xff] }
 0x377   : > { %4607 = vmatprep.mubr.bf16.mxu0 %v3262_v60  ;;  %v3264_v47 = vpack.c.bf16 %v3237_v16, %v3236_v48 }
 0x379   : > { %6423 = vmatpush3.bf16.msra.mxu1 %v6676_v15  ;;  %v3254_v15 = vld [vmem:[#allocation2 + $0x169] sm:$0xff] }
 0x37a   : > { %6424 = vmatprep.subr.bf16.mxu1 %v6677_v55 }
 0x37c   : > { %4447 = vmatmul.mubr.bf16.gmra.mrb[200].mxu1 %v3261_v53 }
 0x37d   : > { %4454 = vmatprep.mubr.bf16.mxu1 %v7979_v33  ;;  %6425 = vmatpush3.bf16.msra.mxu1 %v6677_v55  ;;  %v3238_v33 = vld [vmem:[#allocation2 + $0xa9] sm:$0xff] }
 0x37e   : > { %4608 = vmatmul.mubr.bf16.gmra.mrb[232].mxu0 %v7964_v26  ;;  %6426 = vmatprep.subr.bf16.mxu1 %v6678_v13  ;;  %v3239_v26 = vld [vmem:[#allocation2 + $0xb1] sm:$0xff] }
 0x37f   : > { %4615 = vmatprep.mubr.bf16.mxu0 %v3263_v37  ;;  %v3265_v22 = vpack.c.bf16 %v3239_v26, %v3238_v33 }
 0x381   : > { %6427 = vmatpush3.bf16.msra.mxu1 %v6678_v13 }
 0x382   : > { %6428 = vmatprep.subr.bf16.mxu1 %v6679_v62 }
 0x384   : > { %4455 = vmatmul.mubr.bf16.gmra.mrb[204].mxu1 %v3262_v60 }
 0x385   : > { %4462 = vmatprep.mubr.bf16.mxu1 %v7988_v41  ;;  %6429 = vmatpush3.bf16.msra.mxu1 %v6679_v62  ;;  %v3243_v41 = vld [vmem:[#allocation2 + $0xe1] sm:$0xff] }
 0x386   : > { %4616 = vmatmul.mubr.bf16.gmra.mrb[236].mxu0 %v7972_v56  ;;  %6430 = vmatprep.subr.bf16.mxu1 %v6680_v44  ;;  %v3242_v56 = vld [vmem:[#allocation2 + $0xd9] sm:$0xff] }
 0x387   : > { %4623 = vmatprep.mubr.bf16.mxu0 %v3264_v47  ;;  %v3267_v7 = vpack.c.bf16 %v3243_v41, %v3242_v56 }
 0x389   : > { %6431 = vmatpush3.bf16.msra.mxu1 %v6680_v44 }
 0x38c   : > { %4463 = vmatmul.mubr.bf16.gmra.mrb[208].mxu1 %v3263_v37 }
 0x38d   : > { %4470 = vmatprep.mubr.bf16.mxu1 %v7996_v20  ;;  %v3245_v20 = vld [vmem:[#allocation2 + $0xf9] sm:$0xff] }
 0x38e   : > { %4624 = vmatmul.mubr.bf16.gmra.mrb[240].mxu0 %v7983_v43  ;;  %v3244_v43 = vld [vmem:[#allocation2 + $0xf1] sm:$0xff] }
 0x38f   : > { %4631 = vmatprep.mubr.bf16.mxu0 %v3265_v22  ;;  %v3268_v10 = vpack.c.bf16 %v3245_v20, %v3244_v43 }
 0x394   : > { %4471 = vmatmul.mubr.bf16.gmra.mrb[212].mxu1 %v3264_v47 }
 0x395   : > { %4478 = vmatprep.mubr.bf16.mxu1 %v8004_v9  ;;  %v3247_v9 = vld [vmem:[#allocation2 + $0x111] sm:$0xff] }
 0x396   : > { %4632 = vmatmul.mubr.bf16.gmra.mrb[244].mxu0 %v7991_v29  ;;  %v3246_v29 = vld [vmem:[#allocation2 + $0x109] sm:$0xff] }
 0x397   : > { %4639 = vmatprep.mubr.bf16.mxu0 %v3266_v63  ;;  %v3269_v18 = vpack.c.bf16 %v3247_v9, %v3246_v29  ;;  %v3131_v9 = vld [vmem:[#allocation2 + $0x18a] sm:$0xff] }
 0x39c   : > { %4479 = vmatmul.mubr.bf16.gmra.mrb[216].mxu1 %v3265_v22  ;;  %v3256_v22 = vld [vmem:[#allocation2 + $0x181] sm:$0xff] }
 0x39d   : > { %4486 = vmatprep.mubr.bf16.mxu1 %v8012_v1  ;;  %v3249_v1 = vld [vmem:[#allocation2 + $0x129] sm:$0xff] }
 0x39e   : > { %4640 = vmatmul.mubr.bf16.gmra.mrb[248].mxu0 %v7999_v39  ;;  %v3248_v39 = vld [vmem:[#allocation2 + $0x121] sm:$0xff] }
 0x39f   : > { %4647 = vmatprep.mubr.bf16.mxu0 %v3267_v7  ;;  %v3270_v52 = vpack.c.bf16 %v3249_v1, %v3248_v39 }
 0x3a4   : > { %4487 = vmatmul.mubr.bf16.gmra.mrb[220].mxu1 %v3266_v63 }
 0x3a5   : > { %4494 = vmatprep.mubr.bf16.mxu1 %v8020_v3  ;;  %v3251_v3 = vld [vmem:[#allocation2 + $0x141] sm:$0xff] }
 0x3a6   : > { %4648 = vmatmul.mubr.bf16.gmra.mrb[252].mxu0 %v8007_v8  ;;  %v3250_v8 = vld [vmem:[#allocation2 + $0x139] sm:$0xff] }
 0x3a7   : > { %4655 = vmatprep.mubr.bf16.mxu0 %v3268_v10  ;;  %v3271_v4 = vpack.c.bf16 %v3251_v3, %v3250_v8  ;;  %v3259_v8 = vld [vmem:[#allocation2 + $0x1a1] sm:$0xff] }
 0x3ac   : > { %4495 = vmatmul.mubr.bf16.gmra.mrb[224].mxu1 %v3267_v7 }
 0x3ad   : > { %4502 = vmatprep.mubr.bf16.mxu1 %v8028_v61 }
 0x3ae   : > { %4656 = vmatmul.mubr.bf16.gmra.mrb[0].mxu0 %v8015_v27 }
 0x3af   : > { %4663 = vmatprep.mubr.bf16.mxu0 %v3269_v18 }
 0x3b4   : > { %4503 = vmatmul.mubr.bf16.gmra.mrb[228].mxu1 %v3268_v10 }
 0x3b5   : > { %4510 = vmatprep.mubr.bf16.mxu1 %v8036_v23  ;;  %v3253_v23 = vld [vmem:[#allocation2 + $0x159] sm:$0xff] }
 0x3b6   : > { %4664 = vmatmul.mubr.bf16.gmra.mrb[4].mxu0 %v8023_v51 }
 0x3b7   : > { %4671 = vmatprep.mubr.bf16.mxu0 %v3270_v52 }
 0x3bc   : > { %4511 = vmatmul.mubr.bf16.gmra.mrb[232].mxu1 %v3269_v18 }
 0x3bd   : > { %4518 = vmatprep.mubr.bf16.mxu1 %v8044_v40  ;;  %v3272_v40 = vpack.c.bf16 %v3253_v23, %v3252_v46 }
 0x3be   : > { %4672 = vmatmul.mubr.bf16.gmra.mrb[8].mxu0 %v8031_v28 }
 0x3bf   : > { %4679 = vmatprep.mubr.bf16.mxu0 %v3271_v4  ;;  %v5912_v27 = vpop.f32.mrb[128].mxu1 }
 0x3c0   : > { %v5913_v61 = vpop.f32.mrb[129].mxu1 }
 0x3c1   : > { %v6024_v2 = vpop.f32.mrb[160].mxu0  ;;  %v5914_v5 = vadd.f32 %v5913_v61, %v5912_v27  ;;  %v5915_v38 = vpop.f32.mrb[130].mxu1  ;;  %v3130_v61 = vld [vmem:[#allocation2 + $0x182] sm:$0xff] }
 0x3c2   : > { %v6025_v21 = vpop.f32.mrb[161].mxu0  ;;  %v5916_v51 = vpop.f32.mrb[131].mxu1 }
 0x3c3   : > { %v6026_v12 = vadd.f32 %v6025_v21, %v6024_v2  ;;  %v6027_v49 = vpop.f32.mrb[162].mxu0  ;;  %v5917_v57 = vadd.f32 %v5916_v51, %v5915_v38 }
 0x3c4   : > { %v6028_v11 = vpop.f32.mrb[163].mxu0  ;;  %4519 = vmatmul.mubr.bf16.gmra.mrb[236].mxu1 %v3270_v52  ;;  %v3258_v52 = vld [vmem:[#allocation2 + $0x199] sm:$0xff] }
 0x3c5   : > { %v8099_v30 = vadd.f32 %v6026_v12, %v5914_v5  ;;  %v6029_v32 = vadd.f32 %v6028_v11, %v6027_v49  ;;  %4526 = vmatprep.mubr.bf16.mxu1 %v8052_v54  ;;  %v8118_v5 = vpack.c.bf16 %v3131_v9, %v3130_v61  ;;  %v3275_v21 = vpack.c.bf16 %v3259_v8, %v3258_v52  ;;  %v3194_v49 = vld [vmem:[#allocation2 + $0x198] sm:$0xff]  ;;  %v3299_v9 = vld [vmem:[#allocation2 + $0x82] sm:$0xff] }
 0x3c6   : > { %4680 = vmatmul.mubr.bf16.gmra.mrb[12].mxu0 %v8039_v17  ;;  %v3273_v17 = vpack.c.bf16 %v8060_v42, %v3254_v15 }
 0x3c7   : > { %v8103_v28 = vadd.f32 %v6029_v32, %v5917_v57  ;;  %4687 = vmatprep.mubr.bf16.mxu0 %v3272_v40  ;;  %v5918_v24 = vpop.f32.mrb[132].mxu1  ;;  %v3293_v57 = vld [vmem:[#allocation2 + $0x3a] sm:$0xff] }
 0x3c8   : > { %v5919_v0 = vpop.f32.mrb[133].mxu1 }
 0x3c9   : > { %v6030_v53 = vpop.f32.mrb[164].mxu0  ;;  %v5920_v19 = vadd.f32 %v5919_v0, %v5918_v24  ;;  %v5921_v6 = vpop.f32.mrb[134].mxu1 }
 0x3ca   : > { %v6031_v45 = vpop.f32.mrb[165].mxu0  ;;  %v5922_v55 = vpop.f32.mrb[135].mxu1 }
 0x3cb   : > { %v6032_v60 = vadd.f32 %v6031_v45, %v6030_v53  ;;  %v6033_v35 = vpop.f32.mrb[166].mxu0  ;;  %v5923_v59 = vadd.f32 %v5922_v55, %v5921_v6  ;;  %v3292_v6 = vld [vmem:[#allocation2 + $0x32] sm:$0xff] }
 0x3cc   : > { %v6034_v13 = vpop.f32.mrb[167].mxu0  ;;  %4527 = vmatmul.mubr.bf16.gmra.mrb[240].mxu1 %v3271_v4 }
 0x3cd   : > { %v8105_v37 = vadd.f32 %v6032_v60, %v5920_v19  ;;  %v6035_v54 = vadd.f32 %v6034_v13, %v6033_v35  ;;  %4534 = vmatprep.mubr.bf16.mxu1 %v8064_v36  ;;  %v3195_v19 = vld [vmem:[#allocation2 + $0x1a0] sm:$0xff] }
 0x3ce   : > { %4688 = vmatmul.mubr.bf16.gmra.mrb[16].mxu0 %v8047_v25  ;;  %v3274_v25 = vpack.c.bf16 %v3257_v58, %v3256_v22  ;;  %v3211_v60 = vpack.c.bf16 %v3195_v19, %v3194_v49 }
 0x3cf   : > { %v8110_v62 = vadd.f32 %v6035_v54, %v5923_v59  ;;  %4695 = vmatprep.mubr.bf16.mxu0 %v3273_v17  ;;  %v5924_v48 = vpop.f32.mrb[136].mxu1  ;;  %v3295_v54 = vld [vmem:[#allocation2 + $0x52] sm:$0xff] }
 0x3d0   : > { %v5925_v16 = vpop.f32.mrb[137].mxu1 }
 0x3d1   : > { %v6036_v44 = vpop.f32.mrb[168].mxu0  ;;  %v5926_v47 = vadd.f32 %v5925_v16, %v5924_v48  ;;  %v5927_v33 = vpop.f32.mrb[138].mxu1  ;;  %v3297_v16 = vld [vmem:[#allocation2 + $0x6a] sm:$0xff] }
 0x3d2   : > { %v6037_v26 = vpop.f32.mrb[169].mxu0  ;;  %v5928_v63 = vpop.f32.mrb[139].mxu1 }
 0x3d3   : > { %v6038_v34 = vadd.f32 %v6037_v26, %v6036_v44  ;;  %v6039_v56 = vpop.f32.mrb[170].mxu0  ;;  %v5929_v41 = vadd.f32 %v5928_v63, %v5927_v33  ;;  %v3294_v26 = vld [vmem:[#allocation2 + $0x4a] sm:$0xff] }
 0x3d4   : > { %v6040_v42 = vpop.f32.mrb[171].mxu0  ;;  %4535 = vmatmul.mubr.bf16.gmra.mrb[244].mxu1 %v3272_v40  ;;  %v3325_v63 = vpack.c.bf16 %v3295_v54, %v3294_v26  ;;  %v3307_v26 = vld [vmem:[#allocation2 + $0xe2] sm:$0xff] }
 0x3d5   : > { %v8112_v7 = vadd.f32 %v6038_v34, %v5926_v47  ;;  %v6041_v36 = vadd.f32 %v6040_v42, %v6039_v56  ;;  %4542 = vmatprep.mubr.bf16.mxu1 %v8071_v31  ;;  %v3296_v56 = vld [vmem:[#allocation2 + $0x62] sm:$0xff] }
 0x3d6   : > { %4696 = vmatmul.mubr.bf16.gmra.mrb[20].mxu0 %v8055_v50 }
 0x3d7   : > { %v8116_v43 = vadd.f32 %v6041_v36, %v5929_v41  ;;  %4703 = vmatprep.mubr.bf16.mxu0 %v3274_v25  ;;  %v5930_v20 = vpop.f32.mrb[140].mxu1  ;;  %v3326_v36 = vpack.c.bf16 %v3297_v16, %v3296_v56 }
 0x3d8   : > { %v5931_v10 = vpop.f32.mrb[141].mxu1 }
 0x3d9   : > { %v6042_v29 = vpop.f32.mrb[172].mxu0  ;;  %v5932_v18 = vadd.f32 %v5931_v10, %v5930_v20  ;;  %v5933_v39 = vpop.f32.mrb[142].mxu1 }
 0x3da   : > { %v6043_v1 = vpop.f32.mrb[173].mxu0  ;;  %v5934_v4 = vpop.f32.mrb[143].mxu1 }
 0x3db   : > { %v6044_v3 = vadd.f32 %v6043_v1, %v6042_v29  ;;  %v6045_v27 = vpop.f32.mrb[174].mxu0  ;;  %v5935_v2 = vadd.f32 %v5934_v4, %v5933_v39  ;;  %v3301_v1 = vld [vmem:[#allocation2 + $0x9a] sm:$0xff] }
 0x3dc   : > { %v6046_v31 = vpop.f32.mrb[175].mxu0  ;;  %4543 = vmatmul.mubr.bf16.gmra.mrb[248].mxu1 %v3273_v17  ;;  %v3298_v4 = vld [vmem:[#allocation2 + $0x7a] sm:$0xff] }
 0x3dd   : > { %v8120_v50 = vadd.f32 %v6044_v3, %v5932_v18  ;;  %v6047_v38 = vadd.f32 %v6046_v31, %v6045_v27  ;;  %4550 = vmatprep.mubr.bf16.mxu1 %v8118_v5  ;;  %v3327_v31 = vpack.c.bf16 %v3299_v9, %v3298_v4 }
 0x3de   : > { %4704 = vmatmul.mubr.bf16.gmra.mrb[24].mxu0 %v8067_v14  ;;  %v3324_v14 = vpack.c.bf16 %v3293_v57, %v3292_v6 }
 0x3df   : > { %v8124_v46 = vadd.f32 %v6047_v38, %v5935_v2  ;;  %4711 = vmatprep.mubr.bf16.mxu0 %v3275_v21  ;;  %v5936_v23 = vpop.f32.mrb[144].mxu1  ;;  %v3300_v38 = vld [vmem:[#allocation2 + $0x92] sm:$0xff] }
 0x3e0   : > { %v5937_v12 = vpop.f32.mrb[145].mxu1 }
 0x3e1   : > { %v6048_v51 = vpop.f32.mrb[176].mxu0  ;;  %v5938_v11 = vadd.f32 %v5937_v12, %v5936_v23  ;;  %v5939_v32 = vpop.f32.mrb[146].mxu1  ;;  %v3328_v12 = vpack.c.bf16 %v3301_v1, %v3300_v38  ;;  %v3313_v38 = vld [vmem:[#allocation2 + $0x12a] sm:$0xff] }
 0x3e2   : > { %v6049_v40 = vpop.f32.mrb[177].mxu0  ;;  %v5940_v0 = vpop.f32.mrb[147].mxu1 }
 0x3e3   : > { %v6050_v24 = vadd.f32 %v6049_v40, %v6048_v51  ;;  %v6051_v53 = vpop.f32.mrb[178].mxu0  ;;  %v5941_v45 = vadd.f32 %v5940_v0, %v5939_v32  ;;  %v3303_v32 = vld [vmem:[#allocation2 + $0xb2] sm:$0xff]  ;;  %v3305_v0 = vld [vmem:[#allocation2 + $0xca] sm:$0xff] }
 0x3e4   : > { %v6052_v15 = vpop.f32.mrb[179].mxu0  ;;  %4551 = vmatmul.mubr.bf16.gmra.mrb[252].mxu1 %v3274_v25 }
 0x3e5   : > { %v8126_v55 = vadd.f32 %v6050_v24, %v5938_v11  ;;  %v6053_v35 = vadd.f32 %v6052_v15, %v6051_v53  ;;  %6432 = vmatprep.mubr.bf16.mxu1 %v3324_v14 }
 0x3e6   : > { %4712 = vmatmul.mubr.bf16.gmra.mrb[28].mxu0 %v3211_v60 }
 0x3e7   : > { %v8128_v59 = vadd.f32 %v6053_v35, %v5941_v45  ;;  %v5942_v13 = vpop.f32.mrb[148].mxu1  ;;  %v3302_v45 = vld [vmem:[#allocation2 + $0xaa] sm:$0xff] }
 0x3e8   : > { %v5943_v17 = vpop.f32.mrb[149].mxu1  ;;  %v3329_v35 = vpack.c.bf16 %v3303_v32, %v3302_v45 }
 0x3e9   : > { %v6054_v48 = vpop.f32.mrb[180].mxu0  ;;  %v5944_v44 = vadd.f32 %v5943_v17, %v5942_v13  ;;  %v5945_v47 = vpop.f32.mrb[150].mxu1  ;;  %v3304_v13 = vld [vmem:[#allocation2 + $0xc2] sm:$0xff] }
 0x3ea   : > { %v6055_v33 = vpop.f32.mrb[181].mxu0  ;;  %v5946_v58 = vpop.f32.mrb[151].mxu1 }
 0x3eb   : > { %v6056_v22 = vadd.f32 %v6055_v33, %v6054_v48  ;;  %v6057_v34 = vpop.f32.mrb[182].mxu0  ;;  %v5947_v41 = vadd.f32 %v5946_v58, %v5945_v47  ;;  %v3330_v48 = vpack.c.bf16 %v3305_v0, %v3304_v13  ;;  %v3312_v0 = vld [vmem:[#allocation2 + $0x122] sm:$0xff] }
 0x3ec   : > { %v6058_v42 = vpop.f32.mrb[183].mxu0  ;;  %6433 = vmatmul.mubr.bf16.vlgmr.msra.gmra.mrb[0].mxu1 %v3325_v63 }
 0x3ed   : > { %v8130_v25 = vadd.f32 %v6056_v22, %v5944_v44  ;;  %v6059_v20 = vadd.f32 %v6058_v42, %v6057_v34  ;;  %6436 = vmatprep.mubr.bf16.mxu1 %v3326_v36  ;;  %v3309_v34 = vld [vmem:[#allocation2 + $0xfa] sm:$0xff] }
 0x3ee   : > { %v3306_v42 = vld [vmem:[#allocation2 + $0xda] sm:$0xff] }
 0x3ef   : > { %v8132_v10 = vadd.f32 %v6059_v20, %v5947_v41  ;;  %v5948_v29 = vpop.f32.mrb[152].mxu1  ;;  %v3331_v9 = vpack.c.bf16 %v3307_v26, %v3306_v42  ;;  %v3314_v26 = vld [vmem:[#allocation2 + $0x13a] sm:$0xff] }
 0x3f0   : > { %v5949_v18 = vpop.f32.mrb[153].mxu1 }
 0x3f1   : > { %v6060_v39 = vpop.f32.mrb[184].mxu0  ;;  %v5950_v52 = vadd.f32 %v5949_v18, %v5948_v29  ;;  %v5951_v8 = vpop.f32.mrb[154].mxu1  ;;  %v3308_v18 = vld [vmem:[#allocation2 + $0xf2] sm:$0xff] }
 0x3f2   : > { %v6061_v3 = vpop.f32.mrb[185].mxu0  ;;  %v5952_v61 = vpop.f32.mrb[155].mxu1 }
 0x3f3   : > { %v6062_v27 = vadd.f32 %v6061_v3, %v6060_v39  ;;  %v6063_v2 = vpop.f32.mrb[186].mxu0  ;;  %v5953_v21 = vadd.f32 %v5952_v61, %v5951_v8  ;;  %v3311_v61 = vld [vmem:[#allocation2 + $0x112] sm:$0xff] }
 0x3f4   : > { %v6064_v23 = vpop.f32.mrb[187].mxu0  ;;  %6437 = vmatmul.mubr.bf16.gmra.mrb[4].mxu1 %v3327_v31 }
 0x3f5   : > { %v8134_v51 = vadd.f32 %v6062_v27, %v5950_v52  ;;  %v6065_v49 = vadd.f32 %v6064_v23, %v6063_v2  ;;  %6440 = vmatprep.mubr.bf16.mxu1 %v3328_v12  ;;  %v3332_v52 = vpack.c.bf16 %v3309_v34, %v3308_v18 }
 0x3f7   : > { %v8136_v57 = vadd.f32 %v6065_v49, %v5953_v21  ;;  %v5954_v11 = vpop.f32.mrb[156].mxu1  ;;  %v3310_v49 = vld [vmem:[#allocation2 + $0x10a] sm:$0xff] }
 0x3f8   : > { %v5955_v40 = vpop.f32.mrb[157].mxu1 }
 0x3f9   : > { %v6066_v24 = vpop.f32.mrb[188].mxu0  ;;  %v5956_v53 = vadd.f32 %v5955_v40, %v5954_v11  ;;  %v5957_v19 = vpop.f32.mrb[158].mxu1 }
 0x3fa   : > { %v6067_v6 = vpop.f32.mrb[189].mxu0  ;;  %v5958_v60 = vpop.f32.mrb[159].mxu1 }
 0x3fb   : > { %v6068_v15 = vadd.f32 %v6067_v6, %v6066_v24  ;;  %v6069_v14 = vpop.f32.mrb[190].mxu0  ;;  %v5959_v54 = vadd.f32 %v5958_v60, %v5957_v19  ;;  %v3333_v24 = vpack.c.bf16 %v3311_v61, %v3310_v49  ;;  %v3334_v6 = vpack.c.bf16 %v3313_v38, %v3312_v0  ;;  %v3323_v0 = vld [vmem:[#allocation2 + $0x1a2] sm:$0xff] }
 0x3fc   : > { %v6070_v17 = vpop.f32.mrb[191].mxu0  ;;  %6441 = vmatmul.mubr.bf16.gmra.mrb[8].mxu1 %v3329_v35  ;;  %v3315_v35 = vld [vmem:[#allocation2 + $0x142] sm:$0xff] }
 0x3fd   : > { %v8138_v16 = vadd.f32 %v6068_v15, %v5956_v53  ;;  %v6071_v44 = vadd.f32 %v6070_v17, %v6069_v14  ;;  %6444 = vmatprep.mubr.bf16.mxu1 %v3330_v48  ;;  %v3317_v17 = vld [vmem:[#allocation2 + $0x15a] sm:$0xff] }
 0x3ff   : > { %v8140_v47 = vadd.f32 %v6071_v44, %v5959_v54  ;;  %v5960_v33 = vpop.f32.mrb[160].mxu1 }
 0x400   : > { %v5961_v22 = vpop.f32.mrb[161].mxu1 }
 0x401   : > { %v6072_v58 = vpop.f32.mrb[192].mxu0  ;;  %v5962_v63 = vadd.f32 %v5961_v22, %v5960_v33  ;;  %v5963_v56 = vpop.f32.mrb[162].mxu1 }
 0x402   : > { %v6073_v41 = vpop.f32.mrb[193].mxu0  ;;  %v5964_v20 = vpop.f32.mrb[163].mxu1 }
 0x403   : > { %v6074_v36 = vadd.f32 %v6073_v41, %v6072_v58  ;;  %v6075_v29 = vpop.f32.mrb[194].mxu0  ;;  %v5965_v39 = vadd.f32 %v5964_v20, %v5963_v56  ;;  %v3316_v56 = vld [vmem:[#allocation2 + $0x152] sm:$0xff] }
 0x404   : > { %v6076_v1 = vpop.f32.mrb[195].mxu0  ;;  %6445 = vmatmul.mubr.bf16.gmra.mrb[12].mxu1 %v3331_v9 }
 0x405   : > { %v8142_v8 = vadd.f32 %v6074_v36, %v5962_v63  ;;  %v6077_v3 = vadd.f32 %v6076_v1, %v6075_v29  ;;  %6448 = vmatprep.mubr.bf16.mxu1 %v3332_v52  ;;  %v3335_v63 = vpack.c.bf16 %v3315_v35, %v3314_v26  ;;  %v3336_v36 = vpack.c.bf16 %v3317_v17, %v3316_v56  ;;  %v3322_v35 = vld [vmem:[#allocation2 + $0x19a] sm:$0xff] }
 0x407   : > { %v8144_v4 = vadd.f32 %v6077_v3, %v5965_v39  ;;  %v5966_v27 = vpop.f32.mrb[164].mxu1  ;;  %v3319_v39 = vld [vmem:[#allocation2 + $0x172] sm:$0xff] }
 0x408   : > { %v5967_v2 = vpop.f32.mrb[165].mxu1 }
 0x409   : > { %v6078_v31 = vpop.f32.mrb[196].mxu0  ;;  %v5968_v21 = vadd.f32 %v5967_v2, %v5966_v27  ;;  %v5969_v23 = vpop.f32.mrb[166].mxu1  ;;  %v3318_v2 = vld [vmem:[#allocation2 + $0x16a] sm:$0xff] }
 0x40a   : > { %v6079_v12 = vpop.f32.mrb[197].mxu0  ;;  %v5970_v32 = vpop.f32.mrb[167].mxu1 }
 0x40b   : > { %v6080_v11 = vadd.f32 %v6079_v12, %v6078_v31  ;;  %v6081_v40 = vpop.f32.mrb[198].mxu0  ;;  %v5971_v53 = vadd.f32 %v5970_v32, %v5969_v23  ;;  %v3337_v23 = vpack.c.bf16 %v3319_v39, %v3318_v2 }
 0x40c   : > { %v6082_v19 = vpop.f32.mrb[199].mxu0  ;;  %6449 = vmatmul.mubr.bf16.gmra.mrb[16].mxu1 %v3333_v24 }
 0x40d   : > { %v8146_v45 = vadd.f32 %v6080_v11, %v5968_v21  ;;  %v6083_v15 = vadd.f32 %v6082_v19, %v6081_v40  ;;  %6452 = vmatprep.mubr.bf16.mxu1 %v3334_v6 }
 0x40f   : > { %v8148_v60 = vadd.f32 %v6083_v15, %v5971_v53  ;;  %v5972_v14 = vpop.f32.mrb[168].mxu1 }
 0x410   : > { %v5973_v13 = vpop.f32.mrb[169].mxu1 }
 0x411   : > { %v6084_v54 = vpop.f32.mrb[200].mxu0  ;;  %v5974_v48 = vadd.f32 %v5973_v13, %v5972_v14  ;;  %v5975_v44 = vpop.f32.mrb[170].mxu1 }
 0x412   : > { %v6085_v33 = vpop.f32.mrb[201].mxu0  ;;  %v5976_v58 = vpop.f32.mrb[171].mxu1 }
 0x413   : > { %v6086_v22 = vadd.f32 %v6085_v33, %v6084_v54  ;;  %v6087_v34 = vpop.f32.mrb[202].mxu0  ;;  %v5977_v41 = vadd.f32 %v5976_v58, %v5975_v44 }
 0x414   : > { %v6088_v42 = vpop.f32.mrb[203].mxu0  ;;  %6453 = vmatmul.mubr.bf16.gmra.mrb[20].mxu1 %v3335_v63 }
 0x415   : > { %v8150_v20 = vadd.f32 %v6086_v22, %v5974_v48  ;;  %v6089_v29 = vadd.f32 %v6088_v42, %v6087_v34  ;;  %6456 = vmatprep.mubr.bf16.mxu1 %v3336_v36  ;;  %v3339_v48 = vpack.c.bf16 %v3323_v0, %v3322_v35 }
 0x417   : > { %v8152_v9 = vadd.f32 %v6089_v29, %v5977_v41  ;;  %v5978_v18 = vpop.f32.mrb[172].mxu1 }
 0x418   : > { %v5979_v1 = vpop.f32.mrb[173].mxu1 }
 0x419   : > { %v6090_v52 = vpop.f32.mrb[204].mxu0  ;;  %v5980_v3 = vadd.f32 %v5979_v1, %v5978_v18  ;;  %v5981_v27 = vpop.f32.mrb[174].mxu1 }
 0x41a   : > { %v6091_v61 = vpop.f32.mrb[205].mxu0  ;;  %v5982_v38 = vpop.f32.mrb[175].mxu1 }
 0x41b   : > { %v6092_v31 = vadd.f32 %v6091_v61, %v6090_v52  ;;  %v6093_v21 = vpop.f32.mrb[206].mxu0  ;;  %v5983_v12 = vadd.f32 %v5982_v38, %v5981_v27 }
 0x41c   : > { %v6094_v49 = vpop.f32.mrb[207].mxu0  ;;  %6457 = vmatmul.mubr.bf16.gmra.mrb[24].mxu1 %v3337_v23 }
 0x41d   : > { %v8154_v11 = vadd.f32 %v6092_v31, %v5980_v3  ;;  %v6095_v32 = vadd.f32 %v6094_v49, %v6093_v21  ;;  %6460 = vmatprep.mubr.bf16.mxu1 %v8118_v5 }
 0x41f   : > { %v8157_v40 = vadd.f32 %v6095_v32, %v5983_v12  ;;  %v5984_v24 = vpop.f32.mrb[176].mxu1 }
 0x420   : > { %v5985_v53 = vpop.f32.mrb[177].mxu1 }
 0x421   : > { %v6096_v19 = vpop.f32.mrb[208].mxu0  ;;  %v5986_v6 = vadd.f32 %v5985_v53, %v5984_v24  ;;  %v5987_v15 = vpop.f32.mrb[178].mxu1 }
 0x422   : > { %v6097_v14 = vpop.f32.mrb[209].mxu0  ;;  %v5988_v54 = vpop.f32.mrb[179].mxu1 }
 0x423   : > { %v6098_v13 = vadd.f32 %v6097_v14, %v6096_v19  ;;  %v6099_v17 = vpop.f32.mrb[210].mxu0  ;;  %v5989_v44 = vadd.f32 %v5988_v54, %v5987_v15 }
 0x424   : > { %v6100_v33 = vpop.f32.mrb[211].mxu0  ;;  %6461 = vmatmul.mubr.bf16.gmra.mrb[28].mxu1 %v3339_v48 }
 0x425   : > { %v8159_v26 = vadd.f32 %v6098_v13, %v5986_v6  ;;  %v6101_v22 = vadd.f32 %v6100_v33, %v6099_v17 }
 0x427   : > { %v8161_v5 = vadd.f32 %v6101_v22, %v5989_v44  ;;  %v5990_v58 = vpop.f32.mrb[180].mxu1 }
 0x428   : > { %v5991_v34 = vpop.f32.mrb[181].mxu1 }
 0x429   : > { %v6102_v63 = vpop.f32.mrb[212].mxu0  ;;  %v5992_v56 = vadd.f32 %v5991_v34, %v5990_v58  ;;  %v5993_v41 = vpop.f32.mrb[182].mxu1 }
 0x42a   : > { %v6103_v42 = vpop.f32.mrb[213].mxu0  ;;  %v5994_v29 = vpop.f32.mrb[183].mxu1 }
 0x42b   : > { %v6104_v36 = vadd.f32 %v6103_v42, %v6102_v63  ;;  %v6105_v18 = vpop.f32.mrb[214].mxu0  ;;  %v5995_v39 = vadd.f32 %v5994_v29, %v5993_v41 }
 0x42c   : > { %v6106_v1 = vpop.f32.mrb[215].mxu0 }
 0x42d   : > { %v8163_v52 = vadd.f32 %v6104_v36, %v5992_v56  ;;  %v6107_v3 = vadd.f32 %v6106_v1, %v6105_v18 }
 0x42f   : > { %v8165_v27 = vadd.f32 %v6107_v3, %v5995_v39  ;;  %v5996_v61 = vpop.f32.mrb[184].mxu1 }
 0x430   : > { %v5997_v2 = vpop.f32.mrb[185].mxu1 }
 0x431   : > { %v6108_v31 = vpop.f32.mrb[216].mxu0  ;;  %v5998_v38 = vadd.f32 %v5997_v2, %v5996_v61  ;;  %v5999_v21 = vpop.f32.mrb[186].mxu1 }
 0x432   : > { %v6109_v23 = vpop.f32.mrb[217].mxu0  ;;  %v6000_v49 = vpop.f32.mrb[187].mxu1 }
 0x433   : > { %v6110_v12 = vadd.f32 %v6109_v23, %v6108_v31  ;;  %v6111_v32 = vpop.f32.mrb[218].mxu0  ;;  %v6001_v24 = vadd.f32 %v6000_v49, %v5999_v21 }
 0x434   : > { %v6112_v0 = vpop.f32.mrb[219].mxu0 }
 0x435   : > { %v8167_v53 = vadd.f32 %v6110_v12, %v5998_v38  ;;  %v6113_v19 = vadd.f32 %v6112_v0, %v6111_v32 }
 0x437   : > { %v8169_v6 = vadd.f32 %v6113_v19, %v6001_v24  ;;  %v6002_v15 = vpop.f32.mrb[188].mxu1 }
 0x438   : > { %v6003_v14 = vpop.f32.mrb[189].mxu1 }
 0x439   : > { %v6114_v35 = vpop.f32.mrb[220].mxu0  ;;  %v6004_v13 = vadd.f32 %v6003_v14, %v6002_v15  ;;  %v6005_v54 = vpop.f32.mrb[190].mxu1 }
 0x43a   : > { %v6115_v17 = vpop.f32.mrb[221].mxu0  ;;  %v6006_v44 = vpop.f32.mrb[191].mxu1 }
 0x43b   : > { %v6116_v48 = vadd.f32 %v6115_v17, %v6114_v35  ;;  %v6117_v33 = vpop.f32.mrb[222].mxu0  ;;  %v6007_v22 = vadd.f32 %v6006_v44, %v6005_v54 }
 0x43c   : > { %v6118_v58 = vpop.f32.mrb[223].mxu0 }
 0x43d   : > { %v8171_v34 = vadd.f32 %v6116_v48, %v6004_v13  ;;  %v6119_v63 = vadd.f32 %v6118_v58, %v6117_v33 }
 0x43f   : > { %v8173_v56 = vadd.f32 %v6119_v63, %v6007_v22  ;;  %v6136_v41 = vpop.f32.mrb[192].mxu1 }
 0x440   : > { %v6137_v42 = vpop.f32.mrb[193].mxu1 }
 0x441   : > { %v6248_v36 = vpop.f32.mrb[224].mxu0  ;;  %v6138_v29 = vadd.f32 %v6137_v42, %v6136_v41  ;;  %v6139_v18 = vpop.f32.mrb[194].mxu1 }
 0x442   : > { %v6249_v39 = vpop.f32.mrb[225].mxu0  ;;  %v6140_v3 = vpop.f32.mrb[195].mxu1 }
 0x443   : > { %v6250_v1 = vadd.f32 %v6249_v39, %v6248_v36  ;;  %v6251_v61 = vpop.f32.mrb[226].mxu0  ;;  %v4433_v2 = vadd.f32 %v6138_v29, %v8099_v30  ;;  %v6141_v31 = vadd.f32 %v6140_v3, %v6139_v18 }
 0x444   : > { %v6252_v38 = vpop.f32.mrb[227].mxu0 }
 0x445   : > { %v6253_v21 = vadd.f32 %v6252_v38, %v6251_v61  ;;  %v4436_v23 = vadd.f32 %v6141_v31, %v8103_v28  ;;  %v8177_v12 = vadd.f32 %v6250_v1, %v4433_v2 }
 0x447   : > { %v6142_v49 = vpop.f32.mrb[196].mxu1  ;;  %v8179_v32 = vadd.f32 %v6253_v21, %v4436_v23 }
 0x448   : > { %v6143_v24 = vpop.f32.mrb[197].mxu1 }
 0x449   : > { %v6254_v0 = vpop.f32.mrb[228].mxu0  ;;  %v6144_v19 = vadd.f32 %v6143_v24, %v6142_v49  ;;  %v6145_v15 = vpop.f32.mrb[198].mxu1 }
 0x44a   : > { %v6255_v14 = vpop.f32.mrb[229].mxu0  ;;  %v6146_v13 = vpop.f32.mrb[199].mxu1 }
 0x44b   : > { %v6256_v35 = vadd.f32 %v6255_v14, %v6254_v0  ;;  %v6257_v54 = vpop.f32.mrb[230].mxu0  ;;  %v4441_v30 = vadd.f32 %v6144_v19, %v8105_v37  ;;  %v6147_v17 = vadd.f32 %v6146_v13, %v6145_v15 }
 0x44c   : > { %v6258_v48 = vpop.f32.mrb[231].mxu0 }
 0x44d   : > { %v6259_v44 = vadd.f32 %v6258_v48, %v6257_v54  ;;  %v4444_v28 = vadd.f32 %v6147_v17, %v8110_v62  ;;  %v8183_v33 = vadd.f32 %v6256_v35, %v4441_v30 }
 0x44f   : > { %v6148_v22 = vpop.f32.mrb[200].mxu1  ;;  %v8185_v58 = vadd.f32 %v6259_v44, %v4444_v28 }
 0x450   : > { %v6149_v63 = vpop.f32.mrb[201].mxu1 }
 0x451   : > { %v6260_v41 = vpop.f32.mrb[232].mxu0  ;;  %v6150_v42 = vadd.f32 %v6149_v63, %v6148_v22  ;;  %v6151_v36 = vpop.f32.mrb[202].mxu1 }
 0x452   : > { %v6261_v29 = vpop.f32.mrb[233].mxu0  ;;  %v6152_v39 = vpop.f32.mrb[203].mxu1 }
 0x453   : > { %v6262_v18 = vadd.f32 %v6261_v29, %v6260_v41  ;;  %v6263_v1 = vpop.f32.mrb[234].mxu0  ;;  %v4449_v37 = vadd.f32 %v6150_v42, %v8112_v7  ;;  %v6153_v3 = vadd.f32 %v6152_v39, %v6151_v36 }
 0x454   : > { %v6264_v61 = vpop.f32.mrb[235].mxu0 }
 0x455   : > { %v6265_v2 = vadd.f32 %v6264_v61, %v6263_v1  ;;  %v4452_v62 = vadd.f32 %v6153_v3, %v8116_v43  ;;  %v8189_v31 = vadd.f32 %v6262_v18, %v4449_v37 }
 0x457   : > { %v6154_v38 = vpop.f32.mrb[204].mxu1  ;;  %v8191_v21 = vadd.f32 %v6265_v2, %v4452_v62 }
 0x458   : > { %v6155_v23 = vpop.f32.mrb[205].mxu1 }
 0x459   : > { %v6266_v49 = vpop.f32.mrb[236].mxu0  ;;  %v6156_v24 = vadd.f32 %v6155_v23, %v6154_v38  ;;  %v6157_v0 = vpop.f32.mrb[206].mxu1 }
 0x45a   : > { %v6267_v19 = vpop.f32.mrb[237].mxu0  ;;  %v6158_v14 = vpop.f32.mrb[207].mxu1 }
 0x45b   : > { %v6268_v15 = vadd.f32 %v6267_v19, %v6266_v49  ;;  %v6269_v35 = vpop.f32.mrb[238].mxu0  ;;  %v4457_v7 = vadd.f32 %v6156_v24, %v8120_v50  ;;  %v6159_v13 = vadd.f32 %v6158_v14, %v6157_v0 }
 0x45c   : > { %v6270_v54 = vpop.f32.mrb[239].mxu0 }
 0x45d   : > { %v6271_v30 = vadd.f32 %v6270_v54, %v6269_v35  ;;  %v4460_v43 = vadd.f32 %v6159_v13, %v8124_v46  ;;  %v8195_v17 = vadd.f32 %v6268_v15, %v4457_v7 }
 0x45f   : > { %v6160_v48 = vpop.f32.mrb[208].mxu1  ;;  %v8197_v44 = vadd.f32 %v6271_v30, %v4460_v43 }
 0x460   : > { %v6161_v28 = vpop.f32.mrb[209].mxu1 }
 0x461   : > { %v6272_v22 = vpop.f32.mrb[240].mxu0  ;;  %v6162_v63 = vadd.f32 %v6161_v28, %v6160_v48  ;;  %v6163_v41 = vpop.f32.mrb[210].mxu1 }
 0x462   : > { %v6273_v42 = vpop.f32.mrb[241].mxu0  ;;  %v6164_v29 = vpop.f32.mrb[211].mxu1 }
 0x463   : > { %v6274_v36 = vadd.f32 %v6273_v42, %v6272_v22  ;;  %v6275_v18 = vpop.f32.mrb[242].mxu0  ;;  %v4465_v50 = vadd.f32 %v6162_v63, %v8126_v55  ;;  %v6165_v39 = vadd.f32 %v6164_v29, %v6163_v41 }
 0x464   : > { %v6276_v1 = vpop.f32.mrb[243].mxu0 }
 0x465   : > { %v6277_v37 = vadd.f32 %v6276_v1, %v6275_v18  ;;  %v4468_v46 = vadd.f32 %v6165_v39, %v8128_v59  ;;  %v8201_v3 = vadd.f32 %v6274_v36, %v4465_v50 }
 0x467   : > { %v6166_v61 = vpop.f32.mrb[212].mxu1  ;;  %v8203_v2 = vadd.f32 %v6277_v37, %v4468_v46 }
 0x468   : > { %v6167_v62 = vpop.f32.mrb[213].mxu1 }
 0x469   : > { %v6278_v38 = vpop.f32.mrb[244].mxu0  ;;  %v6168_v23 = vadd.f32 %v6167_v62, %v6166_v61  ;;  %v6169_v49 = vpop.f32.mrb[214].mxu1 }
 0x46a   : > { %v6279_v24 = vpop.f32.mrb[245].mxu0  ;;  %v6170_v19 = vpop.f32.mrb[215].mxu1 }
 0x46b   : > { %v6280_v0 = vadd.f32 %v6279_v24, %v6278_v38  ;;  %v6281_v15 = vpop.f32.mrb[246].mxu0  ;;  %v4473_v55 = vadd.f32 %v6168_v23, %v8130_v25  ;;  %v6171_v14 = vadd.f32 %v6170_v19, %v6169_v49 }
 0x46c   : > { %v6282_v35 = vpop.f32.mrb[247].mxu0 }
 0x46d   : > { %v6283_v7 = vadd.f32 %v6282_v35, %v6281_v15  ;;  %v4476_v59 = vadd.f32 %v6171_v14, %v8132_v10  ;;  %v8207_v13 = vadd.f32 %v6280_v0, %v4473_v55 }
 0x46f   : > { %v6172_v54 = vpop.f32.mrb[216].mxu1  ;;  %v8209_v30 = vadd.f32 %v6283_v7, %v4476_v59 }
 0x470   : > { %v6173_v43 = vpop.f32.mrb[217].mxu1 }
 0x471   : > { %v6284_v48 = vpop.f32.mrb[248].mxu0  ;;  %v6174_v28 = vadd.f32 %v6173_v43, %v6172_v54  ;;  %v6175_v22 = vpop.f32.mrb[218].mxu1 }
 0x472   : > { %v6285_v63 = vpop.f32.mrb[249].mxu0  ;;  %v6176_v42 = vpop.f32.mrb[219].mxu1 }
 0x473   : > { %v6286_v41 = vadd.f32 %v6285_v63, %v6284_v48  ;;  %v6287_v36 = vpop.f32.mrb[250].mxu0  ;;  %v4481_v25 = vadd.f32 %v6174_v28, %v8134_v51  ;;  %v6177_v29 = vadd.f32 %v6176_v42, %v6175_v22 }
 0x474   : > { %v6288_v18 = vpop.f32.mrb[251].mxu0 }
 0x475   : > { %v6289_v50 = vadd.f32 %v6288_v18, %v6287_v36  ;;  %v4484_v10 = vadd.f32 %v6177_v29, %v8136_v57  ;;  %v8213_v39 = vadd.f32 %v6286_v41, %v4481_v25 }
 0x477   : > { %v6178_v1 = vpop.f32.mrb[220].mxu1  ;;  %v8215_v37 = vadd.f32 %v6289_v50, %v4484_v10 }
 0x478   : > { %v6179_v46 = vpop.f32.mrb[221].mxu1 }
 0x479   : > { %v6290_v61 = vpop.f32.mrb[252].mxu0  ;;  %v6180_v62 = vadd.f32 %v6179_v46, %v6178_v1  ;;  %v6181_v38 = vpop.f32.mrb[222].mxu1 }
 0x47a   : > { %v6291_v23 = vpop.f32.mrb[253].mxu0  ;;  %v6182_v24 = vpop.f32.mrb[223].mxu1 }
 0x47b   : > { %v6292_v49 = vadd.f32 %v6291_v23, %v6290_v61  ;;  %v6293_v0 = vpop.f32.mrb[254].mxu0  ;;  %v4489_v51 = vadd.f32 %v6180_v62, %v8138_v16  ;;  %v6183_v19 = vadd.f32 %v6182_v24, %v6181_v38 }
 0x47c   : > { %v6294_v15 = vpop.f32.mrb[255].mxu0 }
 0x47d   : > { %v6295_v55 = vadd.f32 %v6294_v15, %v6293_v0  ;;  %v4492_v57 = vadd.f32 %v6183_v19, %v8140_v47  ;;  %v8219_v14 = vadd.f32 %v6292_v49, %v4489_v51 }
 0x47f   : > { %v6184_v35 = vpop.f32.mrb[224].mxu1  ;;  %v8221_v7 = vadd.f32 %v6295_v55, %v4492_v57 }
 0x480   : > { %v6185_v59 = vpop.f32.mrb[225].mxu1 }
 0x481   : > { %v6296_v54 = vpop.f32.mrb[0].mxu0  ;;  %v6186_v43 = vadd.f32 %v6185_v59, %v6184_v35  ;;  %v6187_v48 = vpop.f32.mrb[226].mxu1 }
 0x482   : > { %v6297_v28 = vpop.f32.mrb[1].mxu0  ;;  %v6188_v63 = vpop.f32.mrb[227].mxu1 }
 0x483   : > { %v6298_v22 = vadd.f32 %v6297_v28, %v6296_v54  ;;  %v6299_v41 = vpop.f32.mrb[2].mxu0  ;;  %v4497_v16 = vadd.f32 %v6186_v43, %v8142_v8  ;;  %v6189_v42 = vadd.f32 %v6188_v63, %v6187_v48 }
 0x484   : > { %v6300_v36 = vpop.f32.mrb[3].mxu0 }
 0x485   : > { %v6301_v25 = vadd.f32 %v6300_v36, %v6299_v41  ;;  %v4500_v47 = vadd.f32 %v6189_v42, %v8144_v4  ;;  %v8225_v29 = vadd.f32 %v6298_v22, %v4497_v16 }
 0x487   : > { %v6190_v18 = vpop.f32.mrb[228].mxu1  ;;  %v8227_v50 = vadd.f32 %v6301_v25, %v4500_v47 }
 0x488   : > { %v6191_v10 = vpop.f32.mrb[229].mxu1 }
 0x489   : > { %v6302_v1 = vpop.f32.mrb[4].mxu0  ;;  %v6192_v46 = vadd.f32 %v6191_v10, %v6190_v18  ;;  %v6193_v61 = vpop.f32.mrb[230].mxu1 }
 0x48a   : > { %v6303_v62 = vpop.f32.mrb[5].mxu0  ;;  %v6194_v23 = vpop.f32.mrb[231].mxu1 }
 0x48b   : > { %v6304_v38 = vadd.f32 %v6303_v62, %v6302_v1  ;;  %v6305_v49 = vpop.f32.mrb[6].mxu0  ;;  %v4505_v8 = vadd.f32 %v6192_v46, %v8146_v45  ;;  %v6195_v24 = vadd.f32 %v6194_v23, %v6193_v61 }
 0x48c   : > { %v6306_v0 = vpop.f32.mrb[7].mxu0 }
 0x48d   : > { %v6307_v51 = vadd.f32 %v6306_v0, %v6305_v49  ;;  %v4508_v4 = vadd.f32 %v6195_v24, %v8148_v60  ;;  %v8231_v19 = vadd.f32 %v6304_v38, %v4505_v8 }
 0x48f   : > { %v6196_v15 = vpop.f32.mrb[232].mxu1  ;;  %v8233_v55 = vadd.f32 %v6307_v51, %v4508_v4 }
 0x490   : > { %v6197_v57 = vpop.f32.mrb[233].mxu1 }
 0x491   : > { %v6308_v35 = vpop.f32.mrb[8].mxu0  ;;  %v6198_v59 = vadd.f32 %v6197_v57, %v6196_v15  ;;  %v6199_v54 = vpop.f32.mrb[234].mxu1 }
 0x492   : > { %v6309_v43 = vpop.f32.mrb[9].mxu0  ;;  %v6200_v28 = vpop.f32.mrb[235].mxu1 }
 0x493   : > { %v6310_v48 = vadd.f32 %v6309_v43, %v6308_v35  ;;  %v6311_v22 = vpop.f32.mrb[10].mxu0  ;;  %v4513_v45 = vadd.f32 %v6198_v59, %v8150_v20  ;;  %v6201_v63 = vadd.f32 %v6200_v28, %v6199_v54 }
 0x494   : > { %v6312_v41 = vpop.f32.mrb[11].mxu0 }
 0x495   : > { %v6313_v16 = vadd.f32 %v6312_v41, %v6311_v22  ;;  %v4516_v60 = vadd.f32 %v6201_v63, %v8152_v9  ;;  %v8237_v42 = vadd.f32 %v6310_v48, %v4513_v45 }
 0x497   : > { %v6202_v36 = vpop.f32.mrb[236].mxu1  ;;  %v8239_v25 = vadd.f32 %v6313_v16, %v4516_v60 }
 0x498   : > { %v6203_v47 = vpop.f32.mrb[237].mxu1 }
 0x499   : > { %v6314_v18 = vpop.f32.mrb[12].mxu0  ;;  %v6204_v10 = vadd.f32 %v6203_v47, %v6202_v36  ;;  %v6205_v1 = vpop.f32.mrb[238].mxu1 }
 0x49a   : > { %v6315_v46 = vpop.f32.mrb[13].mxu0  ;;  %v6206_v62 = vpop.f32.mrb[239].mxu1 }
 0x49b   : > { %v6316_v61 = vadd.f32 %v6315_v46, %v6314_v18  ;;  %v6317_v38 = vpop.f32.mrb[14].mxu0  ;;  %v4521_v20 = vadd.f32 %v6204_v10, %v8154_v11  ;;  %v6207_v23 = vadd.f32 %v6206_v62, %v6205_v1 }
 0x49c   : > { %v6318_v49 = vpop.f32.mrb[15].mxu0 }
 0x49d   : > { %v6319_v8 = vadd.f32 %v6318_v49, %v6317_v38  ;;  %v4524_v9 = vadd.f32 %v6207_v23, %v8157_v40  ;;  %v8243_v24 = vadd.f32 %v6316_v61, %v4521_v20 }
 0x49f   : > { %v6208_v0 = vpop.f32.mrb[240].mxu1  ;;  %v8245_v51 = vadd.f32 %v6319_v8, %v4524_v9 }
 0x4a0   : > { %v6209_v4 = vpop.f32.mrb[241].mxu1 }
 0x4a1   : > { %v6320_v15 = vpop.f32.mrb[16].mxu0  ;;  %v6210_v57 = vadd.f32 %v6209_v4, %v6208_v0  ;;  %v6211_v35 = vpop.f32.mrb[242].mxu1 }
 0x4a2   : > { %v6321_v59 = vpop.f32.mrb[17].mxu0  ;;  %v6212_v43 = vpop.f32.mrb[243].mxu1 }
 0x4a3   : > { %v6322_v54 = vadd.f32 %v6321_v59, %v6320_v15  ;;  %v6323_v48 = vpop.f32.mrb[18].mxu0  ;;  %v4529_v11 = vadd.f32 %v6210_v57, %v8159_v26  ;;  %v6213_v28 = vadd.f32 %v6212_v43, %v6211_v35 }
 0x4a4   : > { %v6324_v22 = vpop.f32.mrb[19].mxu0 }
 0x4a5   : > { %v6325_v45 = vadd.f32 %v6324_v22, %v6323_v48  ;;  %v4532_v40 = vadd.f32 %v6213_v28, %v8161_v5  ;;  %v8249_v63 = vadd.f32 %v6322_v54, %v4529_v11 }
 0x4a7   : > { %v6214_v41 = vpop.f32.mrb[244].mxu1  ;;  %v8251_v16 = vadd.f32 %v6325_v45, %v4532_v40 }
 0x4a8   : > { %v6215_v60 = vpop.f32.mrb[245].mxu1 }
 0x4a9   : > { %v6326_v36 = vpop.f32.mrb[20].mxu0  ;;  %v6216_v47 = vadd.f32 %v6215_v60, %v6214_v41  ;;  %v6217_v18 = vpop.f32.mrb[246].mxu1 }
 0x4aa   : > { %v6327_v10 = vpop.f32.mrb[21].mxu0  ;;  %v6218_v46 = vpop.f32.mrb[247].mxu1 }
 0x4ab   : > { %v6328_v1 = vadd.f32 %v6327_v10, %v6326_v36  ;;  %v6329_v61 = vpop.f32.mrb[22].mxu0  ;;  %v4537_v26 = vadd.f32 %v6216_v47, %v8163_v52  ;;  %v6219_v62 = vadd.f32 %v6218_v46, %v6217_v18 }
 0x4ac   : > { %v6330_v38 = vpop.f32.mrb[23].mxu0 }
 0x4ad   : > { %v6331_v20 = vadd.f32 %v6330_v38, %v6329_v61  ;;  %v4540_v5 = vadd.f32 %v6219_v62, %v8165_v27  ;;  %v8255_v23 = vadd.f32 %v6328_v1, %v4537_v26 }
 0x4af   : > { %v6220_v49 = vpop.f32.mrb[248].mxu1  ;;  %v8257_v8 = vadd.f32 %v6331_v20, %v4540_v5 }
 0x4b0   : > { %v6221_v9 = vpop.f32.mrb[249].mxu1 }
 0x4b1   : > { %v6332_v0 = vpop.f32.mrb[24].mxu0  ;;  %v6222_v4 = vadd.f32 %v6221_v9, %v6220_v49  ;;  %v6223_v15 = vpop.f32.mrb[250].mxu1 }
 0x4b2   : > { %v6333_v57 = vpop.f32.mrb[25].mxu0  ;;  %v6224_v59 = vpop.f32.mrb[251].mxu1 }
 0x4b3   : > { %v6334_v35 = vadd.f32 %v6333_v57, %v6332_v0  ;;  %v6335_v54 = vpop.f32.mrb[26].mxu0  ;;  %v4545_v52 = vadd.f32 %v6222_v4, %v8167_v53  ;;  %v6225_v43 = vadd.f32 %v6224_v59, %v6223_v15 }
 0x4b4   : > { %v6336_v48 = vpop.f32.mrb[27].mxu0 }
 0x4b5   : > { %v6337_v11 = vadd.f32 %v6336_v48, %v6335_v54  ;;  %v4548_v27 = vadd.f32 %v6225_v43, %v8169_v6  ;;  %v8261_v28 = vadd.f32 %v6334_v35, %v4545_v52 }
 0x4b7   : > { %v6226_v22 = vpop.f32.mrb[252].mxu1  ;;  %v8263_v45 = vadd.f32 %v6337_v11, %v4548_v27 }
 0x4b8   : > { %v6227_v40 = vpop.f32.mrb[253].mxu1 }
 0x4b9   : > { %v6338_v41 = vpop.f32.mrb[28].mxu0  ;;  %v6228_v60 = vadd.f32 %v6227_v40, %v6226_v22  ;;  %v6229_v36 = vpop.f32.mrb[254].mxu1 }
 0x4ba   : > { %v6339_v47 = vpop.f32.mrb[29].mxu0  ;;  %v6230_v10 = vpop.f32.mrb[255].mxu1 }
 0x4bb   : > { %v6340_v18 = vadd.f32 %v6339_v47, %v6338_v41  ;;  %v6341_v1 = vpop.f32.mrb[30].mxu0  ;;  %v4553_v53 = vadd.f32 %v6228_v60, %v8171_v34  ;;  %v6231_v46 = vadd.f32 %v6230_v10, %v6229_v36 }
 0x4bc   : > { %v6342_v61 = vpop.f32.mrb[31].mxu0 }
 0x4bd   : > { %v6343_v26 = vadd.f32 %v6342_v61, %v6341_v1  ;;  %v4556_v6 = vadd.f32 %v6231_v46, %v8173_v56  ;;  %v8267_v62 = vadd.f32 %v6340_v18, %v4553_v53 }
 0x4bf   : > { %v6434_v38 = vpop.f32.mrb[0].mxu1  ;;  %v8269_v20 = vadd.f32 %v6343_v26, %v4556_v6 }
 0x4c0   : > { %v8272_v5 = vadd.f32 %v6434_v38, %v8183_v33  ;;  %v4754_v49 = vpop.f32.mrb[1].mxu1 }
 0x4c1   : > { %v8275_v9 = vadd.f32 %v4754_v49, %v8177_v12  ;;  %v6435_v0 = vpop.f32.mrb[2].mxu1 }
 0x4c2   : > { %v8278_v34 = vadd.f32 %v6435_v0, %v8185_v58  ;;  %v4757_v4 = vpop.f32.mrb[3].mxu1  ;;  %v4921_v12 = vmul.f32 %v8272_v5, %v8272_v5 }
 0x4c3   : > { %v8281_v15 = vadd.f32 %v4757_v4, %v8179_v32  ;;  %v4919_v56 = vmul.f32 %v8275_v9, %v8275_v9 }
 0x4c4   : > { %v4922_v52 = vmul.f32 %v8278_v34, %v8278_v34 }
 0x4c5   : > { %v4881_v57 = vadd.f32 %v8281_v15, %v8275_v9  ;;  %v4920_v33 = vmul.f32 %v8281_v15, %v8281_v15 }
 0x4c7   : > { %v4882_v35 = vadd.f32 %v4881_v57, %v8272_v5  ;;  %v4951_v58 = vadd.f32 %v4920_v33, %v4919_v56  ;;  %v6438_v59 = vpop.f32.mrb[4].mxu1 }
 0x4c8   : > { %v8293_v54 = vadd.f32 %v6438_v59, %v8195_v17  ;;  %v4770_v32 = vpop.f32.mrb[5].mxu1 }
 0x4c9   : > { %v4952_v43 = vadd.f32 %v4951_v58, %v4921_v12  ;;  %v8298_v48 = vadd.f32 %v4770_v32, %v8189_v31  ;;  %v4883_v11 = vadd.f32 %v4882_v35, %v8278_v34  ;;  %v6439_v27 = vpop.f32.mrb[6].mxu1 }
 0x4ca   : > { %v8302_v22 = vadd.f32 %v6439_v27, %v8197_v44  ;;  %v4773_v40 = vpop.f32.mrb[7].mxu1  ;;  %v4925_v44 = vmul.f32 %v8293_v54, %v8293_v54 }
 0x4cb   : > { %v4884_v41 = vadd.f32 %v4883_v11, %v8298_v48  ;;  %v4923_v17 = vmul.f32 %v8298_v48, %v8298_v48  ;;  %v4953_v60 = vadd.f32 %v4952_v43, %v4922_v52  ;;  %v8308_v36 = vadd.f32 %v4773_v40, %v8191_v21 }
 0x4cc   : > { %v4926_v21 = vmul.f32 %v8302_v22, %v8302_v22 }
 0x4cd   : > { %v4954_v47 = vadd.f32 %v4953_v60, %v4923_v17  ;;  %v4885_v31 = vadd.f32 %v4884_v41, %v8308_v36  ;;  %v4924_v18 = vmul.f32 %v8308_v36, %v8308_v36 }
 0x4cf   : > { %v4886_v10 = vadd.f32 %v4885_v31, %v8293_v54  ;;  %v4955_v1 = vadd.f32 %v4954_v47, %v4924_v18  ;;  %v6442_v53 = vpop.f32.mrb[8].mxu1 }
 0x4d0   : > { %v8317_v46 = vadd.f32 %v6442_v53, %v8207_v13  ;;  %v4786_v61 = vpop.f32.mrb[9].mxu1 }
 0x4d1   : > { %v4956_v26 = vadd.f32 %v4955_v1, %v4925_v44  ;;  %v8322_v6 = vadd.f32 %v4786_v61, %v8201_v3  ;;  %v4887_v38 = vadd.f32 %v4886_v10, %v8302_v22  ;;  %v6443_v49 = vpop.f32.mrb[10].mxu1 }
 0x4d2   : > { %v8326_v0 = vadd.f32 %v6443_v49, %v8209_v30  ;;  %v4789_v4 = vpop.f32.mrb[11].mxu1  ;;  %v4929_v30 = vmul.f32 %v8317_v46, %v8317_v46 }
 0x4d3   : > { %v4888_v56 = vadd.f32 %v4887_v38, %v8322_v6  ;;  %v4927_v13 = vmul.f32 %v8322_v6, %v8322_v6  ;;  %v4957_v57 = vadd.f32 %v4956_v26, %v4926_v21  ;;  %v8332_v33 = vadd.f32 %v4789_v4, %v8203_v2 }
 0x4d4   : > { %v4930_v2 = vmul.f32 %v8326_v0, %v8326_v0 }
 0x4d5   : > { %v4958_v12 = vadd.f32 %v4957_v57, %v4927_v13  ;;  %v4889_v3 = vadd.f32 %v4888_v56, %v8332_v33  ;;  %v4928_v35 = vmul.f32 %v8332_v33, %v8332_v33 }
 0x4d7   : > { %v4890_v58 = vadd.f32 %v4889_v3, %v8317_v46  ;;  %v4959_v59 = vadd.f32 %v4958_v12, %v4928_v35  ;;  %v6446_v32 = vpop.f32.mrb[12].mxu1 }
 0x4d8   : > { %v8341_v52 = vadd.f32 %v6446_v32, %v8219_v14  ;;  %v4802_v43 = vpop.f32.mrb[13].mxu1 }
 0x4d9   : > { %v4960_v11 = vadd.f32 %v4959_v59, %v4929_v30  ;;  %v8346_v27 = vadd.f32 %v4802_v43, %v8213_v39  ;;  %v4891_v40 = vadd.f32 %v4890_v58, %v8326_v0  ;;  %v6447_v41 = vpop.f32.mrb[14].mxu1 }
 0x4da   : > { %v8350_v17 = vadd.f32 %v6447_v41, %v8221_v7  ;;  %v4805_v60 = vpop.f32.mrb[15].mxu1  ;;  %v4933_v7 = vmul.f32 %v8341_v52, %v8341_v52 }
 0x4db   : > { %v4892_v47 = vadd.f32 %v4891_v40, %v8346_v27  ;;  %v4931_v14 = vmul.f32 %v8346_v27, %v8346_v27  ;;  %v4961_v31 = vadd.f32 %v4960_v11, %v4930_v2  ;;  %v8356_v18 = vadd.f32 %v4805_v60, %v8215_v37 }
 0x4dc   : > { %v4934_v37 = vmul.f32 %v8350_v17, %v8350_v17 }
 0x4dd   : > { %v4962_v44 = vadd.f32 %v4961_v31, %v4931_v14  ;;  %v4893_v39 = vadd.f32 %v4892_v47, %v8356_v18  ;;  %v4932_v10 = vmul.f32 %v8356_v18, %v8356_v18 }
 0x4df   : > { %v4894_v1 = vadd.f32 %v4893_v39, %v8341_v52  ;;  %v4963_v53 = vadd.f32 %v4962_v44, %v4932_v10  ;;  %v6450_v61 = vpop.f32.mrb[16].mxu1 }
 0x4e0   : > { %v8365_v21 = vadd.f32 %v6450_v61, %v8231_v19  ;;  %v4818_v26 = vpop.f32.mrb[17].mxu1 }
 0x4e1   : > { %v4964_v38 = vadd.f32 %v4963_v53, %v4933_v7  ;;  %v8370_v49 = vadd.f32 %v4818_v26, %v8225_v29  ;;  %v4895_v4 = vadd.f32 %v4894_v1, %v8350_v17  ;;  %v6451_v56 = vpop.f32.mrb[18].mxu1 }
 0x4e2   : > { %v8374_v13 = vadd.f32 %v6451_v56, %v8233_v55  ;;  %v4821_v57 = vpop.f32.mrb[19].mxu1  ;;  %v4937_v55 = vmul.f32 %v8365_v21, %v8365_v21 }
 0x4e3   : > { %v4896_v12 = vadd.f32 %v4895_v4, %v8370_v49  ;;  %v4935_v19 = vmul.f32 %v8370_v49, %v8370_v49  ;;  %v4965_v3 = vadd.f32 %v4964_v38, %v4934_v37  ;;  %v8380_v35 = vadd.f32 %v4821_v57, %v8227_v50 }
 0x4e4   : > { %v4938_v50 = vmul.f32 %v8374_v13, %v8374_v13 }
 0x4e5   : > { %v4966_v30 = vadd.f32 %v4965_v3, %v4935_v19  ;;  %v4897_v29 = vadd.f32 %v4896_v12, %v8380_v35  ;;  %v4936_v58 = vmul.f32 %v8380_v35, %v8380_v35 }
 0x4e7   : > { %v4898_v59 = vadd.f32 %v4897_v29, %v8365_v21  ;;  %v4967_v32 = vadd.f32 %v4966_v30, %v4936_v58  ;;  %v6454_v43 = vpop.f32.mrb[20].mxu1 }
 0x4e8   : > { %v8389_v2 = vadd.f32 %v6454_v43, %v8243_v24  ;;  %v4834_v11 = vpop.f32.mrb[21].mxu1 }
 0x4e9   : > { %v4968_v40 = vadd.f32 %v4967_v32, %v4937_v55  ;;  %v8394_v41 = vadd.f32 %v4834_v11, %v8237_v42  ;;  %v4899_v60 = vadd.f32 %v4898_v59, %v8374_v13  ;;  %v6455_v47 = vpop.f32.mrb[22].mxu1 }
 0x4ea   : > { %v8398_v14 = vadd.f32 %v6455_v47, %v8245_v51  ;;  %v4837_v31 = vpop.f32.mrb[23].mxu1  ;;  %v4941_v51 = vmul.f32 %v8389_v2, %v8389_v2 }
 0x4eb   : > { %v4900_v44 = vadd.f32 %v4899_v60, %v8394_v41  ;;  %v4939_v24 = vmul.f32 %v8394_v41, %v8394_v41  ;;  %v4969_v39 = vadd.f32 %v4968_v40, %v4938_v50  ;;  %v8404_v10 = vadd.f32 %v4837_v31, %v8239_v25 }
 0x4ec   : > { %v4942_v25 = vmul.f32 %v8398_v14, %v8398_v14 }
 0x4ed   : > { %v4970_v7 = vadd.f32 %v4969_v39, %v4939_v24  ;;  %v4901_v42 = vadd.f32 %v4900_v44, %v8404_v10  ;;  %v4940_v1 = vmul.f32 %v8404_v10, %v8404_v10 }
 0x4ef   : > { %v4902_v53 = vadd.f32 %v4901_v42, %v8389_v2  ;;  %v4971_v61 = vadd.f32 %v4970_v7, %v4940_v1  ;;  %v6458_v26 = vpop.f32.mrb[24].mxu1 }
 0x4f0   : > { %v8413_v37 = vadd.f32 %v6458_v26, %v8255_v23  ;;  %v4850_v38 = vpop.f32.mrb[25].mxu1 }
 0x4f1   : > { %v4972_v4 = vadd.f32 %v4971_v61, %v4941_v51  ;;  %v8418_v56 = vadd.f32 %v4850_v38, %v8249_v63  ;;  %v4903_v57 = vadd.f32 %v4902_v53, %v8398_v14  ;;  %v6459_v12 = vpop.f32.mrb[26].mxu1 }
 0x4f2   : > { %v8422_v19 = vadd.f32 %v6459_v12, %v8257_v8  ;;  %v4853_v3 = vpop.f32.mrb[27].mxu1  ;;  %v4945_v8 = vmul.f32 %v8413_v37, %v8413_v37 }
 0x4f3   : > { %v4904_v30 = vadd.f32 %v4903_v57, %v8418_v56  ;;  %v4943_v23 = vmul.f32 %v8418_v56, %v8418_v56  ;;  %v4973_v29 = vadd.f32 %v4972_v4, %v4942_v25  ;;  %v8428_v58 = vadd.f32 %v4853_v3, %v8251_v16 }
 0x4f4   : > { %v4946_v16 = vmul.f32 %v8422_v19, %v8422_v19 }
 0x4f5   : > { %v4974_v55 = vadd.f32 %v4973_v29, %v4943_v23  ;;  %v4905_v63 = vadd.f32 %v4904_v30, %v8428_v58  ;;  %v4944_v59 = vmul.f32 %v8428_v58, %v8428_v58 }
 0x4f7   : > { %v4906_v32 = vadd.f32 %v4905_v63, %v8413_v37  ;;  %v4975_v43 = vadd.f32 %v4974_v55, %v4944_v59  ;;  %v6462_v11 = vpop.f32.mrb[28].mxu1 }
 0x4f8   : > { %v8437_v50 = vadd.f32 %v6462_v11, %v8267_v62  ;;  %v4866_v40 = vpop.f32.mrb[29].mxu1 }
 0x4f9   : > { %v4976_v60 = vadd.f32 %v4975_v43, %v4945_v8  ;;  %v8442_v47 = vadd.f32 %v4866_v40, %v8261_v28  ;;  %v4907_v31 = vadd.f32 %v4906_v32, %v8422_v19  ;;  %v6463_v44 = vpop.f32.mrb[30].mxu1 }
 0x4fa   : > { %v8446_v24 = vadd.f32 %v6463_v44, %v8269_v20  ;;  %v4869_v39 = vpop.f32.mrb[31].mxu1  ;;  %v4949_v20 = vmul.f32 %v8437_v50, %v8437_v50 }
 0x4fb   : > { %v4908_v7 = vadd.f32 %v4907_v31, %v8442_v47  ;;  %v4947_v62 = vmul.f32 %v8442_v47, %v8442_v47  ;;  %v4977_v42 = vadd.f32 %v4976_v60, %v4946_v16  ;;  %v8452_v1 = vadd.f32 %v4869_v39, %v8263_v45 }
 0x4fc   : > { %v4950_v38 = vmul.f32 %v8446_v24, %v8446_v24 }
 0x4fd   : > { %v4978_v51 = vadd.f32 %v4977_v42, %v4947_v62  ;;  %v4909_v28 = vadd.f32 %v4908_v7, %v8452_v1  ;;  %v4948_v53 = vmul.f32 %v8452_v1, %v8452_v1 }
 0x4ff   : > { %v4910_v61 = vadd.f32 %v4909_v28, %v8437_v50  ;;  %v4979_v26 = vadd.f32 %v4978_v51, %v4948_v53 }
 0x501   : > { %v4911_v25 = vadd.f32 %v4910_v61, %v8446_v24  ;;  %v4980_v4 = vadd.f32 %v4979_v26, %v4949_v20 }
 0x503   : > { %v4912_v45 = vrot.slane %v4911_v25, 4  ;;  %v4981_v57 = vadd.f32 %v4980_v4, %v4950_v38  ;;  %v5087_v4 = vld [vmem:[%s7051_s30 + $0xe8] sm:$0xff] }
 0x505   : > { %v4913_v12 = vadd.f32 %v4912_v45, %v4911_v25  ;;  %v4982_v3 = vrot.slane %v4981_v57, 4 }
 0x507   : > { %v4914_v30 = vrot.slane %v4913_v12, 2  ;;  %v4983_v23 = vadd.f32 %v4982_v3, %v4981_v57 }
 0x509   : > { %v4915_v29 = vadd.f32 %v4914_v30, %v4913_v12  ;;  %v4984_v55 = vrot.slane %v4983_v23, 2 }
 0x50b   : > { %v4916_v63 = vrot.slane %v4915_v29, 1  ;;  %v4985_v59 = vadd.f32 %v4984_v55, %v4983_v23  ;;  %v5060_v55 = vld [vmem:[%s7051_s30 + $0x10] sm:$0xff] }
 0x50d   : > { %v4917_v8 = vadd.f32 %v4916_v63, %v4915_v29  ;;  %v4986_v32 = vrot.slane %v4985_v59, 1 }
 0x50f   : > { %v8463_v43 = vmul.f32 0.00390625, %v4917_v8  ;;  %v4987_v11 = vadd.f32 %v4986_v32, %v4985_v59 }
 0x511   : > { %v4988_v40 = vmul.f32 0.00390625, %v4987_v11  ;;  %v4989_v16 = vmul.f32 %v8463_v43, %v8463_v43  ;;  %v5021_v60 = vsub.f32 %v8452_v1, %v8463_v43  ;;  %v5001_v44 = vsub.f32 %v8332_v33, %v8463_v43  ;;  %v5061_v11 = vld [vmem:[%s7051_s30 + $0x18] sm:$0xff] }
 0x512   : > { %v5003_v39 = vsub.f32 %v8326_v0, %v8463_v43  ;;  %v5004_v62 = vsub.f32 %v8346_v27, %v8463_v43  ;;  %v5005_v42 = vsub.f32 %v8356_v18, %v8463_v43  ;;  %v5006_v51 = vsub.f32 %v8341_v52, %v8463_v43 }
 0x513   : > { %v4990_v31 = vsub.f32 %v4988_v40, %v4989_v16  ;;  %v5007_v1 = vsub.f32 %v8350_v17, %v8463_v43  ;;  %v5008_v28 = vsub.f32 %v8370_v49, %v8463_v43  ;;  %v5009_v33 = vsub.f32 %v8380_v35, %v8463_v43  ;;  %v5059_v40 = vld [vmem:[%s7051_s30 + $0x8] sm:$0xff]  ;;  %v5064_v16 = vld [vmem:[%s7051_s30 + $0x30] sm:$0xff] }
 0x514   : > { %v5010_v0 = vsub.f32 %v8365_v21, %v8463_v43  ;;  %v5011_v27 = vsub.f32 %v8374_v13, %v8463_v43  ;;  %v5012_v18 = vsub.f32 %v8394_v41, %v8463_v43  ;;  %v5013_v52 = vsub.f32 %v8404_v10, %v8463_v43 }
 0x515   : > { %v4991_v7 = vmax.f32 %v4990_v31, 0.0  ;;  %v5014_v17 = vsub.f32 %v8389_v2, %v8463_v43  ;;  %v5015_v49 = vsub.f32 %v8398_v14, %v8463_v43  ;;  %v5016_v21 = vsub.f32 %v8418_v56, %v8463_v43 }
 0x516   : > { %v5017_v35 = vsub.f32 %v8428_v58, %v8463_v43  ;;  %v5018_v13 = vsub.f32 %v8413_v37, %v8463_v43  ;;  %v5019_v41 = vsub.f32 %v8422_v19, %v8463_v43  ;;  %v5020_v2 = vsub.f32 %v8442_v47, %v8463_v43  ;;  %v5076_v37 = vld [vmem:[%s7051_s30 + $0x90] sm:$0xff] }
 0x517   : > { %v5024_v53 = vadd.f32 1e-05, %v4991_v7  ;;  %v5022_v14 = vsub.f32 %v8437_v50, %v8463_v43  ;;  %v5023_v10 = vsub.f32 %v8446_v24, %v8463_v43  ;;  %v4992_v56 = vsub.f32 %v8275_v9, %v8463_v43  ;;  %v5080_v50 = vld [vmem:[%s7051_s30 + $0xb0] sm:$0xff]  ;;  %v5079_v24 = vld [vmem:[%s7051_s30 + $0xa8] sm:$0xff] }
 0x518   : > { %v4993_v58 = vsub.f32 %v8281_v15, %v8463_v43  ;;  %v4994_v20 = vsub.f32 %v8272_v5, %v8463_v43  ;;  %v4995_v61 = vsub.f32 %v8278_v34, %v8463_v43  ;;  %v4996_v26 = vsub.f32 %v8298_v48, %v8463_v43 }
 0x519   : > { %6683 = vrsqrt.f32 %v5024_v53  ;;  %v4997_v38 = vsub.f32 %v8308_v36, %v8463_v43  ;;  %v4998_v9 = vsub.f32 %v8293_v54, %v8463_v43  ;;  %v4999_v15 = vsub.f32 %v8302_v22, %v8463_v43  ;;  %v5068_v53 = vld [vmem:[%s7051_s30 + $0x50] sm:$0xff] }
 0x51a   : > { %v5000_v5 = vsub.f32 %v8322_v6, %v8463_v43  ;;  %v5002_v34 = vsub.f32 %v8317_v46, %v8463_v43  ;;  %v5058_v46 = vld [vmem:[%s7051_s30] sm:$0xff]  ;;  %v5084_v43 = vld [vmem:[%s7051_s30 + $0xd0] sm:$0xff] }
 0x523   : > { %v6684_v25 = vpop.eup %6683 }
 0x524   : > { %v5055_v48 = vmul.f32 %v6684_v25, %v5021_v60  ;;  %v5026_v45 = vmul.f32 %v6684_v25, %v4992_v56  ;;  %v5027_v57 = vmul.f32 %v6684_v25, %v4993_v58  ;;  %v5028_v36 = vmul.f32 %v6684_v25, %v4994_v20  ;;  %v5062_v60 = vld [vmem:[%s7051_s30 + $0x20] sm:$0xff] }
 0x525   : > { %v5029_v12 = vmul.f32 %v6684_v25, %v4995_v61  ;;  %v5030_v54 = vmul.f32 %v6684_v25, %v4996_v26  ;;  %v5031_v3 = vmul.f32 %v6684_v25, %v4997_v38  ;;  %v5032_v22 = vmul.f32 %v6684_v25, %v4998_v9  ;;  %v5066_v56 = vld [vmem:[%s7051_s30 + $0x40] sm:$0xff] }
 0x526   : > { %v5119_v30 = vadd.f32 %v5087_v4, %v5055_v48  ;;  %v5033_v23 = vmul.f32 %v6684_v25, %v4999_v15  ;;  %v5034_v29 = vmul.f32 %v6684_v25, %v5000_v5  ;;  %v5035_v6 = vmul.f32 %v6684_v25, %v5001_v44  ;;  %v5075_v15 = vld [vmem:[%s7051_s30 + $0x88] sm:$0xff] }
 0x527   : > { %v5036_v63 = vmul.f32 %v6684_v25, %v5002_v34  ;;  %v5037_v59 = vmul.f32 %v6684_v25, %v5003_v39  ;;  %v5038_v8 = vmul.f32 %v6684_v25, %v5004_v62  ;;  %v5039_v32 = vmul.f32 %v6684_v25, %v5005_v42  ;;  %v5065_v62 = vld [vmem:[%s7051_s30 + $0x38] sm:$0xff]  ;;  %v5063_v42 = vld [vmem:[%s7051_s30 + $0x28] sm:$0xff] }
 0x528   : > { %5151 = vst [vmem:[%s8540_s18 + $0xe8] sm:$0xff] %v5119_v30  ;;  %v5040_v31 = vmul.f32 %v6684_v25, %v5006_v51  ;;  %v8543_v44 = vmul.f32 %v6684_v25, %v5007_v1  ;;  %v8545_v7 = vmul.f32 %v6684_v25, %v5008_v28  ;;  %v8547_v39 = vmul.f32 %v6684_v25, %v5009_v33  ;;  %v5069_v1 = vld [vmem:[%s7051_s30 + $0x58] sm:$0xff]  ;;  %v5067_v28 = vld [vmem:[%s7051_s30 + $0x48] sm:$0xff]  ;;  %v5072_v33 = vld [vmem:[%s7051_s30 + $0x70] sm:$0xff] }
 0x529   : > { %v5044_v58 = vmul.f32 %v6684_v25, %v5010_v0  ;;  %v8553_v20 = vmul.f32 %v6684_v25, %v5011_v27  ;;  %v8555_v61 = vmul.f32 %v6684_v25, %v5012_v18  ;;  %v8557_v51 = vmul.f32 %v6684_v25, %v5013_v52  ;;  %v5070_v0 = vld [vmem:[%s7051_s30 + $0x60] sm:$0xff]  ;;  %v5073_v27 = vld [vmem:[%s7051_s30 + $0x78] sm:$0xff]  ;;  %v5071_v18 = vld [vmem:[%s7051_s30 + $0x68] sm:$0xff] }
 0x52a   : > { %v5048_v26 = vmul.f32 %v6684_v25, %v5014_v17  ;;  %v8562_v38 = vmul.f32 %v6684_v25, %v5015_v49  ;;  %v8564_v4 = vmul.f32 %v6684_v25, %v5016_v21  ;;  %v8566_v9 = vmul.f32 %v6684_v25, %v5017_v35  ;;  %v5074_v35 = vld [vmem:[%s7051_s30 + $0x80] sm:$0xff] }
 0x52b   : > { %v8574_v52 = vmul.f32 %v6684_v25, %v5018_v13  ;;  %v8579_v17 = vmul.f32 %v6684_v25, %v5019_v41  ;;  %v8584_v49 = vmul.f32 %v6684_v25, %v5020_v2  ;;  %v8589_v21 = vmul.f32 %v6684_v25, %v5022_v14  ;;  %v5077_v13 = vld [vmem:[%s7051_s30 + $0x98] sm:$0xff]  ;;  %v5078_v14 = vld [vmem:[%s7051_s30 + $0xa0] sm:$0xff] }
 0x52c   : > { %v8597_v19 = vmul.f32 %v6684_v25, %v5023_v10  ;;  %v5090_v41 = vadd.f32 %v5058_v46, %v5026_v45  ;;  %v5091_v47 = vadd.f32 %v5059_v40, %v5027_v57  ;;  %v5092_v2 = vadd.f32 %v5060_v55, %v5028_v36  ;;  %v5082_v36 = vld [vmem:[%s7051_s30 + $0xc0] sm:$0xff]  ;;  %v5089_v46 = vld [vmem:[%s7051_s30 + $0xf8] sm:$0xff] }
 0x52d   : > { %8728 = vst [vmem:[#allocation14_spill] sm:$0xff] %v8589_v21  ;;  %v5093_v5 = vadd.f32 %v5061_v11, %v5029_v12  ;;  %v5094_v34 = vadd.f32 %v5062_v60, %v5030_v54  ;;  %v5095_v48 = vadd.f32 %v5063_v42, %v5031_v3  ;;  %v5096_v30 = vadd.f32 %v5064_v16, %v5032_v22  ;;  %v5081_v21 = vld [vmem:[%s7051_s30 + $0xb8] sm:$0xff]  ;;  %v5083_v54 = vld [vmem:[%s7051_s30 + $0xc8] sm:$0xff]  ;;  %v5086_v55 = vld [vmem:[%s7051_s30 + $0xe0] sm:$0xff] }
 0x52e   : > { %v5097_v10 = vadd.f32 %v5065_v62, %v5033_v23  ;;  %v5098_v25 = vadd.f32 %v5066_v56, %v5034_v29  ;;  %v5099_v45 = vadd.f32 %v5067_v28, %v5035_v6  ;;  %v5100_v57 = vadd.f32 %v5068_v53, %v5036_v63  ;;  %5122 = vst [vmem:[%s8540_s18] sm:$0xff] %v5090_v41  ;;  %v5085_v12 = vld [vmem:[%s7051_s30 + $0xd8] sm:$0xff]  ;;  %v5088_v6 = vld [vmem:[%s7051_s30 + $0xf0] sm:$0xff] }
 0x52f   : > { %5123 = vst [vmem:[%s8540_s18 + $0x8] sm:$0xff] %v5091_v47  ;;  %5124 = vst [vmem:[%s8540_s18 + $0x10] sm:$0xff] %v5092_v2  ;;  %v5101_v3 = vadd.f32 %v5069_v1, %v5037_v59  ;;  %v5102_v22 = vadd.f32 %v5070_v0, %v5038_v8  ;;  %v5103_v23 = vadd.f32 %v5071_v18, %v5039_v32 }
 0x530   : > { %v5104_v29 = vadd.f32 %v5072_v33, %v5040_v31  ;;  %5125 = vst [vmem:[%s8540_s18 + $0x18] sm:$0xff] %v5093_v5  ;;  %5126 = vst [vmem:[%s8540_s18 + $0x20] sm:$0xff] %v5094_v34  ;;  %v5105_v63 = vadd.f32 %v5073_v27, %v8543_v44  ;;  %v5106_v59 = vadd.f32 %v5074_v35, %v8545_v7 }
 0x531   : > { %5127 = vst [vmem:[%s8540_s18 + $0x28] sm:$0xff] %v5095_v48  ;;  %5128 = vst [vmem:[%s8540_s18 + $0x30] sm:$0xff] %v5096_v30  ;;  %v5107_v8 = vadd.f32 %v5075_v15, %v8547_v39  ;;  %v5108_v32 = vadd.f32 %v5076_v37, %v5044_v58  ;;  %v5109_v11 = vadd.f32 %v5077_v13, %v8553_v20 }
 0x532   : > { %5129 = vst [vmem:[%s8540_s18 + $0x38] sm:$0xff] %v5097_v10  ;;  %5130 = vst [vmem:[%s8540_s18 + $0x40] sm:$0xff] %v5098_v25  ;;  %v5110_v40 = vadd.f32 %v5078_v14, %v8555_v61  ;;  %v5111_v16 = vadd.f32 %v5079_v24, %v8557_v51  ;;  %v5112_v60 = vadd.f32 %v5080_v50, %v5048_v26 }
 0x533   : > { %5131 = vst [vmem:[%s8540_s18 + $0x48] sm:$0xff] %v5099_v45  ;;  %5132 = vst [vmem:[%s8540_s18 + $0x50] sm:$0xff] %v5100_v57  ;;  %v5113_v31 = vadd.f32 %v5081_v21, %v8562_v38  ;;  %v5114_v44 = vadd.f32 %v5082_v36, %v8564_v4  ;;  %v5115_v7 = vadd.f32 %v5083_v54, %v8566_v9 }
 0x534   : > { %5133 = vst [vmem:[%s8540_s18 + $0x58] sm:$0xff] %v5101_v3  ;;  %5134 = vst [vmem:[%s8540_s18 + $0x60] sm:$0xff] %v5102_v22  ;;  %v5116_v39 = vadd.f32 %v5084_v43, %v8574_v52  ;;  %v5117_v62 = vadd.f32 %v5085_v12, %v8579_v17  ;;  %v5118_v42 = vadd.f32 %v5086_v55, %v8584_v49  ;;  %v8729_v53 = vld [vmem:[#allocation14_spill] sm:$0xff] }
 0x535   : > { %5135 = vst [vmem:[%s8540_s18 + $0x68] sm:$0xff] %v5103_v23  ;;  %5136 = vst [vmem:[%s8540_s18 + $0x70] sm:$0xff] %v5104_v29  ;;  %v5120_v56 = vadd.f32 %v5088_v6, %v8729_v53  ;;  %v5121_v58 = vadd.f32 %v5089_v46, %v8597_v19 }
 0x536   : > { %5137 = vst [vmem:[%s8540_s18 + $0x78] sm:$0xff] %v5105_v63  ;;  %5138 = vst [vmem:[%s8540_s18 + $0x80] sm:$0xff] %v5106_v59 }
 0x537   : > { %5139 = vst [vmem:[%s8540_s18 + $0x88] sm:$0xff] %v5107_v8  ;;  %5140 = vst [vmem:[%s8540_s18 + $0x90] sm:$0xff] %v5108_v32 }
 0x538   : > { %5141 = vst [vmem:[%s8540_s18 + $0x98] sm:$0xff] %v5109_v11  ;;  %5142 = vst [vmem:[%s8540_s18 + $0xa0] sm:$0xff] %v5110_v40 }
 0x539   : > { %5143 = vst [vmem:[%s8540_s18 + $0xa8] sm:$0xff] %v5111_v16  ;;  %5144 = vst [vmem:[%s8540_s18 + $0xb0] sm:$0xff] %v5112_v60 }
 0x53a   : > { %5145 = vst [vmem:[%s8540_s18 + $0xb8] sm:$0xff] %v5113_v31  ;;  %5146 = vst [vmem:[%s8540_s18 + $0xc0] sm:$0xff] %v5114_v44 }
 0x53b   : > { %5147 = vst [vmem:[%s8540_s18 + $0xc8] sm:$0xff] %v5115_v7  ;;  %5148 = vst [vmem:[%s8540_s18 + $0xd0] sm:$0xff] %v5116_v39 }
 0x53c   : > { %5149 = vst [vmem:[%s8540_s18 + $0xd8] sm:$0xff] %v5117_v62  ;;  %5150 = vst [vmem:[%s8540_s18 + $0xe0] sm:$0xff] %v5118_v42 }
 0x53d   : > { %5152 = vst [vmem:[%s8540_s18 + $0xf0] sm:$0xff] %v5120_v56  ;;  %5153 = vst [vmem:[%s8540_s18 + $0xf8] sm:$0xff] %v5121_v58 }
 0x53e   : > { %6784 = shalt.err (!%p6781_p2)
}
 0x53f   : > { %s6785_s25 = scalar_lea.hbm %s8647_s27, 4096  ;;  %s6789_s21 = scalar_lea.hbm %s8714_s3, 8192 }
 0x540   : > { %p6786_p13 = scmp.ne.s32.totalorder %s8647_s27, %s6785_s25  ;;  %p6790_p4 = scmp.lt.u32.totalorder %s8647_s27, %s8714_s3 }
 0x541   : > { %p6791_p5 = scmp.lt.u32.totalorder %s6789_s21, %s6785_s25  ;;  %p6793_p11 = scmp.lt.u32.totalorder %s6785_s25, %s8647_s27 }
 0x542   : > { %p6787_p6 = pnand %p6786_p13, %p8730_p0 }
 0x543   : > { %p6792_p8 = por %p6791_p5, %p6790_p4 }
 0x544   : > { %p6788_p10 = pneg %p6787_p6 }
 0x545   : > { %p6794_p1 = por %p6793_p11, %p6792_p8 }
 0x547   : > { %p6795_p3 = pnand %p6794_p1, %p6788_p10 }
 0x549   : > { %6798 = shalt.err (!%p6795_p3)
}
 0x54a   : > { %s6851_s30 = smov 128   ;;  %s6852_s18 = smov 8  }
 0x54b   : > { %6474 = dma.vmem_to_hbm [thread:$0]  (%p8730_p0), %s8651_s17, 4096, %s8647_s27, %s5155_s16, %s6851_s30, %s6851_s30, %s6852_s18  }
 0x54c PF: > { %s5183_s20 = sand.u32 1, %s6829_s12   ;;  %p8731_p7 = scmp.ne.s32.totalorder %s8719_s19, 0 }
 0x54d   : > { %p8732_p9 = scmp.ge.s32.totalorder %s6841_s15, 2  ;;  %s5184_s24 = scalar_lea.sflag [#allocation6], %s5183_s20 }
 0x54f   : > { %p6488_p12 = pnand %p8732_p9, %p8731_p7 }
 0x551   : > { %6824 = dma.done.wait (!%p6488_p12), %s5184_s24, 4096  }
 0x552   : > { %6826 = vsyncadd (!%p6488_p12), %s5184_s24, 4294963200  ;;  %p17_p2 = scmp.ge.s32.totalorder %s6983_s4, 4   ;;  %s8733_s12 = smov %s6833_s13 }
 0x553   : > { %s8734_s13 = smov %s6837_s14  ;;  %s8735_s14 = smov %s6999_s9 }
 0x554   : > { %s8736_s15 = smov %s6983_s4  ;;  %19 = sbr.rel (!%p17_p2) target bundleno = 6 (0x6), region = 88 }
 0x55b   :  { %5189 = vsyncpa [#allocation5], 1 }
 0x55c   :  { %5191 = vsyncpa [#allocation5 + $0x1], 1 }
 0x55d   :  { %5192 = vsyncpa [#allocation8], 1 }
 0x55e   :  { %5193 = vsyncpa [#allocation6], 1 }
 0x55f   :  { %5195 = vsyncpa [#allocation6 + $0x1], 1 }

</bundles_post_ra>
